<compile_context>
chip_gen: v5e
topology: v5e:2x2
jax: 0.10.0
libtpu: 0.0.40
codegen_flags: <defaults>
</compile_context>

<pallas_src>
import jax
import jax.numpy as jnp
import numpy as np
from jax.experimental import pallas as pl
from jax.experimental.pallas import tpu as pltpu

K = 5                # all convs are 5x5
BN_EPS = 1e-5
LRELU_SLOPE = 0.2
TM_MAX = 512                      # M-tile width (lanes), multiple of 128
VMEM_LIMIT = 32 * 1024 * 1024     # safe scoped-VMEM limit on v5e/v6e/v7x


def _round_up(x, m):
    return (x + m - 1) // m * m


def _choose_tiles(M):
    tm = min(TM_MAX, _round_up(M, 128))
    m_pad = _round_up(M, tm)
    return tm, m_pad, m_pad // tm


# ----------------------------- Pallas kernels -----------------------------

def fc_relu_kernel(w_ref, x_ref, b_ref, o_ref):
    # w: (1568, 64) bf16, x: (64, B) bf16, b: (1568, 1) f32 -> (1568, B) bf16
    y = jnp.dot(w_ref[...], x_ref[...], preferred_element_type=jnp.float32)
    y = y + b_ref[...]
    o_ref[...] = jnp.maximum(y, 0.0).astype(o_ref.dtype)


def conv_gemm_stats_kernel(w_ref, cols_ref, y_ref, sum_ref, sq_ref):
    # Pass 1 of BN convs: GEMM tile + per-tile partial sums for BN statistics.
    # w: (Cout4, KKC) bf16 pinned, cols: (KKC, TM) bf16
    # y: (Cout4, TM) f32, sum/sq: (1, Cout4, 1) f32 per tile
    y = jnp.dot(w_ref[...], cols_ref[...], preferred_element_type=jnp.float32)
    y_ref[...] = y
    sum_ref[0] = jnp.sum(y, axis=1, keepdims=True)
    sq_ref[0] = jnp.sum(y * y, axis=1, keepdims=True)


def bn_lrelu_kernel(scale_ref, shift_ref, y_ref, o_ref):
    # Pass 2: y * scale + shift (per row), LeakyReLU(0.2), bf16 store.
    y = y_ref[...] * scale_ref[...] + shift_ref[...]
    o_ref[...] = jnp.where(y >= 0.0, y, LRELU_SLOPE * y).astype(o_ref.dtype)


def conv_tanh_kernel(w_ref, cols_ref, o_ref):
    # Final conv (Cout padded to 8) + tanh epilogue, f32 out.
    y = jnp.dot(w_ref[...], cols_ref[...], preferred_element_type=jnp.float32)
    o_ref[...] = jnp.tanh(y).astype(o_ref.dtype)


# ----------------------------- kernel wrappers -----------------------------

def fc_relu(w, x_t, b):
    N = w.shape[0]
    B = x_t.shape[1]
    return pl.pallas_call(
        fc_relu_kernel,
        out_shape=jax.ShapeDtypeStruct((N, B), jnp.bfloat16),
        compiler_params=pltpu.CompilerParams(vmem_limit_bytes=VMEM_LIMIT),
    )(w, x_t, b)


def conv_gemm_stats(w_mat, cols, tm, nt):
    cout, kc = w_mat.shape
    m_pad = cols.shape[1]
    cost = pl.CostEstimate(
        flops=2 * cout * kc * m_pad,
        transcendentals=0,
        bytes_accessed=(cout * kc + kc * m_pad) * 2 + cout * m_pad * 4)
    return pl.pallas_call(
        conv_gemm_stats_kernel,
        grid=(nt,),
        in_specs=[pl.BlockSpec((cout, kc), lambda i: (0, 0)),   # resident weights
                  pl.BlockSpec((kc, tm), lambda i: (0, i))],
        out_specs=[pl.BlockSpec((cout, tm), lambda i: (0, i)),
                   pl.BlockSpec((1, cout, 1), lambda i: (i, 0, 0)),
                   pl.BlockSpec((1, cout, 1), lambda i: (i, 0, 0))],
        out_shape=[jax.ShapeDtypeStruct((cout, m_pad), jnp.float32),
                   jax.ShapeDtypeStruct((nt, cout, 1), jnp.float32),
                   jax.ShapeDtypeStruct((nt, cout, 1), jnp.float32)],
        compiler_params=pltpu.CompilerParams(
            dimension_semantics=("parallel",),
            vmem_limit_bytes=VMEM_LIMIT),
        cost_estimate=cost,
    )(w_mat, cols)


def bn_lrelu_apply(y, scale, shift, tm, nt):
    cout, m_pad = y.shape
    cost = pl.CostEstimate(
        flops=4 * cout * m_pad, transcendentals=0,
        bytes_accessed=cout * m_pad * 6)
    return pl.pallas_call(
        bn_lrelu_kernel,
        grid=(nt,),
        in_specs=[pl.BlockSpec((cout, 1), lambda i: (0, 0)),
                  pl.BlockSpec((cout, 1), lambda i: (0, 0)),
                  pl.BlockSpec((cout, tm), lambda i: (0, i))],
        out_specs=pl.BlockSpec((cout, tm), lambda i: (0, i)),
        out_shape=jax.ShapeDtypeStruct((cout, m_pad), jnp.bfloat16),
        compiler_params=pltpu.CompilerParams(
            dimension_semantics=("parallel",),
            vmem_limit_bytes=VMEM_LIMIT),
        cost_estimate=cost,
    )(scale, shift, y)


def conv_tanh(w_mat, cols, tm, nt):
    cout, kc = w_mat.shape
    m_pad = cols.shape[1]
    cost = pl.CostEstimate(
        flops=2 * cout * kc * m_pad,
        transcendentals=cout * m_pad,
        bytes_accessed=(cout * kc + kc * m_pad) * 2 + cout * m_pad * 4)
    return pl.pallas_call(
        conv_tanh_kernel,
        grid=(nt,),
        in_specs=[pl.BlockSpec((cout, kc), lambda i: (0, 0)),
                  pl.BlockSpec((kc, tm), lambda i: (0, i))],
        out_specs=pl.BlockSpec((cout, tm), lambda i: (0, i)),
        out_shape=jax.ShapeDtypeStruct((cout, m_pad), jnp.float32),
        compiler_params=pltpu.CompilerParams(
            dimension_semantics=("parallel",),
            vmem_limit_bytes=VMEM_LIMIT),
        cost_estimate=cost,
    )(w_mat, cols)


# --------------------------- XLA glue (layout only) ---------------------------
# Activations flow in (C, H, W, B) bf16 so the GEMM M axis (H*W*B) is lane-dense.

def _phase_cols(x):
    # 3x3 taps of the 1-padded (undilated) input -> (9*C, H*W*B).
    C, H, W, B = x.shape
    xp = jnp.pad(x, ((0, 0), (1, 1), (1, 1), (0, 0)))
    return jnp.concatenate(
        [xp[:, dh:dh + H, dw:dw + W, :].reshape(C, H * W * B)
         for dh in range(3) for dw in range(3)], axis=0)


def _full_cols(x, pad):
    # stride-1 5x5 taps of the `pad`-padded input -> (25*C, H*W*B).
    C, H, W, B = x.shape
    xp = jnp.pad(x, ((0, 0), (pad, pad), (pad, pad), (0, 0)))
    return jnp.concatenate(
        [xp[:, kh:kh + H, kw:kw + W, :].reshape(C, H * W * B)
         for kh in range(K) for kw in range(K)], axis=0)


def _bn_finalize(sums, sqs, gamma, beta, n_phases, count):
    # Fold per-tile partial sums over tiles and phases -> per-channel scale/shift.
    s1 = jnp.sum(sums[..., 0], axis=0).reshape(n_phases, -1).sum(axis=0)
    s2 = jnp.sum(sqs[..., 0], axis=0).reshape(n_phases, -1).sum(axis=0)
    mean = s1 / count
    var = jnp.maximum(s2 / count - mean * mean, 0.0)   # biased, training-mode
    scale = gamma * jax.lax.rsqrt(var + BN_EPS)
    shift = beta - mean * scale
    return (jnp.tile(scale, (n_phases,)).reshape(-1, 1),
            jnp.tile(shift, (n_phases,)).reshape(-1, 1))


def _unfold_phases(y, cout, H, W, B, M):
    # (4*Cout, M_pad) -> (Cout, 2H, 2W, B); row (a*2+b)*Cout+co is parity (a, b).
    y = y[:, :M].reshape(2, 2, cout, H, W, B)
    y = y.transpose(2, 3, 0, 4, 1, 5)
    return y.reshape(cout, 2 * H, 2 * W, B)


def convt_s2_bn_lrelu(x, w_mat, gamma, beta):
    # ConvTranspose2d(Cin,Cout,5,stride=2,pad=2,output_pad=1,bias=False)
    # + BatchNorm2d(training-mode stats) + LeakyReLU(0.2); bf16 output.
    C, H, W, B = x.shape
    cout = w_mat.shape[0] // 4
    M = H * W * B
    tm, m_pad, nt = _choose_tiles(M)
    cols = jnp.pad(_phase_cols(x), ((0, 0), (0, m_pad - M)))
    y, sums, sqs = conv_gemm_stats(w_mat, cols, tm, nt)
    scale, shift = _bn_finalize(sums, sqs, gamma, beta, 4, 4.0 * M)
    o = bn_lrelu_apply(y, scale, shift, tm, nt)
    return _unfold_phases(o, cout, H, W, B, M)


def convt_s1_tanh(x, w_mat):
    # ConvTranspose2d(Cin,1,5,stride=1,pad=2,bias=False) + Tanh; Cout padded to 8.
    C, H, W, B = x.shape
    M = H * W * B
    tm, m_pad, nt = _choose_tiles(M)
    cols = jnp.pad(_full_cols(x, K - 1 - 2), ((0, 0), (0, m_pad - M)))
    y = conv_tanh(w_mat, cols, tm, nt)
    return y[0:1, :M].reshape(1, H, W, B)


# ------------------------------ parameter prep ------------------------------

def init_params(key):
    # Parameters in PyTorch layouts.
    ks = jax.random.split(key, 5)
    p = {}
    p["fc_w"] = 0.05 * jax.random.normal(ks[0], (7 * 7 * 32, 64), jnp.float32)
    p["fc_b"] = 0.05 * jax.random.normal(ks[1], (7 * 7 * 32,), jnp.float32)
    p["w1"] = 0.05 * jax.random.normal(ks[2], (32, 16, K, K), jnp.float32)
    p["w2"] = 0.05 * jax.random.normal(ks[3], (16, 8, K, K), jnp.float32)
    p["w3"] = 0.05 * jax.random.normal(ks[4], (8, 1, K, K), jnp.float32)
    p["g1"] = jnp.ones((16,), jnp.float32)
    p["b1"] = jnp.zeros((16,), jnp.float32)
    p["g2"] = jnp.ones((8,), jnp.float32)
    p["b2"] = jnp.zeros((8,), jnp.float32)
    return p


def _convt_s2_weight_to_mat(wt):
    # PyTorch ConvTranspose2d weight (Cin,Cout,5,5), stride=2, pad=2, op=1
    # -> 4-phase folded matrix (4*Cout, 9*Cin).  Row = (a*2+b)*Cout + co,
    # col = (dh*3+dw)*Cin + ci, where output parity (a,b) uses kernel tap
    # kh = 4-2*dh (even) / 5-2*dh (odd) on the 1-padded undilated input.
    wt = np.asarray(wt)
    cin, cout = wt.shape[0], wt.shape[1]
    w = np.zeros((2, 2, cout, 3, 3, cin), np.float32)
    for a in range(2):
        for dh in range(3):
            kh = 4 - 2 * dh if a == 0 else 5 - 2 * dh
            if not 0 <= kh < K:
                continue
            for b in range(2):
                for dw in range(3):
                    kw = 4 - 2 * dw if b == 0 else 5 - 2 * dw
                    if not 0 <= kw < K:
                        continue
                    w[a, b, :, dh, dw, :] = wt[:, :, kh, kw].T
    return jnp.asarray(w.reshape(4 * cout, 9 * cin))


def _convt_s1_weight_to_mat(wt, cout_pad=8):
    # Stride-1 transposed conv == correlation with the spatially flipped kernel
    # on the (K-1-pad)-padded input; pad Cout to 8 for dense sublanes.
    wt = np.asarray(wt)
    cin, cout = wt.shape[0], wt.shape[1]
    w = np.flip(wt, axis=(2, 3)).transpose(2, 3, 0, 1).reshape(K * K * cin, cout).T
    wp = np.zeros((cout_pad, K * K * cin), np.float32)
    wp[:cout] = w
    return jnp.asarray(wp)


def prepare_params(p, mxu_dtype=jnp.bfloat16):
    # One-time reformatting into kernel layouts (outside the jitted forward).
    q = {}
    q["fc_w"] = p["fc_w"].astype(mxu_dtype)                        # (1568, 64)
    q["fc_b"] = p["fc_b"].reshape(-1, 1)                           # (1568, 1) f32
    q["w1"] = _convt_s2_weight_to_mat(p["w1"]).astype(mxu_dtype)   # (64, 288)
    q["w2"] = _convt_s2_weight_to_mat(p["w2"]).astype(mxu_dtype)   # (32, 144)
    q["w3"] = _convt_s1_weight_to_mat(p["w3"]).astype(mxu_dtype)   # (8, 200)
    q["g1"], q["b1"] = p["g1"], p["b1"]
    q["g2"], q["b2"] = p["g2"], p["b2"]
    return q


# ------------------------------ model forward ------------------------------

@jax.jit
def generator_forward(params, x):
    B = x.shape[0]
    # Linear + ReLU computed transposed: (1568, B) bf16; reshape straight into
    # the (C, H, W, B) conv layout (feature index is (c, h, w) row-major).
    h = fc_relu(params["fc_w"], x.T.astype(jnp.bfloat16), params["fc_b"])
    h = h.reshape(32, 7, 7, B)

    y = convt_s2_bn_lrelu(h, params["w1"], params["g1"], params["b1"])  # (16,14,14,B)
    y = convt_s2_bn_lrelu(y, params["w2"], params["g2"], params["b2"])  # (8,28,28,B)
    y = convt_s1_tanh(y, params["w3"])                                  # (1,28,28,B)

    # (C, H, W, B) -> NCHW to match the PyTorch module output layout.
    return y.transpose(3, 0, 1, 2)                                      # (B,1,28,28)


if __name__ == "__main__":
    x = jax.random.normal(jax.random.PRNGKey(0), (2, 64), jnp.float32)
    params = prepare_params(init_params(jax.random.PRNGKey(42)))
    out = generator_forward(params, x)
    out = jax.block_until_ready(out)
    assert out.shape == (2, 1, 28, 28), out.shape
    assert bool(jnp.all(jnp.isfinite(out)))
    print("KERNEL_OK")
</pallas_src>

<mosaic_0001>
module attributes {stable_mosaic.version = 11 : i64} {
  func.func @fc_relu_kernel(%arg0: memref<1568x64xbf16, #tpu.memory_space<vmem>>, %arg1: memref<64x2xbf16, #tpu.memory_space<vmem>>, %arg2: memref<1568x1xf32, #tpu.memory_space<vmem>>, %arg3: memref<1568x2xbf16, #tpu.memory_space<vmem>>) attributes {dimension_semantics = [], scalar_prefetch = 0 : i64, scratch_operands = 0 : i64, tpu.core_type = #tpu.core_type<tc>} {
    %c0 = arith.constant 0 : index
    %c0_0 = arith.constant 0 : index
    %0 = vector.load %arg0[%c0, %c0_0] : memref<1568x64xbf16, #tpu.memory_space<vmem>>, vector<1568x64xbf16>
    %c0_1 = arith.constant 0 : index
    %c0_2 = arith.constant 0 : index
    %1 = vector.load %arg1[%c0_1, %c0_2] : memref<64x2xbf16, #tpu.memory_space<vmem>>, vector<64x2xbf16>
    %cst = arith.constant dense<0.000000e+00> : vector<1568x2xf32>
    %2 = tpu.matmul %0, %1, %cst {dimension_numbers = #tpu.dot_dimension_numbers<[1], [0], [0], [1], [0, 0, 1, 1], [], []>} : vector<1568x64xbf16>, vector<64x2xbf16>, vector<1568x2xf32> -> vector<1568x2xf32>
    %c0_3 = arith.constant 0 : index
    %c0_4 = arith.constant 0 : index
    %3 = vector.load %arg2[%c0_3, %c0_4] : memref<1568x1xf32, #tpu.memory_space<vmem>>, vector<1568x1xf32>
    %4 = vector.broadcast %3 : vector<1568x1xf32> to vector<1568x2xf32>
    %5 = arith.addf %2, %4 : vector<1568x2xf32>
    %cst_5 = arith.constant 0.000000e+00 : f32
    %6 = vector.broadcast %cst_5 : f32 to vector<1568x2xf32>
    %7 = arith.maximumf %5, %6 : vector<1568x2xf32>
    %8 = arith.truncf %7 : vector<1568x2xf32> to vector<1568x2xbf16>
    %c0_6 = arith.constant 0 : index
    %c0_7 = arith.constant 0 : index
    %9 = vector.load %arg3[%c0_6, %c0_7] : memref<1568x2xbf16, #tpu.memory_space<vmem>>, vector<1568x2xbf16>
    tpu.vector_store %arg3[%c0_6, %c0_7], %8 {strides = array<i32>} : memref<1568x2xbf16, #tpu.memory_space<vmem>>, vector<1568x2xbf16>,
    return
  }
}

module attributes {stable_mosaic.version = 11 : i64} {
  func.func @bn_lrelu_kernel(%arg0: i32, %arg1: memref<64x1xf32, #tpu.memory_space<vmem>>, %arg2: memref<64x1xf32, #tpu.memory_space<vmem>>, %arg3: memref<64x128xf32, #tpu.memory_space<vmem>>, %arg4: memref<64x128xbf16, #tpu.memory_space<vmem>>) attributes {dimension_semantics = [#tpu.dimension_semantics<parallel>], iteration_bounds = array<i64: 1>, scalar_prefetch = 0 : i64, scratch_operands = 0 : i64, tpu.core_type = #tpu.core_type<tc>, window_params = [{pipeline_mode = #tpu.pipeline_mode<synchronous>, transform_indices = @transform_0, window_bounds = array<i64: 64, 1>}, {pipeline_mode = #tpu.pipeline_mode<synchronous>, transform_indices = @transform_1, window_bounds = array<i64: 64, 1>}, {transform_indices = @transform_2, window_bounds = array<i64: 64, 128>}, {transform_indices = @transform_3, window_bounds = array<i64: 64, 128>}]} {
    %c0 = arith.constant 0 : index
    %c0_0 = arith.constant 0 : index
    %0 = vector.load %arg3[%c0, %c0_0] : memref<64x128xf32, #tpu.memory_space<vmem>>, vector<64x128xf32>
    %c0_1 = arith.constant 0 : index
    %c0_2 = arith.constant 0 : index
    %1 = vector.load %arg1[%c0_1, %c0_2] : memref<64x1xf32, #tpu.memory_space<vmem>>, vector<64x1xf32>
    %2 = vector.broadcast %1 : vector<64x1xf32> to vector<64x128xf32>
    %3 = arith.mulf %0, %2 : vector<64x128xf32>
    %c0_3 = arith.constant 0 : index
    %c0_4 = arith.constant 0 : index
    %4 = vector.load %arg2[%c0_3, %c0_4] : memref<64x1xf32, #tpu.memory_space<vmem>>, vector<64x1xf32>
    %5 = vector.broadcast %4 : vector<64x1xf32> to vector<64x128xf32>
    %6 = arith.addf %3, %5 : vector<64x128xf32>
    %cst = arith.constant 0.000000e+00 : f32
    %7 = vector.broadcast %cst : f32 to vector<64x128xf32>
    %8 = arith.cmpf oge, %6, %7 : vector<64x128xf32>
    %cst_5 = arith.constant 2.000000e-01 : f32
    %9 = vector.broadcast %cst_5 : f32 to vector<64x128xf32>
    %10 = arith.mulf %9, %6 : vector<64x128xf32>
    %11 = arith.select %8, %6, %10 : vector<64x128xi1>, vector<64x128xf32>
    %12 = arith.truncf %11 : vector<64x128xf32> to vector<64x128xbf16>
    %c0_6 = arith.constant 0 : index
    %c0_7 = arith.constant 0 : index
    %13 = vector.load %arg4[%c0_6, %c0_7] : memref<64x128xbf16, #tpu.memory_space<vmem>>, vector<64x128xbf16>
    tpu.vector_store %arg4[%c0_6, %c0_7], %12 {strides = array<i32>} : memref<64x128xbf16, #tpu.memory_space<vmem>>, vector<64x128xbf16>,
    return
  }
  func.func @transform_0(%arg0: i32) -> (i32, i32) {
    %c0_i32 = arith.constant 0 : i32
    %c0_i32_0 = arith.constant 0 : i32
    %c0_i32_1 = arith.constant 0 : i32
    return %c0_i32, %c0_i32_0 : i32, i32
  }
  func.func @transform_1(%arg0: i32) -> (i32, i32) {
    %c0_i32 = arith.constant 0 : i32
    %c0_i32_0 = arith.constant 0 : i32
    %c0_i32_1 = arith.constant 0 : i32
    return %c0_i32, %c0_i32_0 : i32, i32
  }
  func.func @transform_2(%arg0: i32) -> (i32, i32) {
    %c0_i32 = arith.constant 0 : i32
    %c0_i32_0 = arith.constant 0 : i32
    return %c0_i32, %arg0 : i32, i32
  }
  func.func @transform_3(%arg0: i32) -> (i32, i32) {
    %c0_i32 = arith.constant 0 : i32
    %c0_i32_0 = arith.constant 0 : i32
    return %c0_i32, %arg0 : i32, i32
  }
}

module attributes {stable_mosaic.version = 11 : i64} {
  func.func @conv_gemm_stats_kernel(%arg0: i32, %arg1: memref<64x288xbf16, #tpu.memory_space<vmem>>, %arg2: memref<288x128xbf16, #tpu.memory_space<vmem>>, %arg3: memref<64x128xf32, #tpu.memory_space<vmem>>, %arg4: memref<1x64x1xf32, #tpu.memory_space<vmem>>, %arg5: memref<1x64x1xf32, #tpu.memory_space<vmem>>) attributes {dimension_semantics = [#tpu.dimension_semantics<parallel>], iteration_bounds = array<i64: 1>, scalar_prefetch = 0 : i64, scratch_operands = 0 : i64, tpu.core_type = #tpu.core_type<tc>, window_params = [{pipeline_mode = #tpu.pipeline_mode<synchronous>, transform_indices = @transform_0, window_bounds = array<i64: 64, 288>}, {transform_indices = @transform_1, window_bounds = array<i64: 288, 128>}, {transform_indices = @transform_2, window_bounds = array<i64: 64, 128>}, {transform_indices = @transform_3, window_bounds = array<i64: 1, 64, 1>}, {transform_indices = @transform_4, window_bounds = array<i64: 1, 64, 1>}]} {
    %c0 = arith.constant 0 : index
    %c0_0 = arith.constant 0 : index
    %0 = vector.load %arg1[%c0, %c0_0] : memref<64x288xbf16, #tpu.memory_space<vmem>>, vector<64x288xbf16>
    %c0_1 = arith.constant 0 : index
    %c0_2 = arith.constant 0 : index
    %1 = vector.load %arg2[%c0_1, %c0_2] : memref<288x128xbf16, #tpu.memory_space<vmem>>, vector<288x128xbf16>
    %cst = arith.constant dense<0.000000e+00> : vector<64x128xf32>
    %2 = tpu.matmul %0, %1, %cst {dimension_numbers = #tpu.dot_dimension_numbers<[1], [0], [0], [1], [0, 0, 1, 1], [], []>} : vector<64x288xbf16>, vector<288x128xbf16>, vector<64x128xf32> -> vector<64x128xf32>
    %c0_3 = arith.constant 0 : index
    %c0_4 = arith.constant 0 : index
    %3 = vector.load %arg3[%c0_3, %c0_4] : memref<64x128xf32, #tpu.memory_space<vmem>>, vector<64x128xf32>
    tpu.vector_store %arg3[%c0_3, %c0_4], %2 {strides = array<i32>} : memref<64x128xf32, #tpu.memory_space<vmem>>, vector<64x128xf32>,
    %cst_5 = arith.constant dense<0.000000e+00> : vector<64xf32>
    %4 = vector.multi_reduction <add>, %2, %cst_5 [1] : vector<64x128xf32> to vector<64xf32>
    %5 = vector.shape_cast %4 : vector<64xf32> to vector<64x1xf32>
    %c0_6 = arith.constant 0 : index
    %c0_7 = arith.constant 0 : index
    %c0_8 = arith.constant 0 : index
    %6 = vector.load %arg4[%c0_6, %c0_7, %c0_8] : memref<1x64x1xf32, #tpu.memory_space<vmem>>, vector<1x64x1xf32>
    %7 = vector.shape_cast %6 : vector<1x64x1xf32> to vector<64x1xf32>
    %8 = vector.shape_cast %5 : vector<64x1xf32> to vector<1x64x1xf32>
    tpu.vector_store %arg4[%c0_6, %c0_7, %c0_8], %8 {strides = array<i32>} : memref<1x64x1xf32, #tpu.memory_space<vmem>>, vector<1x64x1xf32>,
    %9 = arith.mulf %2, %2 : vector<64x128xf32>
    %cst_9 = arith.constant dense<0.000000e+00> : vector<64xf32>
    %10 = vector.multi_reduction <add>, %9, %cst_9 [1] : vector<64x128xf32> to vector<64xf32>
    %11 = vector.shape_cast %10 : vector<64xf32> to vector<64x1xf32>
    %c0_10 = arith.constant 0 : index
    %c0_11 = arith.constant 0 : index
    %c0_12 = arith.constant 0 : index
    %12 = vector.load %arg5[%c0_10, %c0_11, %c0_12] : memref<1x64x1xf32, #tpu.memory_space<vmem>>, vector<1x64x1xf32>
    %13 = vector.shape_cast %12 : vector<1x64x1xf32> to vector<64x1xf32>
    %14 = vector.shape_cast %11 : vector<64x1xf32> to vector<1x64x1xf32>
    tpu.vector_store %arg5[%c0_10, %c0_11, %c0_12], %14 {strides = array<i32>} : memref<1x64x1xf32, #tpu.memory_space<vmem>>, vector<1x64x1xf32>,
    return
  }
  func.func @transform_0(%arg0: i32) -> (i32, i32) {
    %c0_i32 = arith.constant 0 : i32
    %c0_i32_0 = arith.constant 0 : i32
    %c0_i32_1 = arith.constant 0 : i32
    return %c0_i32, %c0_i32_0 : i32, i32
  }
  func.func @transform_1(%arg0: i32) -> (i32, i32) {
    %c0_i32 = arith.constant 0 : i32
    %c0_i32_0 = arith.constant 0 : i32
    return %c0_i32, %arg0 : i32, i32
  }
  func.func @transform_2(%arg0: i32) -> (i32, i32) {
    %c0_i32 = arith.constant 0 : i32
    %c0_i32_0 = arith.constant 0 : i32
    return %c0_i32, %arg0 : i32, i32
  }
  func.func @transform_3(%arg0: i32) -> (i32, i32, i32) {
    %c0_i32 = arith.constant 0 : i32
    %c0_i32_0 = arith.constant 0 : i32
    %c0_i32_1 = arith.constant 0 : i32
    return %arg0, %c0_i32, %c0_i32_0 : i32, i32, i32
  }
  func.func @transform_4(%arg0: i32) -> (i32, i32, i32) {
    %c0_i32 = arith.constant 0 : i32
    %c0_i32_0 = arith.constant 0 : i32
    %c0_i32_1 = arith.constant 0 : i32
    return %arg0, %c0_i32, %c0_i32_0 : i32, i32, i32
  }
}

module attributes {stable_mosaic.version = 11 : i64} {
  func.func @conv_gemm_stats_kernel(%arg0: i32, %arg1: memref<32x144xbf16, #tpu.memory_space<vmem>>, %arg2: memref<144x512xbf16, #tpu.memory_space<vmem>>, %arg3: memref<32x512xf32, #tpu.memory_space<vmem>>, %arg4: memref<1x32x1xf32, #tpu.memory_space<vmem>>, %arg5: memref<1x32x1xf32, #tpu.memory_space<vmem>>) attributes {dimension_semantics = [#tpu.dimension_semantics<parallel>], iteration_bounds = array<i64: 1>, scalar_prefetch = 0 : i64, scratch_operands = 0 : i64, tpu.core_type = #tpu.core_type<tc>, window_params = [{pipeline_mode = #tpu.pipeline_mode<synchronous>, transform_indices = @transform_0, window_bounds = array<i64: 32, 144>}, {transform_indices = @transform_1, window_bounds = array<i64: 144, 512>}, {transform_indices = @transform_2, window_bounds = array<i64: 32, 512>}, {transform_indices = @transform_3, window_bounds = array<i64: 1, 32, 1>}, {transform_indices = @transform_4, window_bounds = array<i64: 1, 32, 1>}]} {
    %c0 = arith.constant 0 : index
    %c0_0 = arith.constant 0 : index
    %0 = vector.load %arg1[%c0, %c0_0] : memref<32x144xbf16, #tpu.memory_space<vmem>>, vector<32x144xbf16>
    %c0_1 = arith.constant 0 : index
    %c0_2 = arith.constant 0 : index
    %1 = vector.load %arg2[%c0_1, %c0_2] : memref<144x512xbf16, #tpu.memory_space<vmem>>, vector<144x512xbf16>
    %cst = arith.constant dense<0.000000e+00> : vector<32x512xf32>
    %2 = tpu.matmul %0, %1, %cst {dimension_numbers = #tpu.dot_dimension_numbers<[1], [0], [0], [1], [0, 0, 1, 1], [], []>} : vector<32x144xbf16>, vector<144x512xbf16>, vector<32x512xf32> -> vector<32x512xf32>
    %c0_3 = arith.constant 0 : index
    %c0_4 = arith.constant 0 : index
    %3 = vector.load %arg3[%c0_3, %c0_4] : memref<32x512xf32, #tpu.memory_space<vmem>>, vector<32x512xf32>
    tpu.vector_store %arg3[%c0_3, %c0_4], %2 {strides = array<i32>} : memref<32x512xf32, #tpu.memory_space<vmem>>, vector<32x512xf32>,
    %cst_5 = arith.constant dense<0.000000e+00> : vector<32xf32>
    %4 = vector.multi_reduction <add>, %2, %cst_5 [1] : vector<32x512xf32> to vector<32xf32>
    %5 = vector.shape_cast %4 : vector<32xf32> to vector<32x1xf32>
    %c0_6 = arith.constant 0 : index
    %c0_7 = arith.constant 0 : index
    %c0_8 = arith.constant 0 : index
    %6 = vector.load %arg4[%c0_6, %c0_7, %c0_8] : memref<1x32x1xf32, #tpu.memory_space<vmem>>, vector<1x32x1xf32>
    %7 = vector.shape_cast %6 : vector<1x32x1xf32> to vector<32x1xf32>
    %8 = vector.shape_cast %5 : vector<32x1xf32> to vector<1x32x1xf32>
    tpu.vector_store %arg4[%c0_6, %c0_7, %c0_8], %8 {strides = array<i32>} : memref<1x32x1xf32, #tpu.memory_space<vmem>>, vector<1x32x1xf32>,
    %9 = arith.mulf %2, %2 : vector<32x512xf32>
    %cst_9 = arith.constant dense<0.000000e+00> : vector<32xf32>
    %10 = vector.multi_reduction <add>, %9, %cst_9 [1] : vector<32x512xf32> to vector<32xf32>
    %11 = vector.shape_cast %10 : vector<32xf32> to vector<32x1xf32>
    %c0_10 = arith.constant 0 : index
    %c0_11 = arith.constant 0 : index
    %c0_12 = arith.constant 0 : index
    %12 = vector.load %arg5[%c0_10, %c0_11, %c0_12] : memref<1x32x1xf32, #tpu.memory_space<vmem>>, vector<1x32x1xf32>
    %13 = vector.shape_cast %12 : vector<1x32x1xf32> to vector<32x1xf32>
    %14 = vector.shape_cast %11 : vector<32x1xf32> to vector<1x32x1xf32>
    tpu.vector_store %arg5[%c0_10, %c0_11, %c0_12], %14 {strides = array<i32>} : memref<1x32x1xf32, #tpu.memory_space<vmem>>, vector<1x32x1xf32>,
    return
  }
  func.func @transform_0(%arg0: i32) -> (i32, i32) {
    %c0_i32 = arith.constant 0 : i32
    %c0_i32_0 = arith.constant 0 : i32
    %c0_i32_1 = arith.constant 0 : i32
    return %c0_i32, %c0_i32_0 : i32, i32
  }
  func.func @transform_1(%arg0: i32) -> (i32, i32) {
    %c0_i32 = arith.constant 0 : i32
    %c0_i32_0 = arith.constant 0 : i32
    return %c0_i32, %arg0 : i32, i32
  }
  func.func @transform_2(%arg0: i32) -> (i32, i32) {
    %c0_i32 = arith.constant 0 : i32
    %c0_i32_0 = arith.constant 0 : i32
    return %c0_i32, %arg0 : i32, i32
  }
  func.func @transform_3(%arg0: i32) -> (i32, i32, i32) {
    %c0_i32 = arith.constant 0 : i32
    %c0_i32_0 = arith.constant 0 : i32
    %c0_i32_1 = arith.constant 0 : i32
    return %arg0, %c0_i32, %c0_i32_0 : i32, i32, i32
  }
  func.func @transform_4(%arg0: i32) -> (i32, i32, i32) {
    %c0_i32 = arith.constant 0 : i32
    %c0_i32_0 = arith.constant 0 : i32
    %c0_i32_1 = arith.constant 0 : i32
    return %arg0, %c0_i32, %c0_i32_0 : i32, i32, i32
  }
}

module attributes {stable_mosaic.version = 11 : i64} {
  func.func @bn_lrelu_kernel(%arg0: i32, %arg1: memref<32x1xf32, #tpu.memory_space<vmem>>, %arg2: memref<32x1xf32, #tpu.memory_space<vmem>>, %arg3: memref<32x512xf32, #tpu.memory_space<vmem>>, %arg4: memref<32x512xbf16, #tpu.memory_space<vmem>>) attributes {dimension_semantics = [#tpu.dimension_semantics<parallel>], iteration_bounds = array<i64: 1>, scalar_prefetch = 0 : i64, scratch_operands = 0 : i64, tpu.core_type = #tpu.core_type<tc>, window_params = [{pipeline_mode = #tpu.pipeline_mode<synchronous>, transform_indices = @transform_0, window_bounds = array<i64: 32, 1>}, {pipeline_mode = #tpu.pipeline_mode<synchronous>, transform_indices = @transform_1, window_bounds = array<i64: 32, 1>}, {transform_indices = @transform_2, window_bounds = array<i64: 32, 512>}, {transform_indices = @transform_3, window_bounds = array<i64: 32, 512>}]} {
    %c0 = arith.constant 0 : index
    %c0_0 = arith.constant 0 : index
    %0 = vector.load %arg3[%c0, %c0_0] : memref<32x512xf32, #tpu.memory_space<vmem>>, vector<32x512xf32>
    %c0_1 = arith.constant 0 : index
    %c0_2 = arith.constant 0 : index
    %1 = vector.load %arg1[%c0_1, %c0_2] : memref<32x1xf32, #tpu.memory_space<vmem>>, vector<32x1xf32>
    %2 = vector.broadcast %1 : vector<32x1xf32> to vector<32x512xf32>
    %3 = arith.mulf %0, %2 : vector<32x512xf32>
    %c0_3 = arith.constant 0 : index
    %c0_4 = arith.constant 0 : index
    %4 = vector.load %arg2[%c0_3, %c0_4] : memref<32x1xf32, #tpu.memory_space<vmem>>, vector<32x1xf32>
    %5 = vector.broadcast %4 : vector<32x1xf32> to vector<32x512xf32>
    %6 = arith.addf %3, %5 : vector<32x512xf32>
    %cst = arith.constant 0.000000e+00 : f32
    %7 = vector.broadcast %cst : f32 to vector<32x512xf32>
    %8 = arith.cmpf oge, %6, %7 : vector<32x512xf32>
    %cst_5 = arith.constant 2.000000e-01 : f32
    %9 = vector.broadcast %cst_5 : f32 to vector<32x512xf32>
    %10 = arith.mulf %9, %6 : vector<32x512xf32>
    %11 = arith.select %8, %6, %10 : vector<32x512xi1>, vector<32x512xf32>
    %12 = arith.truncf %11 : vector<32x512xf32> to vector<32x512xbf16>
    %c0_6 = arith.constant 0 : index
    %c0_7 = arith.constant 0 : index
    %13 = vector.load %arg4[%c0_6, %c0_7] : memref<32x512xbf16, #tpu.memory_space<vmem>>, vector<32x512xbf16>
    tpu.vector_store %arg4[%c0_6, %c0_7], %12 {strides = array<i32>} : memref<32x512xbf16, #tpu.memory_space<vmem>>, vector<32x512xbf16>,
    return
  }
  func.func @transform_0(%arg0: i32) -> (i32, i32) {
    %c0_i32 = arith.constant 0 : i32
    %c0_i32_0 = arith.constant 0 : i32
    %c0_i32_1 = arith.constant 0 : i32
    return %c0_i32, %c0_i32_0 : i32, i32
  }
  func.func @transform_1(%arg0: i32) -> (i32, i32) {
    %c0_i32 = arith.constant 0 : i32
    %c0_i32_0 = arith.constant 0 : i32
    %c0_i32_1 = arith.constant 0 : i32
    return %c0_i32, %c0_i32_0 : i32, i32
  }
  func.func @transform_2(%arg0: i32) -> (i32, i32) {
    %c0_i32 = arith.constant 0 : i32
    %c0_i32_0 = arith.constant 0 : i32
    return %c0_i32, %arg0 : i32, i32
  }
  func.func @transform_3(%arg0: i32) -> (i32, i32) {
    %c0_i32 = arith.constant 0 : i32
    %c0_i32_0 = arith.constant 0 : i32
    return %c0_i32, %arg0 : i32, i32
  }
}

module attributes {stable_mosaic.version = 11 : i64} {
  func.func @conv_tanh_kernel(%arg0: i32, %arg1: memref<8x200xbf16, #tpu.memory_space<vmem>>, %arg2: memref<200x512xbf16, #tpu.memory_space<vmem>>, %arg3: memref<8x512xf32, #tpu.memory_space<vmem>>) attributes {dimension_semantics = [#tpu.dimension_semantics<parallel>], iteration_bounds = array<i64: 4>, scalar_prefetch = 0 : i64, scratch_operands = 0 : i64, tpu.core_type = #tpu.core_type<tc>, window_params = [{pipeline_mode = #tpu.pipeline_mode<synchronous>, transform_indices = @transform_0, window_bounds = array<i64: 8, 200>}, {transform_indices = @transform_1, window_bounds = array<i64: 200, 512>}, {transform_indices = @transform_2, window_bounds = array<i64: 8, 512>}]} {
    %c0 = arith.constant 0 : index
    %c0_0 = arith.constant 0 : index
    %0 = vector.load %arg1[%c0, %c0_0] : memref<8x200xbf16, #tpu.memory_space<vmem>>, vector<8x200xbf16>
    %c0_1 = arith.constant 0 : index
    %c0_2 = arith.constant 0 : index
    %1 = vector.load %arg2[%c0_1, %c0_2] : memref<200x512xbf16, #tpu.memory_space<vmem>>, vector<200x512xbf16>
    %cst = arith.constant dense<0.000000e+00> : vector<8x512xf32>
    %2 = tpu.matmul %0, %1, %cst {dimension_numbers = #tpu.dot_dimension_numbers<[1], [0], [0], [1], [0, 0, 1, 1], [], []>} : vector<8x200xbf16>, vector<200x512xbf16>, vector<8x512xf32> -> vector<8x512xf32>
    %3 = math.tanh %2 : vector<8x512xf32>
    %c0_3 = arith.constant 0 : index
    %c0_4 = arith.constant 0 : index
    %4 = vector.load %arg3[%c0_3, %c0_4] : memref<8x512xf32, #tpu.memory_space<vmem>>, vector<8x512xf32>
    tpu.vector_store %arg3[%c0_3, %c0_4], %3 {strides = array<i32>} : memref<8x512xf32, #tpu.memory_space<vmem>>, vector<8x512xf32>,
    return
  }
  func.func @transform_0(%arg0: i32) -> (i32, i32) {
    %c0_i32 = arith.constant 0 : i32
    %c0_i32_0 = arith.constant 0 : i32
    %c0_i32_1 = arith.constant 0 : i32
    return %c0_i32, %c0_i32_0 : i32, i32
  }
  func.func @transform_1(%arg0: i32) -> (i32, i32) {
    %c0_i32 = arith.constant 0 : i32
    %c0_i32_0 = arith.constant 0 : i32
    return %c0_i32, %arg0 : i32, i32
  }
  func.func @transform_2(%arg0: i32) -> (i32, i32) {
    %c0_i32 = arith.constant 0 : i32
    %c0_i32_0 = arith.constant 0 : i32
    return %c0_i32, %arg0 : i32, i32
  }
}

</mosaic_0001>

<bundles_post_ra>
// kernel: generator_forward.6
= control target key start
LH: loop header
LB: loop body
LE: loop exit
PB: predicated region body
PF: predicated region fallthrough
CT: control target
= control target key end

     0   :  { %v3920_v0 = vmov 0   ;;  %vm1909_vm0 = vcmask 523264   ;;  %vm3095_vm1 = vcmask 11264   ;;  %s6251_s2 = inlined_call_operand.vmem [shape: f32[1568,1], index: 2, kind: input, shape index: {}]   ;;  %s6252_s1 = inlined_call_operand.vmem [shape: bf16[64,2], index: 1, kind: input, shape index: {}]   ;;  %s6253_s0 = inlined_call_operand.vmem [shape: bf16[1568,64], index: 0, kind: input, shape index: {}]   ;;  %s6254_s3 = inlined_call_operand.vmem [shape: bf16[1568,2], index: 3, kind: output, shape index: {}]  }
   0x1   :  { %3919 = vset.pattern.permute.xlu2 %v3920_v0  ;;  %3918 = vset.pattern.permute.xlu1 %v3920_v0  ;;  %v223_v1 = vld [vmem:[%s6251_s2 + $0x20] sm:$0xff]  ;;  %v221_v2 = vld [vmem:[%s6251_s2 + $0x10] sm:$0xff]  ;;  %v3903_v4 = vld [vmem:[%s6252_s1 + $0x18] sm:$0xff] }
   0x2   :  { %v219_v3 = vld [vmem:[%s6251_s2] sm:$0xff]  ;;  %3917 = vset.pattern.permute.xlu0 %v3920_v0  ;;  %437 = vperm.xlu2 %3919, %v223_v1   ;;  %v3902_v5 = vld [vmem:[%s6252_s1 + $0x10] sm:$0xff]  ;;  %v224_v6 = vld [vmem:[%s6251_s2 + $0x28] sm:$0xff] }
   0x3   :  { %427 = vperm.xlu1 %3918, %v221_v2   ;;  %417 = vperm.xlu0 %3917, %v219_v3   ;;  %v222_v7 = vld [vmem:[%s6251_s2 + $0x18] sm:$0xff]  ;;  %v220_v8 = vld [vmem:[%s6251_s2 + $0x8] sm:$0xff]  ;;  %v3900_v10 = vld [vmem:[%s6252_s1] sm:$0xff] }
   0x4   :  { %2208 = vmatpush.bf16.msra.mxu0 %v3903_v4  ;;  %3904 = vmatpush.bf16.msra.mxu1 %v3903_v4  ;;  %v3901_v9 = vld [vmem:[%s6252_s1 + $0x8] sm:$0xff]  ;;  %v227_v11 = vld [vmem:[%s6251_s2 + $0x40] sm:$0xff]  ;;  %v226_v12 = vld [vmem:[%s6251_s2 + $0x38] sm:$0xff] }
   0x5   :  { %3905 = vmatpush.bf16.msra.mxu2 %v3903_v4  ;;  %3906 = vmatpush.bf16.msra.mxu3 %v3903_v4  ;;  %v225_v13 = vld [vmem:[%s6251_s2 + $0x30] sm:$0xff]  ;;  %v3802_v14 = vld [vmem:[%s6253_s0] sm:$0xff]  ;;  %v3851_v16 = vld [vmem:[%s6253_s0 + $0x188] sm:$0xff] }
   0x6   :  { %v3826_v15 = vld [vmem:[%s6253_s0 + $0xc0] sm:$0xff]  ;;  %v230_v17 = vld [vmem:[%s6251_s2 + $0x58] sm:$0xff]  ;;  %v229_v18 = vld [vmem:[%s6251_s2 + $0x50] sm:$0xff] }
   0x7   :  { %v228_v19 = vld [vmem:[%s6251_s2 + $0x48] sm:$0xff]  ;;  %v233_v20 = vld [vmem:[%s6251_s2 + $0x70] sm:$0xff]  ;;  %v231_v22 = vld [vmem:[%s6251_s2 + $0x60] sm:$0xff] }
   0x8   :  { %2209 = vmatpush.bf16.msra.mxu0 %v3902_v5  ;;  %3907 = vmatpush.bf16.msra.mxu1 %v3902_v5  ;;  %v232_v21 = vld [vmem:[%s6251_s2 + $0x68] sm:$0xff]  ;;  %v3852_v25 = vld [vmem:[%s6253_s0 + $0x190] sm:$0xff]  ;;  %v235_v27 = vld [vmem:[%s6251_s2 + $0x80] sm:$0xff] }
   0x9   :  { %3908 = vmatpush.bf16.msra.mxu2 %v3902_v5  ;;  %3909 = vmatpush.bf16.msra.mxu3 %v3902_v5  ;;  %v3803_v23 = vld [vmem:[%s6253_s0 + $0x8] sm:$0xff]  ;;  %v234_v28 = vld [vmem:[%s6251_s2 + $0x78] sm:$0xff]  ;;  %v239_v29 = vld [vmem:[%s6251_s2 + $0xa0] sm:$0xff] }
   0xa   :  { %442 = vperm.xlu2 %3919, %v224_v6   ;;  %v3827_v24 = vld [vmem:[%s6253_s0 + $0xc8] sm:$0xff]  ;;  %v238_v30 = vld [vmem:[%s6251_s2 + $0x98] sm:$0xff]  ;;  %v237_v31 = vld [vmem:[%s6251_s2 + $0x90] sm:$0xff] }
   0xb   :  { %432 = vperm.xlu1 %3918, %v222_v7   ;;  %422 = vperm.xlu0 %3917, %v220_v8   ;;  %v236_v26 = vld [vmem:[%s6251_s2 + $0x88] sm:$0xff]  ;;  %v3804_v32 = vld [vmem:[%s6253_s0 + $0x10] sm:$0xff]  ;;  %v3853_v34 = vld [vmem:[%s6253_s0 + $0x198] sm:$0xff] }
   0xc   :  { %2210 = vmatpush.bf16.msra.mxu0 %v3901_v9  ;;  %3910 = vmatpush.bf16.msra.mxu1 %v3901_v9  ;;  %v3828_v33 = vld [vmem:[%s6253_s0 + $0xd0] sm:$0xff]  ;;  %v242_v35 = vld [vmem:[%s6251_s2 + $0xb8] sm:$0xff]  ;;  %v240_v37 = vld [vmem:[%s6251_s2 + $0xa8] sm:$0xff] }
   0xd   :  { %3911 = vmatpush.bf16.msra.mxu2 %v3901_v9  ;;  %3912 = vmatpush.bf16.msra.mxu3 %v3901_v9  ;;  %v241_v36 = vld [vmem:[%s6251_s2 + $0xb0] sm:$0xff]  ;;  %v244_v39 = vld [vmem:[%s6251_s2 + $0xc8] sm:$0xff]  ;;  %v243_v40 = vld [vmem:[%s6251_s2 + $0xc0] sm:$0xff] }
   0xe   :  { %v245_v38 = vld [vmem:[%s6251_s2 + $0xd0] sm:$0xff]  ;;  %v3805_v41 = vld [vmem:[%s6253_s0 + $0x18] sm:$0xff]  ;;  %v3854_v43 = vld [vmem:[%s6253_s0 + $0x1a0] sm:$0xff] }
   0xf   :  { %v3829_v42 = vld [vmem:[%s6253_s0 + $0xd8] sm:$0xff]  ;;  %v3876_v44 = vld [vmem:[%s6253_s0 + $0x250] sm:$0xff]  ;;  %v248_v45 = vld [vmem:[%s6251_s2 + $0xe8] sm:$0xff] }
  0x10   :  { %2211 = vmatpush.bf16.msra.mxu0 %v3900_v10  ;;  %3913 = vmatpush.bf16.msra.mxu1 %v3900_v10  ;;  %v247_v46 = vld [vmem:[%s6251_s2 + $0xe0] sm:$0xff]  ;;  %v246_v47 = vld [vmem:[%s6251_s2 + $0xd8] sm:$0xff]  ;;  %v249_v50 = vld [vmem:[%s6251_s2 + $0xf0] sm:$0xff] }
  0x11   :  { %3914 = vmatpush.bf16.msra.mxu2 %v3900_v10  ;;  %3915 = vmatpush.bf16.msra.mxu3 %v3900_v10  ;;  %v251_v48 = vld [vmem:[%s6251_s2 + $0x100] sm:$0xff]  ;;  %v250_v49 = vld [vmem:[%s6251_s2 + $0xf8] sm:$0xff]  ;;  %v3855_v53 = vld [vmem:[%s6253_s0 + $0x1a8] sm:$0xff] }
  0x12   :  { %457 = vperm.xlu2 %3919, %v227_v11   ;;  %v3806_v51 = vld [vmem:[%s6253_s0 + $0x20] sm:$0xff]  ;;  %v3877_v54 = vld [vmem:[%s6253_s0 + $0x258] sm:$0xff]  ;;  %v253_v56 = vld [vmem:[%s6251_s2 + $0x110] sm:$0xff] }
  0x13   :  { %452 = vperm.xlu1 %3918, %v226_v12   ;;  %447 = vperm.xlu0 %3917, %v225_v13   ;;  %v3830_v52 = vld [vmem:[%s6253_s0 + $0xe0] sm:$0xff]  ;;  %v254_v55 = vld [vmem:[%s6251_s2 + $0x118] sm:$0xff]  ;;  %v252_v57 = vld [vmem:[%s6251_s2 + $0x108] sm:$0xff] }
  0x14   :  { %3704 = vmatmul.msk.bf16.vlgmr.msra.gmra.mxu0 %vm1909_vm0, %v3802_v14  ;;  %3728 = vmatmul.msk.bf16.vlgmr.msra.gmra.mxu1 %vm1909_vm0, %v3826_v15  ;;  %v257_v59 = vld [vmem:[%s6251_s2 + $0x130] sm:$0xff]  ;;  %v256_v60 = vld [vmem:[%s6251_s2 + $0x128] sm:$0xff]  ;;  %v255_v61 = vld [vmem:[%s6251_s2 + $0x120] sm:$0xff] }
  0x15   :  { %3753 = vmatmul.msk.bf16.vlgmr.msra.gmra.mxu2 %vm1909_vm0, %v3851_v16  ;;  %3778 = vmatmul.msk.bf16.vlgmr.msra.gmra.mxu3 %vm1909_vm0, %v3876_v44  ;;  %v3807_v62 = vld [vmem:[%s6253_s0 + $0x28] sm:$0xff]  ;;  %v3856_v0 = vld [vmem:[%s6253_s0 + $0x1b0] sm:$0xff]  ;;  %v3878_v2 = vld [vmem:[%s6253_s0 + $0x260] sm:$0xff] }
  0x16   :  { %v3831_v63 = vld [vmem:[%s6253_s0 + $0xe8] sm:$0xff]  ;;  %v259_v4 = vld [vmem:[%s6251_s2 + $0x140] sm:$0xff]  ;;  %v258_v5 = vld [vmem:[%s6251_s2 + $0x138] sm:$0xff] }
  0x17   :  { %v260_v3 = vld [vmem:[%s6251_s2 + $0x148] sm:$0xff]  ;;  %v263_v7 = vld [vmem:[%s6251_s2 + $0x160] sm:$0xff]  ;;  %v262_v8 = vld [vmem:[%s6251_s2 + $0x158] sm:$0xff] }
  0x18   :  { %v261_v9 = vld [vmem:[%s6251_s2 + $0x150] sm:$0xff]  ;;  %v3857_v12 = vld [vmem:[%s6253_s0 + $0x1b8] sm:$0xff] }
  0x19   :  { %v3808_v10 = vld [vmem:[%s6253_s0 + $0x30] sm:$0xff]  ;;  %v266_v16 = vld [vmem:[%s6251_s2 + $0x178] sm:$0xff] }
  0x1a   :  { %472 = vperm.xlu2 %3919, %v230_v17   ;;  %v3832_v11 = vld [vmem:[%s6253_s0 + $0xf0] sm:$0xff] }
  0x1b   :  { %467 = vperm.xlu1 %3918, %v229_v18   ;;  %462 = vperm.xlu0 %3917, %v228_v19   ;;  %v265_v17 = vld [vmem:[%s6251_s2 + $0x170] sm:$0xff]  ;;  %v264_v18 = vld [vmem:[%s6251_s2 + $0x168] sm:$0xff] }
  0x1c   :  { %v3879_v19 = vld [vmem:[%s6253_s0 + $0x268] sm:$0xff] }
  0x22   :  { %487 = vperm.xlu2 %3919, %v233_v20  }
  0x23   :  { %482 = vperm.xlu1 %3918, %v232_v21   ;;  %477 = vperm.xlu0 %3917, %v231_v22  }
  0x24   :  { %3705 = vmatmul.msk.bf16.gmra.mxu0 %vm1909_vm0, %v3803_v23  ;;  %3729 = vmatmul.msk.bf16.gmra.mxu1 %vm1909_vm0, %v3827_v24  ;;  %v269_v23 = vld [vmem:[%s6251_s2 + $0x190] sm:$0xff]  ;;  %v268_v24 = vld [vmem:[%s6251_s2 + $0x188] sm:$0xff] }
  0x25   :  { %3754 = vmatmul.msk.bf16.gmra.mxu2 %vm1909_vm0, %v3852_v25  ;;  %3779 = vmatmul.msk.bf16.gmra.mxu3 %vm1909_vm0, %v3877_v54  ;;  %v267_v25 = vld [vmem:[%s6251_s2 + $0x180] sm:$0xff] }
  0x2a   :  { %502 = vperm.xlu2 %3919, %v236_v26   ;;  %v3809_v26 = vld [vmem:[%s6253_s0 + $0x38] sm:$0xff] }
  0x2b   :  { %497 = vperm.xlu1 %3918, %v235_v27   ;;  %492 = vperm.xlu0 %3917, %v234_v28   ;;  %v3833_v27 = vld [vmem:[%s6253_s0 + $0xf8] sm:$0xff]  ;;  %v3858_v28 = vld [vmem:[%s6253_s0 + $0x1c0] sm:$0xff] }
  0x32   :  { %517 = vperm.xlu2 %3919, %v239_v29  }
  0x33   :  { %512 = vperm.xlu1 %3918, %v238_v30   ;;  %507 = vperm.xlu0 %3917, %v237_v31  }
  0x34   :  { %3706 = vmatmul.msk.bf16.gmra.mxu0 %vm1909_vm0, %v3804_v32  ;;  %3730 = vmatmul.msk.bf16.gmra.mxu1 %vm1909_vm0, %v3828_v33  ;;  %v272_v32 = vld [vmem:[%s6251_s2 + $0x1a8] sm:$0xff]  ;;  %v271_v33 = vld [vmem:[%s6251_s2 + $0x1a0] sm:$0xff] }
  0x35   :  { %3755 = vmatmul.msk.bf16.gmra.mxu2 %vm1909_vm0, %v3853_v34  ;;  %3780 = vmatmul.msk.bf16.gmra.mxu3 %vm1909_vm0, %v3878_v2  ;;  %v270_v34 = vld [vmem:[%s6251_s2 + $0x198] sm:$0xff] }
  0x3a   :  { %532 = vperm.xlu2 %3919, %v242_v35   ;;  %v3880_v35 = vld [vmem:[%s6253_s0 + $0x270] sm:$0xff] }
  0x3b   :  { %527 = vperm.xlu1 %3918, %v241_v36   ;;  %522 = vperm.xlu0 %3917, %v240_v37  }
  0x42   :  { %547 = vperm.xlu2 %3919, %v245_v38  }
  0x43   :  { %542 = vperm.xlu1 %3918, %v244_v39   ;;  %537 = vperm.xlu0 %3917, %v243_v40   ;;  %v275_v39 = vld [vmem:[%s6251_s2 + $0x1c0] sm:$0xff] }
  0x44   :  { %3707 = vmatmul.msk.bf16.gmra.mxu0 %vm1909_vm0, %v3805_v41  ;;  %3731 = vmatmul.msk.bf16.gmra.mxu1 %vm1909_vm0, %v3829_v42  ;;  %v3810_v40 = vld [vmem:[%s6253_s0 + $0x40] sm:$0xff]  ;;  %v274_v41 = vld [vmem:[%s6251_s2 + $0x1b8] sm:$0xff]  ;;  %v273_v42 = vld [vmem:[%s6251_s2 + $0x1b0] sm:$0xff] }
  0x45   :  { %3756 = vmatmul.msk.bf16.gmra.mxu2 %vm1909_vm0, %v3854_v43  ;;  %3781 = vmatmul.msk.bf16.gmra.mxu3 %vm1909_vm0, %v3879_v19  ;;  %v3834_v43 = vld [vmem:[%s6253_s0 + $0x100] sm:$0xff] }
  0x4a   :  { %562 = vperm.xlu2 %3919, %v248_v45  }
  0x4b   :  { %557 = vperm.xlu1 %3918, %v247_v46   ;;  %552 = vperm.xlu0 %3917, %v246_v47   ;;  %v3859_v46 = vld [vmem:[%s6253_s0 + $0x1c8] sm:$0xff] }
  0x52   :  { %577 = vperm.xlu2 %3919, %v251_v48  }
  0x53   :  { %572 = vperm.xlu1 %3918, %v250_v49   ;;  %567 = vperm.xlu0 %3917, %v249_v50  }
  0x54   :  { %3708 = vmatmul.msk.bf16.gmra.mxu0 %vm1909_vm0, %v3806_v51  ;;  %3732 = vmatmul.msk.bf16.gmra.mxu1 %vm1909_vm0, %v3830_v52 }
  0x55   :  { %3757 = vmatmul.msk.bf16.gmra.mxu2 %vm1909_vm0, %v3855_v53  ;;  %3782 = vmatmul.msk.bf16.gmra.mxu3 %vm1909_vm0, %v3880_v35  ;;  %v278_v53 = vld [vmem:[%s6251_s2 + $0x1d8] sm:$0xff] }
  0x5a   :  { %592 = vperm.xlu2 %3919, %v254_v55   ;;  %v277_v55 = vld [vmem:[%s6251_s2 + $0x1d0] sm:$0xff] }
  0x5b   :  { %587 = vperm.xlu1 %3918, %v253_v56   ;;  %582 = vperm.xlu0 %3917, %v252_v57   ;;  %v276_v56 = vld [vmem:[%s6251_s2 + $0x1c8] sm:$0xff] }
  0x5c   :  { %v4129_v58 = vpop.permute.xlu2 %437 }
  0x62   :  { %607 = vperm.xlu2 %3919, %v257_v59  }
  0x63   :  { %602 = vperm.xlu1 %3918, %v256_v60   ;;  %597 = vperm.xlu0 %3917, %v255_v61   ;;  %v3881_v61 = vld [vmem:[%s6253_s0 + $0x278] sm:$0xff] }
  0x64   :  { %3709 = vmatmul.msk.bf16.gmra.mxu0 %vm1909_vm0, %v3807_v62  ;;  %3733 = vmatmul.msk.bf16.gmra.mxu1 %vm1909_vm0, %v3831_v63  ;;  %v4151_v1 = vpop.permute.xlu2 %442 }
  0x65   :  { %3758 = vmatmul.msk.bf16.gmra.mxu2 %vm1909_vm0, %v3856_v0  ;;  %3783 = vmatmul.msk.bf16.gmra.mxu3 %vm1909_vm0, %v3881_v61 }
  0x6a   :  { %622 = vperm.xlu2 %3919, %v260_v3  }
  0x6b   :  { %617 = vperm.xlu1 %3918, %v259_v4   ;;  %612 = vperm.xlu0 %3917, %v258_v5   ;;  %v281_v4 = vld [vmem:[%s6251_s2 + $0x1f0] sm:$0xff]  ;;  %v3811_v5 = vld [vmem:[%s6253_s0 + $0x48] sm:$0xff] }
  0x6c   :  { %v4167_v6 = vpop.permute.xlu2 %457 }
  0x72   :  { %637 = vperm.xlu2 %3919, %v263_v7  }
  0x73   :  { %632 = vperm.xlu1 %3918, %v262_v8   ;;  %627 = vperm.xlu0 %3917, %v261_v9   ;;  %v280_v8 = vld [vmem:[%s6251_s2 + $0x1e8] sm:$0xff]  ;;  %v279_v9 = vld [vmem:[%s6251_s2 + $0x1e0] sm:$0xff] }
  0x74   :  { %3710 = vmatmul.msk.bf16.gmra.mxu0 %vm1909_vm0, %v3808_v10  ;;  %3734 = vmatmul.msk.bf16.gmra.mxu1 %vm1909_vm0, %v3832_v11  ;;  %v4189_v13 = vpop.permute.xlu2 %472  ;;  %v3835_v10 = vld [vmem:[%s6253_s0 + $0x108] sm:$0xff] }
  0x75   :  { %3759 = vmatmul.msk.bf16.gmra.mxu2 %vm1909_vm0, %v3857_v12  ;;  %v4192_v14 = vpop.permute.xlu1 %427  ;;  %v418_v15 = vpop.permute.xlu0 %417 }
  0x7a   :  { %652 = vperm.xlu2 %3919, %v266_v16  }
  0x7b   :  { %647 = vperm.xlu1 %3918, %v265_v17   ;;  %642 = vperm.xlu0 %3917, %v264_v18  }
  0x7c   :  { %v4206_v20 = vpop.permute.xlu2 %487 }
  0x7d   :  { %v4209_v21 = vpop.permute.xlu1 %432  ;;  %v423_v22 = vpop.permute.xlu0 %422 }
  0x82   :  { %667 = vperm.xlu2 %3919, %v269_v23  }
  0x83   :  { %662 = vperm.xlu1 %3918, %v268_v24   ;;  %657 = vperm.xlu0 %3917, %v267_v25   ;;  %v283_v25 = vld [vmem:[%s6251_s2 + $0x200] sm:$0xff] }
  0x84   :  { %3711 = vmatmul.msk.bf16.gmra.mxu0 %vm1909_vm0, %v3809_v26  ;;  %3735 = vmatmul.msk.bf16.gmra.mxu1 %vm1909_vm0, %v3833_v27  ;;  %v4231_v29 = vpop.permute.xlu2 %502  ;;  %v282_v26 = vld [vmem:[%s6251_s2 + $0x1f8] sm:$0xff] }
  0x85   :  { %3760 = vmatmul.msk.bf16.gmra.mxu2 %vm1909_vm0, %v3858_v28  ;;  %v4234_v30 = vpop.permute.xlu1 %452  ;;  %v4236_v31 = vpop.permute.xlu0 %447 }
  0x8a   :  { %682 = vperm.xlu2 %3919, %v272_v32  }
  0x8b   :  { %677 = vperm.xlu1 %3918, %v271_v33   ;;  %672 = vperm.xlu0 %3917, %v270_v34   ;;  %v3882_v33 = vld [vmem:[%s6253_s0 + $0x280] sm:$0xff] }
  0x8c   :  { %v4250_v36 = vpop.permute.xlu2 %517  ;;  %3784 = vmatmul.msk.bf16.gmra.mxu3 %vm1909_vm0, %v3882_v33  ;;  %v3837_v33 = vld [vmem:[%s6253_s0 + $0x118] sm:$0xff] }
  0x8d   :  { %v4253_v37 = vpop.permute.xlu1 %467  ;;  %v4255_v38 = vpop.permute.xlu0 %462 }
  0x91   :  { %v2213_v44 = vpop.f32.mrf.mxu0  ;;  %v4272_v45 = vpop.f32.mrf.mxu1 }
  0x92   :  { %v2214_v47 = vadd.f32 %v2213_v44, %v418_v15  ;;  %697 = vperm.xlu2 %3919, %v275_v39   ;;  %v3860_v15 = vld [vmem:[%s6253_s0 + $0x1d0] sm:$0xff]  ;;  %v286_v44 = vld [vmem:[%s6251_s2 + $0x218] sm:$0xff] }
  0x93   :  { %692 = vperm.xlu1 %3918, %v274_v41   ;;  %687 = vperm.xlu0 %3917, %v273_v42   ;;  %v3812_v42 = vld [vmem:[%s6253_s0 + $0x50] sm:$0xff] }
  0x94   :  { %v2703_v48 = vmax.f32 %v2214_v47, 0.0  ;;  %3712 = vmatmul.msk.bf16.gmra.mxu0 %vm1909_vm0, %v3810_v40  ;;  %3736 = vmatmul.msk.bf16.gmra.mxu1 %vm1909_vm0, %v3834_v43  ;;  %v4279_v49 = vpop.permute.xlu2 %532  ;;  %v3836_v47 = vld [vmem:[%s6253_s0 + $0x110] sm:$0xff] }
  0x95   :  { %3761 = vmatmul.msk.bf16.gmra.mxu2 %vm1909_vm0, %v3859_v46  ;;  %v4282_v50 = vpop.permute.xlu1 %482  ;;  %v4284_v51 = vpop.permute.xlu0 %477  ;;  %v285_v46 = vld [vmem:[%s6251_s2 + $0x210] sm:$0xff] }
  0x96   :  { %v2899_v52 = vpack.c.bf16 %v2703_v48, %v2703_v48 }
  0x98   :  { %3096 = vst.msk [vmem:[%s6254_s3] sm:$0xf] %vm3095_vm1, %v2899_v52  ;;  %v4293_v54 = vpop.f32.mrf.mxu2 }
  0x99   :  { %v2215_v57 = vpop.f32.mrf.mxu0  ;;  %v4301_v59 = vpop.f32.mrf.mxu1 }
  0x9a   :  { %v2216_v60 = vadd.f32 %v2215_v57, %v423_v22  ;;  %712 = vperm.xlu2 %3919, %v278_v53   ;;  %v3861_v53 = vld [vmem:[%s6253_s0 + $0x1d8] sm:$0xff] }
  0x9b   :  { %707 = vperm.xlu1 %3918, %v277_v55   ;;  %702 = vperm.xlu0 %3917, %v276_v56  }
  0x9c   :  { %v2704_v62 = vmax.f32 %v2216_v60, 0.0  ;;  %v4306_v63 = vpop.permute.xlu2 %547 }
  0x9d   :  { %v4309_v0 = vpop.permute.xlu1 %497  ;;  %v4311_v2 = vpop.permute.xlu0 %492 }
  0x9e   :  { %v2900_v3 = vpack.c.bf16 %v2704_v62, %v2704_v62 }
  0xa0   :  { %3097 = vst.msk [vmem:[%s6254_s3 + $0x4] sm:$0xf] %vm3095_vm1, %v2900_v3  ;;  %v4323_v7 = vpop.f32.mrf.mxu2 }
  0xa1   :  { %v2218_v11 = vpop.f32.mrf.mxu0  ;;  %v4334_v12 = vpop.f32.mrf.mxu1 }
  0xa2   :  { %v2219_v16 = vadd.f32 %v2218_v11, %v4192_v14  ;;  %727 = vperm.xlu2 %3919, %v281_v4   ;;  %v284_v14 = vld [vmem:[%s6251_s2 + $0x208] sm:$0xff]  ;;  %v289_v4 = vld [vmem:[%s6251_s2 + $0x230] sm:$0xff] }
  0xa3   :  { %722 = vperm.xlu1 %3918, %v280_v8   ;;  %717 = vperm.xlu0 %3917, %v279_v9   ;;  %v3883_v11 = vld [vmem:[%s6253_s0 + $0x288] sm:$0xff] }
  0xa4   :  { %v2705_v17 = vmax.f32 %v2219_v16, 0.0  ;;  %3713 = vmatmul.msk.bf16.gmra.mxu0 %vm1909_vm0, %v3811_v5  ;;  %3737 = vmatmul.msk.bf16.gmra.mxu1 %vm1909_vm0, %v3835_v10  ;;  %v4342_v18 = vpop.permute.xlu2 %562  ;;  %v288_v5 = vld [vmem:[%s6251_s2 + $0x228] sm:$0xff] }
  0xa5   :  { %3762 = vmatmul.msk.bf16.gmra.mxu2 %vm1909_vm0, %v3860_v15  ;;  %v4345_v19 = vpop.permute.xlu1 %512  ;;  %v4347_v22 = vpop.permute.xlu0 %507  ;;  %3785 = vmatmul.msk.bf16.gmra.mxu3 %vm1909_vm0, %v3883_v11 }
  0xa6   :  { %v2901_v23 = vpack.c.bf16 %v2705_v17, %v2705_v17 }
  0xa8   :  { %3098 = vst.msk [vmem:[%s6254_s3 + $0x8] sm:$0xf] %vm3095_vm1, %v2901_v23  ;;  %v4356_v24 = vpop.f32.mrf.mxu2 }
  0xa9   :  { %v2220_v27 = vpop.f32.mrf.mxu0  ;;  %v4364_v28 = vpop.f32.mrf.mxu1 }
  0xaa   :  { %v2221_v32 = vadd.f32 %v2220_v27, %v4209_v21  ;;  %742 = vperm.xlu2 %3919, %v284_v14   ;;  %v287_v21 = vld [vmem:[%s6251_s2 + $0x220] sm:$0xff]  ;;  %v292_v27 = vld [vmem:[%s6251_s2 + $0x248] sm:$0xff] }
  0xab   :  { %737 = vperm.xlu1 %3918, %v283_v25   ;;  %732 = vperm.xlu0 %3917, %v282_v26   ;;  %v3813_v25 = vld [vmem:[%s6253_s0 + $0x58] sm:$0xff] }
  0xac   :  { %v2706_v34 = vmax.f32 %v2221_v32, 0.0  ;;  %v4370_v35 = vpop.permute.xlu2 %577  ;;  %v291_v32 = vld [vmem:[%s6251_s2 + $0x240] sm:$0xff] }
  0xad   :  { %v4373_v39 = vpop.permute.xlu1 %527  ;;  %v4375_v40 = vpop.permute.xlu0 %522 }
  0xae   :  { %v2902_v41 = vpack.c.bf16 %v2706_v34, %v2706_v34 }
  0xb0   :  { %3099 = vst.msk [vmem:[%s6254_s3 + $0xc] sm:$0xf] %vm3095_vm1, %v2902_v41  ;;  %v4387_v43 = vpop.f32.mrf.mxu2 }
  0xb1   :  { %v2223_v48 = vpop.f32.mrf.mxu0  ;;  %v4398_v52 = vpop.f32.mrf.mxu1 }
  0xb2   :  { %v2224_v55 = vadd.f32 %v2223_v48, %v4129_v58  ;;  %757 = vperm.xlu2 %3919, %v287_v21   ;;  %v290_v58 = vld [vmem:[%s6251_s2 + $0x238] sm:$0xff]  ;;  %v3862_v21 = vld [vmem:[%s6253_s0 + $0x1e0] sm:$0xff] }
  0xb3   :  { %752 = vperm.xlu1 %3918, %v286_v44   ;;  %747 = vperm.xlu0 %3917, %v285_v46  }
  0xb4   :  { %v2707_v56 = vmax.f32 %v2224_v55, 0.0  ;;  %3714 = vmatmul.msk.bf16.gmra.mxu0 %vm1909_vm0, %v3812_v42  ;;  %3738 = vmatmul.msk.bf16.gmra.mxu1 %vm1909_vm0, %v3836_v47  ;;  %v4406_v57 = vpop.permute.xlu2 %592 }
  0xb5   :  { %3763 = vmatmul.msk.bf16.gmra.mxu2 %vm1909_vm0, %v3861_v53  ;;  %v4409_v60 = vpop.permute.xlu1 %542  ;;  %v4411_v61 = vpop.permute.xlu0 %537 }
  0xb6   :  { %v2903_v62 = vpack.c.bf16 %v2707_v56, %v2707_v56  ;;  %v295_v56 = vld [vmem:[%s6251_s2 + $0x260] sm:$0xff] }
  0xb8   :  { %3100 = vst.msk [vmem:[%s6254_s3 + $0x10] sm:$0xf] %vm3095_vm1, %v2903_v62  ;;  %v4420_v3 = vpop.f32.mrf.mxu2  ;;  %v294_v62 = vld [vmem:[%s6251_s2 + $0x258] sm:$0xff] }
  0xb9   :  { %v2225_v8 = vpop.f32.mrf.mxu0  ;;  %v4428_v9 = vpop.f32.mrf.mxu1 }
  0xba   :  { %v2226_v10 = vadd.f32 %v2225_v8, %v4151_v1  ;;  %772 = vperm.xlu2 %3919, %v290_v58   ;;  %v293_v1 = vld [vmem:[%s6251_s2 + $0x250] sm:$0xff] }
  0xbb   :  { %767 = vperm.xlu1 %3918, %v289_v4   ;;  %762 = vperm.xlu0 %3917, %v288_v5   ;;  %v3884_v8 = vld [vmem:[%s6253_s0 + $0x290] sm:$0xff] }
  0xbc   :  { %v2708_v15 = vmax.f32 %v2226_v10, 0.0  ;;  %v4434_v16 = vpop.permute.xlu2 %607  ;;  %3786 = vmatmul.msk.bf16.gmra.mxu3 %vm1909_vm0, %v3884_v8 }
  0xbd   :  { %6255 = vst [vmem:[#allocation2_spill] sm:$0xff] %v4434_v16  ;;  %v4437_v17 = vpop.permute.xlu1 %557  ;;  %v4439_v23 = vpop.permute.xlu0 %552 }
  0xbe   :  { %v2904_v14 = vpack.c.bf16 %v2708_v15, %v2708_v15 }
  0xc0   :  { %3101 = vst.msk [vmem:[%s6254_s3 + $0x14] sm:$0xf] %vm3095_vm1, %v2904_v14  ;;  %v4451_v26 = vpop.f32.mrf.mxu2 }
  0xc1   :  { %v2228_v34 = vpop.f32.mrf.mxu0  ;;  %v4462_v41 = vpop.f32.mrf.mxu1 }
  0xc2   :  { %v2229_v42 = vadd.f32 %v2228_v34, %v4236_v31  ;;  %787 = vperm.xlu2 %3919, %v293_v1   ;;  %v296_v31 = vld [vmem:[%s6251_s2 + $0x268] sm:$0xff]  ;;  %v297_v34 = vld [vmem:[%s6251_s2 + $0x270] sm:$0xff] }
  0xc3   :  { %782 = vperm.xlu1 %3918, %v292_v27   ;;  %777 = vperm.xlu0 %3917, %v291_v32   ;;  %v4511_v27 = vpop.f32.mrf.mxu3 }
  0xc4   :  { %v2709_v44 = vmax.f32 %v2229_v42, 0.0  ;;  %3715 = vmatmul.msk.bf16.gmra.mxu0 %vm1909_vm0, %v3813_v25  ;;  %3739 = vmatmul.msk.bf16.gmra.mxu1 %vm1909_vm0, %v3837_v33  ;;  %v4470_v46 = vpop.permute.xlu2 %622  ;;  %v3814_v25 = vld [vmem:[%s6253_s0 + $0x60] sm:$0xff]  ;;  %6258 = vst [vmem:[#allocation5_spill] sm:$0xff] %v4511_v27  ;;  %v298_v33 = vld [vmem:[%s6251_s2 + $0x278] sm:$0xff] }
  0xc5   :  { %6256 = vst [vmem:[#allocation3_spill] sm:$0xff] %v4470_v46  ;;  %3764 = vmatmul.msk.bf16.gmra.mxu2 %vm1909_vm0, %v3862_v21  ;;  %v4473_v47 = vpop.permute.xlu1 %572  ;;  %v4475_v48 = vpop.permute.xlu0 %567  ;;  %v3838_v21 = vld [vmem:[%s6253_s0 + $0x120] sm:$0xff] }
  0xc6   :  { %v2905_v53 = vpack.c.bf16 %v2709_v44, %v2709_v44 }
  0xc8   :  { %3102 = vst.msk [vmem:[%s6254_s3 + $0x18] sm:$0xf] %vm3095_vm1, %v2905_v53  ;;  %v4484_v55 = vpop.f32.mrf.mxu2  ;;  %v3863_v53 = vld [vmem:[%s6253_s0 + $0x1e8] sm:$0xff] }
  0xc9   :  { %v2230_v58 = vpop.f32.mrf.mxu0  ;;  %v4492_v4 = vpop.f32.mrf.mxu1 }
  0xca   :  { %v2231_v5 = vadd.f32 %v2230_v58, %v4234_v30  ;;  %802 = vperm.xlu2 %3919, %v296_v31   ;;  %v299_v30 = vld [vmem:[%s6251_s2 + $0x280] sm:$0xff] }
  0xcb   :  { %797 = vperm.xlu1 %3918, %v295_v56   ;;  %792 = vperm.xlu0 %3917, %v294_v62  }
  0xcc   :  { %v2710_v10 = vmax.f32 %v2231_v5, 0.0  ;;  %v4498_v11 = vpop.permute.xlu2 %637 }
  0xcd   :  { %6257 = vst [vmem:[#allocation4_spill] sm:$0xff] %v4498_v11  ;;  %v4501_v15 = vpop.permute.xlu1 %587  ;;  %v4503_v14 = vpop.permute.xlu0 %582 }
  0xce   :  { %v2906_v1 = vpack.c.bf16 %v2710_v10, %v2710_v10  ;;  %v4546_v10 = vpop.f32.mrf.mxu3 }
  0xcf   :  { %6261 = vst [vmem:[#allocation8_spill] sm:$0xff] %v4546_v10 }
  0xd0   :  { %3103 = vst.msk [vmem:[%s6254_s3 + $0x1c] sm:$0xf] %vm3095_vm1, %v2906_v1  ;;  %v4517_v32 = vpop.f32.mrf.mxu2 }
  0xd1   :  { %v2233_v42 = vpop.f32.mrf.mxu0  ;;  %v4528_v44 = vpop.f32.mrf.mxu1 }
  0xd2   :  { %v2234_v31 = vadd.f32 %v2233_v42, %v4167_v6  ;;  %817 = vperm.xlu2 %3919, %v299_v30   ;;  %v302_v6 = vld [vmem:[%s6251_s2 + $0x298] sm:$0xff]  ;;  %v301_v30 = vld [vmem:[%s6251_s2 + $0x290] sm:$0xff] }
  0xd3   :  { %812 = vperm.xlu1 %3918, %v298_v33   ;;  %807 = vperm.xlu0 %3917, %v297_v34   ;;  %v3885_v42 = vld [vmem:[%s6253_s0 + $0x298] sm:$0xff] }
  0xd4   :  { %v2711_v56 = vmax.f32 %v2234_v31, 0.0  ;;  %3716 = vmatmul.msk.bf16.gmra.mxu0 %vm1909_vm0, %v3814_v25  ;;  %3740 = vmatmul.msk.bf16.gmra.mxu1 %vm1909_vm0, %v3838_v21  ;;  %v4536_v62 = vpop.permute.xlu2 %652  ;;  %v300_v25 = vld [vmem:[%s6251_s2 + $0x288] sm:$0xff] }
  0xd5   :  { %6259 = vst [vmem:[#allocation6_spill] sm:$0xff] %v4536_v62  ;;  %3765 = vmatmul.msk.bf16.gmra.mxu2 %vm1909_vm0, %v3863_v53  ;;  %v4539_v58 = vpop.permute.xlu1 %602  ;;  %v4541_v5 = vpop.permute.xlu0 %597  ;;  %3787 = vmatmul.msk.bf16.gmra.mxu3 %vm1909_vm0, %v3885_v42 }
  0xd6   :  { %6260 = vst [vmem:[#allocation7_spill] sm:$0xff] %v4539_v58  ;;  %v2907_v8 = vpack.c.bf16 %v2711_v56, %v2711_v56 }
  0xd8   :  { %3104 = vst.msk [vmem:[%s6254_s3 + $0x20] sm:$0xf] %vm3095_vm1, %v2907_v8  ;;  %v4552_v1 = vpop.f32.mrf.mxu2 }
  0xd9   :  { %v2235_v33 = vpop.f32.mrf.mxu0  ;;  %v4560_v34 = vpop.f32.mrf.mxu1 }
  0xda   :  { %v2236_v21 = vadd.f32 %v2235_v33, %v4255_v38  ;;  %832 = vperm.xlu2 %3919, %v302_v6   ;;  %v305_v38 = vld [vmem:[%s6251_s2 + $0x2b0] sm:$0xff]  ;;  %v3815_v6 = vld [vmem:[%s6253_s0 + $0x68] sm:$0xff]  ;;  %v303_v33 = vld [vmem:[%s6251_s2 + $0x2a0] sm:$0xff] }
  0xdb   :  { %827 = vperm.xlu1 %3918, %v301_v30   ;;  %822 = vperm.xlu0 %3917, %v300_v25   ;;  %v4578_v30 = vpop.f32.mrf.mxu3  ;;  %v304_v25 = vld [vmem:[%s6251_s2 + $0x2a8] sm:$0xff] }
  0xdc   :  { %v2712_v53 = vmax.f32 %v2236_v21, 0.0  ;;  %v668_v31 = vpop.permute.xlu2 %667  ;;  %6264 = vst [vmem:[#allocation11_spill] sm:$0xff] %v4578_v30  ;;  %v3839_v21 = vld [vmem:[%s6253_s0 + $0x128] sm:$0xff] }
  0xdd   :  { %v2339_v56 = vadd.f32 %v4334_v12, %v668_v31  ;;  %v4568_v8 = vpop.permute.xlu1 %617  ;;  %v4570_v62 = vpop.permute.xlu0 %612 }
  0xde   :  { %6262 = vst [vmem:[#allocation9_spill] sm:$0xff] %v4568_v8  ;;  %v2908_v27 = vpack.c.bf16 %v2712_v53, %v2712_v53 }
  0xdf   :  { %6263 = vst [vmem:[#allocation10_spill] sm:$0xff] %v4570_v62  ;;  %v2753_v11 = vmax.f32 %v2339_v56, 0.0 }
  0xe0   :  { %3105 = vst.msk [vmem:[%s6254_s3 + $0x24] sm:$0xf] %vm3095_vm1, %v2908_v27  ;;  %v4584_v12 = vpop.f32.mrf.mxu2  ;;  %v3864_v27 = vld [vmem:[%s6253_s0 + $0x1f0] sm:$0xff] }
  0xe1   :  { %v2949_v42 = vpack.c.bf16 %v2753_v11, %v2753_v11  ;;  %v2238_v53 = vpop.f32.mrf.mxu0  ;;  %v4595_v31 = vpop.f32.mrf.mxu1 }
  0xe2   :  { %v2239_v56 = vadd.f32 %v2238_v53, %v4253_v37  ;;  %847 = vperm.xlu2 %3919, %v305_v38  }
  0xe3   :  { %3146 = vst.msk [vmem:[%s6254_s3 + $0xc8] sm:$0xf] %vm3095_vm1, %v2949_v42  ;;  %842 = vperm.xlu1 %3918, %v304_v25   ;;  %837 = vperm.xlu0 %3917, %v303_v33   ;;  %v308_v25 = vld [vmem:[%s6251_s2 + $0x2c8] sm:$0xff]  ;;  %v4616_v33 = vpop.f32.mrf.mxu3 }
  0xe4   :  { %v2713_v30 = vmax.f32 %v2239_v56, 0.0  ;;  %3717 = vmatmul.msk.bf16.gmra.mxu0 %vm1909_vm0, %v3815_v6  ;;  %3741 = vmatmul.msk.bf16.gmra.mxu1 %vm1909_vm0, %v3839_v21  ;;  %v683_v11 = vpop.permute.xlu2 %682  ;;  %6267 = vst [vmem:[#allocation14_spill] sm:$0xff] %v4616_v33  ;;  %v3886_v56 = vld [vmem:[%s6253_s0 + $0x2a0] sm:$0xff] }
  0xe5   :  { %3766 = vmatmul.msk.bf16.gmra.mxu2 %vm1909_vm0, %v3864_v27  ;;  %v2346_v10 = vadd.f32 %v4428_v9, %v683_v11  ;;  %v4609_v46 = vpop.permute.xlu1 %632  ;;  %v4611_v37 = vpop.permute.xlu0 %627  ;;  %v307_v9 = vld [vmem:[%s6251_s2 + $0x2c0] sm:$0xff]  ;;  %3788 = vmatmul.msk.bf16.gmra.mxu3 %vm1909_vm0, %v3886_v56  ;;  %v3840_v56 = vld [vmem:[%s6253_s0 + $0x130] sm:$0xff] }
  0xe6   :  { %6265 = vst [vmem:[#allocation12_spill] sm:$0xff] %v4609_v46  ;;  %v2909_v38 = vpack.c.bf16 %v2713_v30, %v2713_v30  ;;  %v311_v46 = vld [vmem:[%s6251_s2 + $0x2e0] sm:$0xff] }
  0xe7   :  { %6266 = vst [vmem:[#allocation13_spill] sm:$0xff] %v4611_v37  ;;  %v2756_v53 = vmax.f32 %v2346_v10, 0.0  ;;  %v306_v10 = vld [vmem:[%s6251_s2 + $0x2b8] sm:$0xff] }
  0xe8   :  { %3106 = vst.msk [vmem:[%s6254_s3 + $0x28] sm:$0xf] %vm3095_vm1, %v2909_v38  ;;  %v4622_v6 = vpop.f32.mrf.mxu2 }
  0xe9   :  { %v2952_v30 = vpack.c.bf16 %v2756_v53, %v2756_v53  ;;  %v2240_v21 = vpop.f32.mrf.mxu0  ;;  %v2360_v42 = vpop.f32.mrf.mxu1 }
  0xea   :  { %v2241_v27 = vadd.f32 %v2240_v21, %v4189_v13  ;;  %862 = vperm.xlu2 %3919, %v308_v25  }
  0xeb   :  { %3149 = vst.msk [vmem:[%s6254_s3 + $0xd4] sm:$0xf] %vm3095_vm1, %v2952_v30  ;;  %857 = vperm.xlu1 %3918, %v307_v9   ;;  %852 = vperm.xlu0 %3917, %v306_v10   ;;  %v3816_v9 = vld [vmem:[%s6253_s0 + $0x70] sm:$0xff]  ;;  %v4650_v10 = vpop.f32.mrf.mxu3  ;;  %v310_v30 = vld [vmem:[%s6251_s2 + $0x2d8] sm:$0xff] }
  0xec   :  { %v2714_v11 = vmax.f32 %v2241_v27, 0.0  ;;  %v698_v38 = vpop.permute.xlu2 %697  ;;  %6270 = vst [vmem:[#allocation17_spill] sm:$0xff] %v4650_v10  ;;  %v309_v27 = vld [vmem:[%s6251_s2 + $0x2d0] sm:$0xff] }
  0xed   :  { %v2354_v53 = vadd.f32 %v4528_v44, %v698_v38  ;;  %v4640_v33 = vpop.permute.xlu1 %647  ;;  %v4642_v13 = vpop.permute.xlu0 %642 }
  0xee   :  { %6268 = vst [vmem:[#allocation15_spill] sm:$0xff] %v4640_v33  ;;  %v2910_v25 = vpack.c.bf16 %v2714_v11, %v2714_v11 }
  0xef   :  { %6269 = vst [vmem:[#allocation16_spill] sm:$0xff] %v4642_v13  ;;  %v2759_v21 = vmax.f32 %v2354_v53, 0.0 }
  0xf0   :  { %3107 = vst.msk [vmem:[%s6254_s3 + $0x2c] sm:$0xf] %vm3095_vm1, %v2910_v25  ;;  %v4656_v44 = vpop.f32.mrf.mxu2  ;;  %v3865_v25 = vld [vmem:[%s6253_s0 + $0x1f8] sm:$0xff] }
  0xf1   :  { %v2955_v11 = vpack.c.bf16 %v2759_v21, %v2759_v21  ;;  %v2243_v38 = vpop.f32.mrf.mxu0  ;;  %v4667_v53 = vpop.f32.mrf.mxu1 }
  0xf2   :  { %v2244_v33 = vadd.f32 %v2243_v38, %v4284_v51  ;;  %877 = vperm.xlu2 %3919, %v311_v46  }
  0xf3   :  { %3152 = vst.msk [vmem:[%s6254_s3 + $0xe0] sm:$0xf] %vm3095_vm1, %v2955_v11  ;;  %872 = vperm.xlu1 %3918, %v310_v30   ;;  %867 = vperm.xlu0 %3917, %v309_v27   ;;  %v4685_v30 = vpop.f32.mrf.mxu3 }
  0xf4   :  { %v2715_v13 = vmax.f32 %v2244_v33, 0.0  ;;  %3718 = vmatmul.msk.bf16.gmra.mxu0 %vm1909_vm0, %v3816_v9  ;;  %3742 = vmatmul.msk.bf16.gmra.mxu1 %vm1909_vm0, %v3840_v56  ;;  %v713_v21 = vpop.permute.xlu2 %712  ;;  %v314_v33 = vld [vmem:[%s6251_s2 + $0x2f8] sm:$0xff]  ;;  %6271 = vst [vmem:[#allocation18_spill] sm:$0xff] %v4685_v30 }
  0xf5   :  { %3767 = vmatmul.msk.bf16.gmra.mxu2 %vm1909_vm0, %v3865_v25  ;;  %v2361_v10 = vadd.f32 %v2360_v42, %v713_v21  ;;  %v663_v37 = vpop.permute.xlu1 %662  ;;  %v658_v8 = vpop.permute.xlu0 %657  ;;  %v3887_v25 = vld [vmem:[%s6253_s0 + $0x2a8] sm:$0xff] }
  0xf6   :  { %v2911_v51 = vpack.c.bf16 %v2715_v13, %v2715_v13  ;;  %v2336_v46 = vadd.f32 %v4301_v59, %v663_v37  ;;  %v2334_v38 = vadd.f32 %v4272_v45, %v658_v8  ;;  %v313_v45 = vld [vmem:[%s6251_s2 + $0x2f0] sm:$0xff]  ;;  %v312_v59 = vld [vmem:[%s6251_s2 + $0x2e8] sm:$0xff]  ;;  %3789 = vmatmul.msk.bf16.gmra.mxu3 %vm1909_vm0, %v3887_v25  ;;  %v3866_v25 = vld [vmem:[%s6253_s0 + $0x200] sm:$0xff] }
  0xf7   :  { %v2762_v62 = vmax.f32 %v2361_v10, 0.0 }
  0xf8   :  { %3108 = vst.msk [vmem:[%s6254_s3 + $0x30] sm:$0xf] %vm3095_vm1, %v2911_v51  ;;  %v2752_v42 = vmax.f32 %v2336_v46, 0.0  ;;  %v2751_v9 = vmax.f32 %v2334_v38, 0.0  ;;  %v4691_v27 = vpop.f32.mrf.mxu2 }
  0xf9   :  { %v2958_v8 = vpack.c.bf16 %v2762_v62, %v2762_v62  ;;  %v2245_v37 = vpop.f32.mrf.mxu0  ;;  %v4699_v13 = vpop.f32.mrf.mxu1 }
  0xfa   :  { %v2948_v10 = vpack.c.bf16 %v2752_v42, %v2752_v42  ;;  %v2947_v56 = vpack.c.bf16 %v2751_v9, %v2751_v9  ;;  %v2246_v11 = vadd.f32 %v2245_v37, %v4282_v50  ;;  %892 = vperm.xlu2 %3919, %v314_v33   ;;  %v317_v42 = vld [vmem:[%s6251_s2 + $0x310] sm:$0xff]  ;;  %v3817_v9 = vld [vmem:[%s6253_s0 + $0x78] sm:$0xff]  ;;  %v316_v37 = vld [vmem:[%s6251_s2 + $0x308] sm:$0xff] }
  0xfb   :  { %3155 = vst.msk [vmem:[%s6254_s3 + $0xec] sm:$0xf] %vm3095_vm1, %v2958_v8  ;;  %887 = vperm.xlu1 %3918, %v313_v45   ;;  %882 = vperm.xlu0 %3917, %v312_v59   ;;  %v3841_v45 = vld [vmem:[%s6253_s0 + $0x138] sm:$0xff]  ;;  %v4729_v59 = vpop.f32.mrf.mxu3 }
  0xfc   :  { %3145 = vst.msk [vmem:[%s6254_s3 + $0xc4] sm:$0xf] %vm3095_vm1, %v2948_v10  ;;  %v2716_v62 = vmax.f32 %v2246_v11, 0.0  ;;  %v728_v21 = vpop.permute.xlu2 %727  ;;  %v315_v10 = vld [vmem:[%s6251_s2 + $0x300] sm:$0xff] }
  0xfd   :  { %3144 = vst.msk [vmem:[%s6254_s3 + $0xc0] sm:$0xf] %vm3095_vm1, %v2947_v56  ;;  %v678_v50 = vpop.permute.xlu1 %677  ;;  %v673_v51 = vpop.permute.xlu0 %672 }
  0xfe   :  { %v2912_v46 = vpack.c.bf16 %v2716_v62, %v2716_v62  ;;  %v2344_v38 = vadd.f32 %v4398_v52, %v678_v50  ;;  %v2341_v33 = vadd.f32 %v4364_v28, %v673_v51  ;;  %6272 = vst [vmem:[#allocation19_spill] sm:$0xff] %v4729_v59 }
 0x100   :  { %3109 = vst.msk [vmem:[%s6254_s3 + $0x34] sm:$0xf] %vm3095_vm1, %v2912_v46  ;;  %v2755_v28 = vmax.f32 %v2344_v38, 0.0  ;;  %v2754_v52 = vmax.f32 %v2341_v33, 0.0  ;;  %v4735_v8 = vpop.f32.mrf.mxu2 }
 0x101   :  { %v2248_v56 = vpop.f32.mrf.mxu0  ;;  %v2368_v11 = vpop.f32.mrf.mxu1 }
 0x102   :  { %v2951_v62 = vpack.c.bf16 %v2755_v28, %v2755_v28  ;;  %v2950_v50 = vpack.c.bf16 %v2754_v52, %v2754_v52  ;;  %v2249_v51 = vadd.f32 %v2248_v56, %v4206_v20  ;;  %v2369_v46 = vadd.f32 %v2368_v11, %v728_v21  ;;  %907 = vperm.xlu2 %3919, %v317_v42  }
 0x103   :  { %902 = vperm.xlu1 %3918, %v316_v37   ;;  %897 = vperm.xlu0 %3917, %v315_v10  }
 0x104   :  { %3148 = vst.msk [vmem:[%s6254_s3 + $0xd0] sm:$0xf] %vm3095_vm1, %v2951_v62  ;;  %v2717_v38 = vmax.f32 %v2249_v51, 0.0  ;;  %v2765_v33 = vmax.f32 %v2369_v46, 0.0  ;;  %3719 = vmatmul.msk.bf16.gmra.mxu0 %vm1909_vm0, %v3817_v9  ;;  %3743 = vmatmul.msk.bf16.gmra.mxu1 %vm1909_vm0, %v3841_v45  ;;  %v4753_v30 = vpop.permute.xlu2 %742  ;;  %v320_v9 = vld [vmem:[%s6251_s2 + $0x328] sm:$0xff]  ;;  %v4765_v45 = vpop.f32.mrf.mxu3 }
 0x105   :  { %3147 = vst.msk [vmem:[%s6254_s3 + $0xcc] sm:$0xf] %vm3095_vm1, %v2950_v50  ;;  %3768 = vmatmul.msk.bf16.gmra.mxu2 %vm1909_vm0, %v3866_v25  ;;  %v693_v20 = vpop.permute.xlu1 %692  ;;  %v688_v21 = vpop.permute.xlu0 %687 }
 0x106   :  { %v2913_v42 = vpack.c.bf16 %v2717_v38, %v2717_v38  ;;  %v2961_v28 = vpack.c.bf16 %v2765_v33, %v2765_v33  ;;  %v2351_v52 = vadd.f32 %v4492_v4, %v693_v20  ;;  %v2349_v37 = vadd.f32 %v4462_v41, %v688_v21  ;;  %6273 = vst [vmem:[#allocation20_spill] sm:$0xff] %v4765_v45  ;;  %v319_v4 = vld [vmem:[%s6251_s2 + $0x320] sm:$0xff]  ;;  %v318_v41 = vld [vmem:[%s6251_s2 + $0x318] sm:$0xff]  ;;  %v3888_v38 = vld [vmem:[%s6253_s0 + $0x2b0] sm:$0xff] }
 0x107   :  { %3790 = vmatmul.msk.bf16.gmra.mxu3 %vm1909_vm0, %v3888_v38 }
 0x108   :  { %3110 = vst.msk [vmem:[%s6254_s3 + $0x38] sm:$0xf] %vm3095_vm1, %v2913_v42  ;;  %v2758_v10 = vmax.f32 %v2351_v52, 0.0  ;;  %v2757_v56 = vmax.f32 %v2349_v37, 0.0  ;;  %v4771_v11 = vpop.f32.mrf.mxu2  ;;  %v323_v37 = vld [vmem:[%s6251_s2 + $0x340] sm:$0xff] }
 0x109   :  { %3158 = vst.msk [vmem:[%s6254_s3 + $0xf8] sm:$0xf] %vm3095_vm1, %v2961_v28  ;;  %v2250_v25 = vpop.f32.mrf.mxu0  ;;  %v4783_v62 = vpop.f32.mrf.mxu1 }
 0x10a   :  { %v2954_v50 = vpack.c.bf16 %v2758_v10, %v2758_v10  ;;  %v2953_v51 = vpack.c.bf16 %v2757_v56, %v2757_v56  ;;  %v2251_v46 = vadd.f32 %v2250_v25, %v4311_v2  ;;  %922 = vperm.xlu2 %3919, %v320_v9   ;;  %v3818_v9 = vld [vmem:[%s6253_s0 + $0x80] sm:$0xff]  ;;  %v321_v25 = vld [vmem:[%s6251_s2 + $0x330] sm:$0xff] }
 0x10b   :  { %917 = vperm.xlu1 %3918, %v319_v4   ;;  %912 = vperm.xlu0 %3917, %v318_v41   ;;  %v3842_v10 = vld [vmem:[%s6253_s0 + $0x140] sm:$0xff]  ;;  %v322_v41 = vld [vmem:[%s6251_s2 + $0x338] sm:$0xff] }
 0x10c   :  { %3151 = vst.msk [vmem:[%s6254_s3 + $0xdc] sm:$0xf] %vm3095_vm1, %v2954_v50  ;;  %v2718_v33 = vmax.f32 %v2251_v46, 0.0  ;;  %v4793_v20 = vpop.permute.xlu2 %757  ;;  %v4811_v56 = vpop.f32.mrf.mxu3  ;;  %v3867_v46 = vld [vmem:[%s6253_s0 + $0x208] sm:$0xff] }
 0x10d   :  { %3150 = vst.msk [vmem:[%s6254_s3 + $0xd8] sm:$0xf] %vm3095_vm1, %v2953_v51  ;;  %v708_v2 = vpop.permute.xlu1 %707  ;;  %v703_v21 = vpop.permute.xlu0 %702 }
 0x10e   :  { %v2914_v42 = vpack.c.bf16 %v2718_v33, %v2718_v33  ;;  %v2359_v28 = vadd.f32 %v4595_v31, %v708_v2  ;;  %v2356_v52 = vadd.f32 %v4560_v34, %v703_v21  ;;  %6274 = vst [vmem:[#allocation21_spill] sm:$0xff] %v4811_v56 }
 0x110   :  { %3111 = vst.msk [vmem:[%s6254_s3 + $0x3c] sm:$0xf] %vm3095_vm1, %v2914_v42  ;;  %v2761_v34 = vmax.f32 %v2359_v28, 0.0  ;;  %v2760_v31 = vmax.f32 %v2356_v52, 0.0  ;;  %v4817_v4 = vpop.f32.mrf.mxu2 }
 0x111   :  { %v2253_v50 = vpop.f32.mrf.mxu0  ;;  %v2373_v51 = vpop.f32.mrf.mxu1 }
 0x112   :  { %v2957_v38 = vpack.c.bf16 %v2761_v34, %v2761_v34  ;;  %v2956_v33 = vpack.c.bf16 %v2760_v31, %v2760_v31  ;;  %v2254_v2 = vadd.f32 %v2253_v50, %v4309_v0  ;;  %937 = vperm.xlu2 %3919, %v323_v37  }
 0x113   :  { %932 = vperm.xlu1 %3918, %v322_v41   ;;  %927 = vperm.xlu0 %3917, %v321_v25  }
 0x114   :  { %3154 = vst.msk [vmem:[%s6254_s3 + $0xe8] sm:$0xf] %vm3095_vm1, %v2957_v38  ;;  %v2719_v21 = vmax.f32 %v2254_v2, 0.0  ;;  %3720 = vmatmul.msk.bf16.gmra.mxu0 %vm1909_vm0, %v3818_v9  ;;  %3744 = vmatmul.msk.bf16.gmra.mxu1 %vm1909_vm0, %v3842_v10  ;;  %v4835_v42 = vpop.permute.xlu2 %772  ;;  %v326_v9 = vld [vmem:[%s6251_s2 + $0x358] sm:$0xff]  ;;  %v4847_v10 = vpop.f32.mrf.mxu3 }
 0x115   :  { %3153 = vst.msk [vmem:[%s6254_s3 + $0xe4] sm:$0xf] %vm3095_vm1, %v2956_v33  ;;  %3769 = vmatmul.msk.bf16.gmra.mxu2 %vm1909_vm0, %v3867_v46  ;;  %v723_v0 = vpop.permute.xlu1 %722  ;;  %v718_v28 = vpop.permute.xlu0 %717 }
 0x116   :  { %v2915_v52 = vpack.c.bf16 %v2719_v21, %v2719_v21  ;;  %v2366_v37 = vadd.f32 %v4699_v13, %v723_v0  ;;  %v2364_v34 = vadd.f32 %v4667_v53, %v718_v28  ;;  %6275 = vst [vmem:[#allocation22_spill] sm:$0xff] %v4847_v10  ;;  %v325_v13 = vld [vmem:[%s6251_s2 + $0x350] sm:$0xff]  ;;  %v324_v53 = vld [vmem:[%s6251_s2 + $0x348] sm:$0xff]  ;;  %v3889_v0 = vld [vmem:[%s6253_s0 + $0x2b8] sm:$0xff] }
 0x117   :  { %3791 = vmatmul.msk.bf16.gmra.mxu3 %vm1909_vm0, %v3889_v0 }
 0x118   :  { %3112 = vst.msk [vmem:[%s6254_s3 + $0x40] sm:$0xf] %vm3095_vm1, %v2915_v52  ;;  %v2764_v31 = vmax.f32 %v2366_v37, 0.0  ;;  %v2763_v41 = vmax.f32 %v2364_v34, 0.0  ;;  %v4853_v25 = vpop.f32.mrf.mxu2 }
 0x119   :  { %v2255_v50 = vpop.f32.mrf.mxu0  ;;  %v2375_v46 = vpop.f32.mrf.mxu1 }
 0x11a   :  { %v2960_v38 = vpack.c.bf16 %v2764_v31, %v2764_v31  ;;  %v2959_v33 = vpack.c.bf16 %v2763_v41, %v2763_v41  ;;  %v2256_v2 = vadd.f32 %v2255_v50, %v4231_v29  ;;  %v2376_v21 = vadd.f32 %v2375_v46, %v4753_v30  ;;  %952 = vperm.xlu2 %3919, %v326_v9   ;;  %v3843_v50 = vld [vmem:[%s6253_s0 + $0x148] sm:$0xff] }
 0x11b   :  { %947 = vperm.xlu1 %3918, %v325_v13   ;;  %942 = vperm.xlu0 %3917, %v324_v53   ;;  %v329_v13 = vld [vmem:[%s6251_s2 + $0x370] sm:$0xff]  ;;  %v3819_v53 = vld [vmem:[%s6253_s0 + $0x88] sm:$0xff] }
 0x11c   :  { %3157 = vst.msk [vmem:[%s6254_s3 + $0xf4] sm:$0xf] %vm3095_vm1, %v2960_v38  ;;  %v2720_v28 = vmax.f32 %v2256_v2, 0.0  ;;  %v2768_v52 = vmax.f32 %v2376_v21, 0.0  ;;  %v4870_v37 = vpop.permute.xlu2 %787  ;;  %v4887_v46 = vpop.f32.mrf.mxu3  ;;  %v327_v2 = vld [vmem:[%s6251_s2 + $0x360] sm:$0xff] }
 0x11d   :  { %3156 = vst.msk [vmem:[%s6254_s3 + $0xf0] sm:$0xf] %vm3095_vm1, %v2959_v33  ;;  %v738_v29 = vpop.permute.xlu1 %737  ;;  %v733_v30 = vpop.permute.xlu0 %732  ;;  %v328_v33 = vld [vmem:[%s6251_s2 + $0x368] sm:$0xff] }
 0x11e   :  { %v2916_v34 = vpack.c.bf16 %v2720_v28, %v2720_v28  ;;  %v2964_v9 = vpack.c.bf16 %v2768_v52, %v2768_v52  ;;  %v2374_v31 = vadd.f32 %v2373_v51, %v738_v29  ;;  %v2371_v41 = vadd.f32 %v4783_v62, %v733_v30  ;;  %6276 = vst [vmem:[#allocation23_spill] sm:$0xff] %v4887_v46  ;;  %v3868_v28 = vld [vmem:[%s6253_s0 + $0x210] sm:$0xff] }
 0x120   :  { %3113 = vst.msk [vmem:[%s6254_s3 + $0x44] sm:$0xf] %vm3095_vm1, %v2916_v34  ;;  %v2767_v62 = vmax.f32 %v2374_v31, 0.0  ;;  %v2766_v51 = vmax.f32 %v2371_v41, 0.0  ;;  %v4893_v38 = vpop.f32.mrf.mxu2 }
 0x121   :  { %3161 = vst.msk [vmem:[%s6254_s3 + $0x104] sm:$0xf] %vm3095_vm1, %v2964_v9  ;;  %v2258_v21 = vpop.f32.mrf.mxu0  ;;  %v2378_v0 = vpop.f32.mrf.mxu1 }
 0x122   :  { %v2963_v52 = vpack.c.bf16 %v2767_v62, %v2767_v62  ;;  %v2962_v29 = vpack.c.bf16 %v2766_v51, %v2766_v51  ;;  %v2259_v30 = vadd.f32 %v2258_v21, %v4347_v22  ;;  %967 = vperm.xlu2 %3919, %v329_v13   ;;  %v332_v62 = vld [vmem:[%s6251_s2 + $0x388] sm:$0xff] }
 0x123   :  { %962 = vperm.xlu1 %3918, %v328_v33   ;;  %957 = vperm.xlu0 %3917, %v327_v2   ;;  %v331_v33 = vld [vmem:[%s6251_s2 + $0x380] sm:$0xff]  ;;  %v330_v2 = vld [vmem:[%s6251_s2 + $0x378] sm:$0xff] }
 0x124   :  { %3160 = vst.msk [vmem:[%s6254_s3 + $0x100] sm:$0xf] %vm3095_vm1, %v2963_v52  ;;  %v2721_v34 = vmax.f32 %v2259_v30, 0.0  ;;  %3721 = vmatmul.msk.bf16.gmra.mxu0 %vm1909_vm0, %v3819_v53  ;;  %3745 = vmatmul.msk.bf16.gmra.mxu1 %vm1909_vm0, %v3843_v50  ;;  %v4915_v9 = vpop.permute.xlu2 %802  ;;  %v4925_v53 = vpop.f32.mrf.mxu3  ;;  %v3890_v30 = vld [vmem:[%s6253_s0 + $0x2c0] sm:$0xff] }
 0x125   :  { %3159 = vst.msk [vmem:[%s6254_s3 + $0xfc] sm:$0xf] %vm3095_vm1, %v2962_v29  ;;  %3770 = vmatmul.msk.bf16.gmra.mxu2 %vm1909_vm0, %v3868_v28  ;;  %v753_v22 = vpop.permute.xlu1 %752  ;;  %v748_v31 = vpop.permute.xlu0 %747 }
 0x126   :  { %v2917_v41 = vpack.c.bf16 %v2721_v34, %v2721_v34  ;;  %v2379_v13 = vadd.f32 %v2378_v0, %v748_v31  ;;  %6277 = vst [vmem:[#allocation24_spill] sm:$0xff] %v4925_v53 }
 0x127   :  { %3792 = vmatmul.msk.bf16.gmra.mxu3 %vm1909_vm0, %v3890_v30 }
 0x128   :  { %3114 = vst.msk [vmem:[%s6254_s3 + $0x48] sm:$0xf] %vm3095_vm1, %v2917_v41  ;;  %v2769_v50 = vmax.f32 %v2379_v13, 0.0  ;;  %v4931_v51 = vpop.f32.mrf.mxu2 }
 0x129   :  { %v2260_v21 = vpop.f32.mrf.mxu0  ;;  %v2380_v0 = vpop.f32.mrf.mxu1 }
 0x12a   :  { %v2965_v28 = vpack.c.bf16 %v2769_v50, %v2769_v50  ;;  %v2261_v52 = vadd.f32 %v2260_v21, %v4345_v19  ;;  %v2381_v29 = vadd.f32 %v2380_v0, %v753_v22  ;;  %982 = vperm.xlu2 %3919, %v332_v62   ;;  %v335_v50 = vld [vmem:[%s6251_s2 + $0x3a0] sm:$0xff]  ;;  %v334_v0 = vld [vmem:[%s6251_s2 + $0x398] sm:$0xff] }
 0x12b   :  { %977 = vperm.xlu1 %3918, %v331_v33   ;;  %972 = vperm.xlu0 %3917, %v330_v2   ;;  %v3820_v33 = vld [vmem:[%s6253_s0 + $0x90] sm:$0xff] }
 0x12c   :  { %3162 = vst.msk [vmem:[%s6254_s3 + $0x108] sm:$0xf] %vm3095_vm1, %v2965_v28  ;;  %v2722_v34 = vmax.f32 %v2261_v52, 0.0  ;;  %v2770_v31 = vmax.f32 %v2381_v29, 0.0  ;;  %v4947_v41 = vpop.permute.xlu2 %817  ;;  %v4958_v2 = vpop.f32.mrf.mxu3  ;;  %v333_v28 = vld [vmem:[%s6251_s2 + $0x390] sm:$0xff] }
 0x12d   :  { %v4950_v19 = vpop.permute.xlu1 %767  ;;  %v763_v22 = vpop.permute.xlu0 %762  ;;  %6278 = vst [vmem:[#allocation25_spill] sm:$0xff] %v4958_v2  ;;  %v3844_v52 = vld [vmem:[%s6253_s0 + $0x150] sm:$0xff] }
 0x12e   :  { %v2918_v13 = vpack.c.bf16 %v2722_v34, %v2722_v34  ;;  %v2966_v62 = vpack.c.bf16 %v2770_v31, %v2770_v31  ;;  %v3869_v34 = vld [vmem:[%s6253_s0 + $0x218] sm:$0xff] }
 0x130   :  { %3115 = vst.msk [vmem:[%s6254_s3 + $0x4c] sm:$0xf] %vm3095_vm1, %v2918_v13  ;;  %v4964_v21 = vpop.f32.mrf.mxu2 }
 0x131   :  { %3163 = vst.msk [vmem:[%s6254_s3 + $0x10c] sm:$0xf] %vm3095_vm1, %v2966_v62  ;;  %v2263_v29 = vpop.f32.mrf.mxu0  ;;  %v2383_v30 = vpop.f32.mrf.mxu1 }
 0x132   :  { %v2264_v31 = vadd.f32 %v2263_v29, %v4250_v36  ;;  %v2384_v13 = vadd.f32 %v2383_v30, %v4793_v20  ;;  %997 = vperm.xlu2 %3919, %v335_v50   ;;  %v338_v20 = vld [vmem:[%s6251_s2 + $0x3b8] sm:$0xff] }
 0x133   :  { %992 = vperm.xlu1 %3918, %v334_v0   ;;  %987 = vperm.xlu0 %3917, %v333_v28   ;;  %v337_v0 = vld [vmem:[%s6251_s2 + $0x3b0] sm:$0xff] }
 0x134   :  { %v2723_v53 = vmax.f32 %v2264_v31, 0.0  ;;  %v2771_v2 = vmax.f32 %v2384_v13, 0.0  ;;  %3722 = vmatmul.msk.bf16.gmra.mxu0 %vm1909_vm0, %v3820_v33  ;;  %3746 = vmatmul.msk.bf16.gmra.mxu1 %vm1909_vm0, %v3844_v52  ;;  %v4986_v62 = vpop.permute.xlu2 %832  ;;  %v4996_v50 = vpop.f32.mrf.mxu3 }
 0x135   :  { %3771 = vmatmul.msk.bf16.gmra.mxu2 %vm1909_vm0, %v3869_v34  ;;  %v4989_v56 = vpop.permute.xlu1 %782  ;;  %v4991_v10 = vpop.permute.xlu0 %777  ;;  %6279 = vst [vmem:[#allocation26_spill] sm:$0xff] %v4996_v50  ;;  %v3891_v34 = vld [vmem:[%s6253_s0 + $0x2c8] sm:$0xff] }
 0x136   :  { %v2919_v36 = vpack.c.bf16 %v2723_v53, %v2723_v53  ;;  %v2967_v29 = vpack.c.bf16 %v2771_v2, %v2771_v2  ;;  %v336_v53 = vld [vmem:[%s6251_s2 + $0x3a8] sm:$0xff] }
 0x137   :  { %3793 = vmatmul.msk.bf16.gmra.mxu3 %vm1909_vm0, %v3891_v34  ;;  %v3870_v34 = vld [vmem:[%s6253_s0 + $0x220] sm:$0xff] }
 0x138   :  { %3116 = vst.msk [vmem:[%s6254_s3 + $0x50] sm:$0xf] %vm3095_vm1, %v2919_v36  ;;  %v5002_v33 = vpop.f32.mrf.mxu2 }
 0x139   :  { %3164 = vst.msk [vmem:[%s6254_s3 + $0x110] sm:$0xf] %vm3095_vm1, %v2967_v29  ;;  %v2265_v2 = vpop.f32.mrf.mxu0  ;;  %v2385_v28 = vpop.f32.mrf.mxu1 }
 0x13a   :  { %v2266_v52 = vadd.f32 %v2265_v2, %v4375_v40  ;;  %v2386_v30 = vadd.f32 %v2385_v28, %v763_v22  ;;  %1012 = vperm.xlu2 %3919, %v338_v20   ;;  %v341_v22 = vld [vmem:[%s6251_s2 + $0x3d0] sm:$0xff]  ;;  %v3821_v20 = vld [vmem:[%s6253_s0 + $0x98] sm:$0xff]  ;;  %v340_v2 = vld [vmem:[%s6251_s2 + $0x3c8] sm:$0xff] }
 0x13b   :  { %1007 = vperm.xlu1 %3918, %v337_v0   ;;  %1002 = vperm.xlu0 %3917, %v336_v53   ;;  %v339_v28 = vld [vmem:[%s6251_s2 + $0x3c0] sm:$0xff] }
 0x13c   :  { %v2724_v31 = vmax.f32 %v2266_v52, 0.0  ;;  %v2772_v13 = vmax.f32 %v2386_v30, 0.0  ;;  %v5018_v36 = vpop.permute.xlu2 %847  ;;  %v5031_v0 = vpop.f32.mrf.mxu3  ;;  %v3845_v52 = vld [vmem:[%s6253_s0 + $0x158] sm:$0xff] }
 0x13d   :  { %6280 = vst [vmem:[#allocation27_spill] sm:$0xff] %v5018_v36  ;;  %v5021_v59 = vpop.permute.xlu1 %797  ;;  %v5023_v29 = vpop.permute.xlu0 %792 }
 0x13e   :  { %v2920_v50 = vpack.c.bf16 %v2724_v31, %v2724_v31  ;;  %v2968_v40 = vpack.c.bf16 %v2772_v13, %v2772_v13  ;;  %6281 = vst [vmem:[#allocation28_spill] sm:$0xff] %v5031_v0 }
 0x140   :  { %3117 = vst.msk [vmem:[%s6254_s3 + $0x54] sm:$0xf] %vm3095_vm1, %v2920_v50  ;;  %v5037_v53 = vpop.f32.mrf.mxu2 }
 0x141   :  { %3165 = vst.msk [vmem:[%s6254_s3 + $0x114] sm:$0xf] %vm3095_vm1, %v2968_v40  ;;  %v2268_v50 = vpop.f32.mrf.mxu0  ;;  %v2388_v30 = vpop.f32.mrf.mxu1 }
 0x142   :  { %v2269_v31 = vadd.f32 %v2268_v50, %v4373_v39  ;;  %v2389_v13 = vadd.f32 %v2388_v30, %v4950_v19  ;;  %1027 = vperm.xlu2 %3919, %v341_v22   ;;  %v344_v19 = vld [vmem:[%s6251_s2 + $0x3e8] sm:$0xff] }
 0x143   :  { %1022 = vperm.xlu1 %3918, %v340_v2   ;;  %1017 = vperm.xlu0 %3917, %v339_v28   ;;  %v343_v2 = vld [vmem:[%s6251_s2 + $0x3e0] sm:$0xff] }
 0x144   :  { %v2725_v0 = vmax.f32 %v2269_v31, 0.0  ;;  %v2773_v46 = vmax.f32 %v2389_v13, 0.0  ;;  %3723 = vmatmul.msk.bf16.gmra.mxu0 %vm1909_vm0, %v3821_v20  ;;  %3747 = vmatmul.msk.bf16.gmra.mxu1 %vm1909_vm0, %v3845_v52  ;;  %v5059_v40 = vpop.permute.xlu2 %862  ;;  %v5069_v22 = vpop.f32.mrf.mxu3 }
 0x145   :  { %6282 = vst [vmem:[#allocation29_spill] sm:$0xff] %v5059_v40  ;;  %3772 = vmatmul.msk.bf16.gmra.mxu2 %vm1909_vm0, %v3870_v34  ;;  %v5062_v45 = vpop.permute.xlu1 %812  ;;  %v5064_v36 = vpop.permute.xlu0 %807  ;;  %v3892_v34 = vld [vmem:[%s6253_s0 + $0x2d0] sm:$0xff] }
 0x146   :  { %v2921_v39 = vpack.c.bf16 %v2725_v0, %v2725_v0  ;;  %v2969_v50 = vpack.c.bf16 %v2773_v46, %v2773_v46  ;;  %6283 = vst [vmem:[#allocation30_spill] sm:$0xff] %v5069_v22  ;;  %v342_v46 = vld [vmem:[%s6251_s2 + $0x3d8] sm:$0xff] }
 0x147   :  { %3794 = vmatmul.msk.bf16.gmra.mxu3 %vm1909_vm0, %v3892_v34 }
 0x148   :  { %3118 = vst.msk [vmem:[%s6254_s3 + $0x58] sm:$0xf] %vm3095_vm1, %v2921_v39  ;;  %v5075_v20 = vpop.f32.mrf.mxu2 }
 0x149   :  { %3166 = vst.msk [vmem:[%s6254_s3 + $0x118] sm:$0xf] %vm3095_vm1, %v2969_v50  ;;  %v2270_v0 = vpop.f32.mrf.mxu0  ;;  %v2390_v28 = vpop.f32.mrf.mxu1 }
 0x14a   :  { %v2271_v52 = vadd.f32 %v2270_v0, %v4279_v49  ;;  %v2391_v30 = vadd.f32 %v2390_v28, %v4835_v42  ;;  %1042 = vperm.xlu2 %3919, %v344_v19   ;;  %v347_v42 = vld [vmem:[%s6251_s2 + $0x400] sm:$0xff]  ;;  %v346_v28 = vld [vmem:[%s6251_s2 + $0x3f8] sm:$0xff] }
 0x14b   :  { %1037 = vperm.xlu1 %3918, %v343_v2   ;;  %1032 = vperm.xlu0 %3917, %v342_v46   ;;  %v3822_v19 = vld [vmem:[%s6253_s0 + $0xa0] sm:$0xff] }
 0x14c   :  { %v2726_v31 = vmax.f32 %v2271_v52, 0.0  ;;  %v2774_v13 = vmax.f32 %v2391_v30, 0.0  ;;  %v5092_v39 = vpop.permute.xlu2 %877  ;;  %v5105_v2 = vpop.f32.mrf.mxu3  ;;  %v345_v52 = vld [vmem:[%s6251_s2 + $0x3f0] sm:$0xff]  ;;  %v3846_v30 = vld [vmem:[%s6253_s0 + $0x160] sm:$0xff] }
 0x14d   :  { %6284 = vst [vmem:[#allocation31_spill] sm:$0xff] %v5092_v39  ;;  %v5095_v50 = vpop.permute.xlu1 %827  ;;  %v5097_v22 = vpop.permute.xlu0 %822 }
 0x14e   :  { %v2922_v49 = vpack.c.bf16 %v2726_v31, %v2726_v31  ;;  %v2970_v0 = vpack.c.bf16 %v2774_v13, %v2774_v13  ;;  %6285 = vst [vmem:[#allocation32_spill] sm:$0xff] %v5105_v2  ;;  %v3871_v13 = vld [vmem:[%s6253_s0 + $0x228] sm:$0xff] }
 0x150   :  { %3119 = vst.msk [vmem:[%s6254_s3 + $0x5c] sm:$0xf] %vm3095_vm1, %v2922_v49  ;;  %v5111_v46 = vpop.f32.mrf.mxu2 }
 0x151   :  { %3167 = vst.msk [vmem:[%s6254_s3 + $0x11c] sm:$0xf] %vm3095_vm1, %v2970_v0  ;;  %v2273_v34 = vpop.f32.mrf.mxu0  ;;  %v2393_v31 = vpop.f32.mrf.mxu1 }
 0x152   :  { %v2274_v49 = vadd.f32 %v2273_v34, %v4411_v61  ;;  %v2394_v2 = vadd.f32 %v2393_v31, %v4991_v10  ;;  %1057 = vperm.xlu2 %3919, %v347_v42   ;;  %v350_v10 = vld [vmem:[%s6251_s2 + $0x418] sm:$0xff] }
 0x153   :  { %1052 = vperm.xlu1 %3918, %v346_v28   ;;  %1047 = vperm.xlu0 %3917, %v345_v52   ;;  %v3893_v31 = vld [vmem:[%s6253_s0 + $0x2d8] sm:$0xff] }
 0x154   :  { %v2727_v39 = vmax.f32 %v2274_v49, 0.0  ;;  %v2775_v40 = vmax.f32 %v2394_v2, 0.0  ;;  %3724 = vmatmul.msk.bf16.gmra.mxu0 %vm1909_vm0, %v3822_v19  ;;  %3748 = vmatmul.msk.bf16.gmra.mxu1 %vm1909_vm0, %v3846_v30  ;;  %v5133_v0 = vpop.permute.xlu2 %892  ;;  %v5143_v42 = vpop.f32.mrf.mxu3  ;;  %v349_v2 = vld [vmem:[%s6251_s2 + $0x410] sm:$0xff] }
 0x155   :  { %6286 = vst [vmem:[#allocation33_spill] sm:$0xff] %v5133_v0  ;;  %3773 = vmatmul.msk.bf16.gmra.mxu2 %vm1909_vm0, %v3871_v13  ;;  %v5136_v16 = vpop.permute.xlu1 %842  ;;  %v5138_v58 = vpop.permute.xlu0 %837 }
 0x156   :  { %v2923_v61 = vpack.c.bf16 %v2727_v39, %v2727_v39  ;;  %v2971_v34 = vpack.c.bf16 %v2775_v40, %v2775_v40  ;;  %6287 = vst [vmem:[#allocation34_spill] sm:$0xff] %v5143_v42  ;;  %v348_v40 = vld [vmem:[%s6251_s2 + $0x408] sm:$0xff] }
 0x157   :  { %3795 = vmatmul.msk.bf16.gmra.mxu3 %vm1909_vm0, %v3893_v31 }
 0x158   :  { %3120 = vst.msk [vmem:[%s6254_s3 + $0x60] sm:$0xf] %vm3095_vm1, %v2923_v61  ;;  %v5149_v19 = vpop.f32.mrf.mxu2 }
 0x159   :  { %3168 = vst.msk [vmem:[%s6254_s3 + $0x120] sm:$0xf] %vm3095_vm1, %v2971_v34  ;;  %v2275_v39 = vpop.f32.mrf.mxu0  ;;  %v2395_v28 = vpop.f32.mrf.mxu1 }
 0x15a   :  { %v2276_v52 = vadd.f32 %v2275_v39, %v4409_v60  ;;  %v2396_v30 = vadd.f32 %v2395_v28, %v4989_v56  ;;  %1072 = vperm.xlu2 %3919, %v350_v10   ;;  %v353_v39 = vld [vmem:[%s6251_s2 + $0x430] sm:$0xff]  ;;  %v352_v28 = vld [vmem:[%s6251_s2 + $0x428] sm:$0xff] }
 0x15b   :  { %1067 = vperm.xlu1 %3918, %v349_v2   ;;  %1062 = vperm.xlu0 %3917, %v348_v40   ;;  %v3823_v2 = vld [vmem:[%s6253_s0 + $0xa8] sm:$0xff] }
 0x15c   :  { %v2728_v13 = vmax.f32 %v2276_v52, 0.0  ;;  %v2776_v49 = vmax.f32 %v2396_v30, 0.0  ;;  %v908_v61 = vpop.permute.xlu2 %907  ;;  %v5178_v40 = vpop.f32.mrf.mxu3  ;;  %v351_v52 = vld [vmem:[%s6251_s2 + $0x420] sm:$0xff]  ;;  %v3847_v30 = vld [vmem:[%s6253_s0 + $0x168] sm:$0xff] }
 0x15d   :  { %v2459_v34 = vadd.f32 %v4293_v54, %v908_v61  ;;  %v5168_v42 = vpop.permute.xlu1 %857  ;;  %v5170_v0 = vpop.permute.xlu0 %852  ;;  %6288 = vst [vmem:[#allocation35_spill] sm:$0xff] %v5178_v40  ;;  %v3872_v61 = vld [vmem:[%s6253_s0 + $0x230] sm:$0xff] }
 0x15e   :  { %v2924_v60 = vpack.c.bf16 %v2728_v13, %v2728_v13  ;;  %v2972_v56 = vpack.c.bf16 %v2776_v49, %v2776_v49 }
 0x15f   :  { %v2801_v10 = vmax.f32 %v2459_v34, 0.0 }
 0x160   :  { %3121 = vst.msk [vmem:[%s6254_s3 + $0x64] sm:$0xf] %vm3095_vm1, %v2924_v60  ;;  %v5184_v54 = vpop.f32.mrf.mxu2 }
 0x161   :  { %3169 = vst.msk [vmem:[%s6254_s3 + $0x124] sm:$0xf] %vm3095_vm1, %v2972_v56  ;;  %v2997_v31 = vpack.c.bf16 %v2801_v10, %v2801_v10  ;;  %v2278_v13 = vpop.f32.mrf.mxu0  ;;  %v2398_v49 = vpop.f32.mrf.mxu1 }
 0x162   :  { %v2279_v34 = vadd.f32 %v2278_v13, %v4306_v63  ;;  %v2399_v60 = vadd.f32 %v2398_v49, %v4870_v37  ;;  %1087 = vperm.xlu2 %3919, %v353_v39  }
 0x163   :  { %3194 = vst.msk [vmem:[%s6254_s3 + $0x188] sm:$0xf] %vm3095_vm1, %v2997_v31  ;;  %1082 = vperm.xlu1 %3918, %v352_v28   ;;  %1077 = vperm.xlu0 %3917, %v351_v52   ;;  %v356_v28 = vld [vmem:[%s6251_s2 + $0x448] sm:$0xff] }
 0x164   :  { %v2729_v56 = vmax.f32 %v2279_v34, 0.0  ;;  %v2777_v10 = vmax.f32 %v2399_v60, 0.0  ;;  %3725 = vmatmul.msk.bf16.gmra.mxu0 %vm1909_vm0, %v3823_v2  ;;  %3749 = vmatmul.msk.bf16.gmra.mxu1 %vm1909_vm0, %v3847_v30  ;;  %v923_v40 = vpop.permute.xlu2 %922  ;;  %v5219_v52 = vpop.f32.mrf.mxu3 }
 0x165   :  { %3774 = vmatmul.msk.bf16.gmra.mxu2 %vm1909_vm0, %v3872_v61  ;;  %v2466_v63 = vadd.f32 %v4387_v43, %v923_v40  ;;  %v5212_v37 = vpop.permute.xlu1 %872  ;;  %v5214_v39 = vpop.permute.xlu0 %867  ;;  %6289 = vst [vmem:[#allocation36_spill] sm:$0xff] %v5219_v52  ;;  %v355_v43 = vld [vmem:[%s6251_s2 + $0x440] sm:$0xff]  ;;  %v354_v40 = vld [vmem:[%s6251_s2 + $0x438] sm:$0xff] }
 0x166   :  { %v2925_v13 = vpack.c.bf16 %v2729_v56, %v2729_v56  ;;  %v2973_v49 = vpack.c.bf16 %v2777_v10, %v2777_v10  ;;  %v3894_v10 = vld [vmem:[%s6253_s0 + $0x2e0] sm:$0xff] }
 0x167   :  { %v2804_v31 = vmax.f32 %v2466_v63, 0.0  ;;  %3796 = vmatmul.msk.bf16.gmra.mxu3 %vm1909_vm0, %v3894_v10  ;;  %v3848_v10 = vld [vmem:[%s6253_s0 + $0x170] sm:$0xff] }
 0x168   :  { %3122 = vst.msk [vmem:[%s6254_s3 + $0x68] sm:$0xf] %vm3095_vm1, %v2925_v13  ;;  %v5225_v2 = vpop.f32.mrf.mxu2 }
 0x169   :  { %3170 = vst.msk [vmem:[%s6254_s3 + $0x128] sm:$0xf] %vm3095_vm1, %v2973_v49  ;;  %v3000_v30 = vpack.c.bf16 %v2804_v31, %v2804_v31  ;;  %v2280_v61 = vpop.f32.mrf.mxu0  ;;  %v2400_v34 = vpop.f32.mrf.mxu1 }
 0x16a   :  { %v2281_v60 = vadd.f32 %v2280_v61, %v4439_v23  ;;  %v2401_v56 = vadd.f32 %v2400_v34, %v5023_v29  ;;  %1102 = vperm.xlu2 %3919, %v356_v28  }
 0x16b   :  { %3197 = vst.msk [vmem:[%s6254_s3 + $0x194] sm:$0xf] %vm3095_vm1, %v3000_v30  ;;  %1097 = vperm.xlu1 %3918, %v355_v43   ;;  %1092 = vperm.xlu0 %3917, %v354_v40   ;;  %v359_v30 = vld [vmem:[%s6251_s2 + $0x460] sm:$0xff]  ;;  %v3824_v43 = vld [vmem:[%s6253_s0 + $0xb0] sm:$0xff] }
 0x16c   :  { %v2730_v63 = vmax.f32 %v2281_v60, 0.0  ;;  %v2778_v13 = vmax.f32 %v2401_v56, 0.0  ;;  %v938_v49 = vpop.permute.xlu2 %937  ;;  %v5258_v40 = vpop.f32.mrf.mxu3  ;;  %v358_v60 = vld [vmem:[%s6251_s2 + $0x458] sm:$0xff]  ;;  %v357_v56 = vld [vmem:[%s6251_s2 + $0x450] sm:$0xff] }
 0x16d   :  { %v2474_v23 = vadd.f32 %v4484_v55, %v938_v49  ;;  %v5248_v29 = vpop.permute.xlu1 %887  ;;  %v5250_v31 = vpop.permute.xlu0 %882  ;;  %6290 = vst [vmem:[#allocation37_spill] sm:$0xff] %v5258_v40 }
 0x16e   :  { %v2926_v28 = vpack.c.bf16 %v2730_v63, %v2730_v63  ;;  %v2974_v61 = vpack.c.bf16 %v2778_v13, %v2778_v13 }
 0x16f   :  { %v2807_v34 = vmax.f32 %v2474_v23, 0.0  ;;  %v3873_v23 = vld [vmem:[%s6253_s0 + $0x238] sm:$0xff] }
 0x170   :  { %3123 = vst.msk [vmem:[%s6254_s3 + $0x6c] sm:$0xf] %vm3095_vm1, %v2926_v28  ;;  %v5264_v55 = vpop.f32.mrf.mxu2 }
 0x171   :  { %3171 = vst.msk [vmem:[%s6254_s3 + $0x12c] sm:$0xf] %vm3095_vm1, %v2974_v61  ;;  %v3003_v63 = vpack.c.bf16 %v2807_v34, %v2807_v34  ;;  %v2283_v13 = vpop.f32.mrf.mxu0  ;;  %v2403_v49 = vpop.f32.mrf.mxu1 }
 0x172   :  { %v2284_v28 = vadd.f32 %v2283_v13, %v4437_v17  ;;  %v2404_v40 = vadd.f32 %v2403_v49, %v5021_v59  ;;  %1117 = vperm.xlu2 %3919, %v359_v30  }
 0x173   :  { %3200 = vst.msk [vmem:[%s6254_s3 + $0x1a0] sm:$0xf] %vm3095_vm1, %v3003_v63  ;;  %1112 = vperm.xlu1 %3918, %v358_v60   ;;  %1107 = vperm.xlu0 %3917, %v357_v56  }
 0x174   :  { %v2731_v61 = vmax.f32 %v2284_v28, 0.0  ;;  %v2779_v34 = vmax.f32 %v2404_v40, 0.0  ;;  %3726 = vmatmul.msk.bf16.gmra.mxu0 %vm1909_vm0, %v3824_v43  ;;  %3750 = vmatmul.msk.bf16.gmra.mxu1 %vm1909_vm0, %v3848_v10  ;;  %v953_v52 = vpop.permute.xlu2 %952  ;;  %v362_v40 = vld [vmem:[%s6251_s2 + $0x478] sm:$0xff]  ;;  %v5299_v60 = vpop.f32.mrf.mxu3 }
 0x175   :  { %3775 = vmatmul.msk.bf16.gmra.mxu2 %vm1909_vm0, %v3873_v23  ;;  %v2481_v17 = vadd.f32 %v4584_v12, %v953_v52  ;;  %v5292_v59 = vpop.permute.xlu1 %902  ;;  %v5294_v30 = vpop.permute.xlu0 %897  ;;  %6292 = vst [vmem:[#allocation39_spill] sm:$0xff] %v5299_v60  ;;  %v361_v12 = vld [vmem:[%s6251_s2 + $0x470] sm:$0xff]  ;;  %v360_v52 = vld [vmem:[%s6251_s2 + $0x468] sm:$0xff] }
 0x176   :  { %6291 = vst [vmem:[#allocation38_spill] sm:$0xff] %v5292_v59  ;;  %v2927_v13 = vpack.c.bf16 %v2731_v61, %v2731_v61  ;;  %v2975_v49 = vpack.c.bf16 %v2779_v34, %v2779_v34  ;;  %v3895_v34 = vld [vmem:[%s6253_s0 + $0x2e8] sm:$0xff] }
 0x177   :  { %v2810_v63 = vmax.f32 %v2481_v17, 0.0  ;;  %3797 = vmatmul.msk.bf16.gmra.mxu3 %vm1909_vm0, %v3895_v34  ;;  %v363_v34 = vld [vmem:[%s6251_s2 + $0x480] sm:$0xff] }
 0x178   :  { %3124 = vst.msk [vmem:[%s6254_s3 + $0x70] sm:$0xf] %vm3095_vm1, %v2927_v13  ;;  %v5305_v43 = vpop.f32.mrf.mxu2 }
 0x179   :  { %3172 = vst.msk [vmem:[%s6254_s3 + $0x130] sm:$0xf] %vm3095_vm1, %v2975_v49  ;;  %v3006_v56 = vpack.c.bf16 %v2810_v63, %v2810_v63  ;;  %v2285_v10 = vpop.f32.mrf.mxu0  ;;  %v2405_v23 = vpop.f32.mrf.mxu1 }
 0x17a   :  { %v2286_v28 = vadd.f32 %v2285_v10, %v4342_v18  ;;  %v2406_v61 = vadd.f32 %v2405_v23, %v4915_v9  ;;  %1132 = vperm.xlu2 %3919, %v362_v40  }
 0x17b   :  { %3203 = vst.msk [vmem:[%s6254_s3 + $0x1ac] sm:$0xf] %vm3095_vm1, %v3006_v56  ;;  %1127 = vperm.xlu1 %3918, %v361_v12   ;;  %1122 = vperm.xlu0 %3917, %v360_v52   ;;  %v365_v12 = vld [vmem:[%s6251_s2 + $0x490] sm:$0xff]  ;;  %v3825_v52 = vld [vmem:[%s6253_s0 + $0xb8] sm:$0xff] }
 0x17c   :  { %v2732_v17 = vmax.f32 %v2286_v28, 0.0  ;;  %v2780_v13 = vmax.f32 %v2406_v61, 0.0  ;;  %v968_v49 = vpop.permute.xlu2 %967  ;;  %v5339_v56 = vpop.f32.mrf.mxu3  ;;  %v364_v61 = vld [vmem:[%s6251_s2 + $0x488] sm:$0xff] }
 0x17d   :  { %v2489_v18 = vadd.f32 %v4691_v27, %v968_v49  ;;  %v918_v9 = vpop.permute.xlu1 %917  ;;  %v913_v63 = vpop.permute.xlu0 %912  ;;  %v3849_v27 = vld [vmem:[%s6253_s0 + $0x178] sm:$0xff] }
 0x17e   :  { %v2928_v40 = vpack.c.bf16 %v2732_v17, %v2732_v17  ;;  %v2976_v10 = vpack.c.bf16 %v2780_v13, %v2780_v13  ;;  %v2464_v23 = vadd.f32 %v4356_v24, %v918_v9  ;;  %v2461_v60 = vadd.f32 %v4323_v7, %v913_v63 }
 0x17f   :  { %v2813_v59 = vmax.f32 %v2489_v18, 0.0 }
 0x180   :  { %3125 = vst.msk [vmem:[%s6254_s3 + $0x74] sm:$0xf] %vm3095_vm1, %v2928_v40  ;;  %v2803_v7 = vmax.f32 %v2464_v23, 0.0  ;;  %v2802_v24 = vmax.f32 %v2461_v60, 0.0  ;;  %v5345_v28 = vpop.f32.mrf.mxu2  ;;  %v3874_v60 = vld [vmem:[%s6253_s0 + $0x240] sm:$0xff] }
 0x181   :  { %3173 = vst.msk [vmem:[%s6254_s3 + $0x134] sm:$0xf] %vm3095_vm1, %v2976_v10  ;;  %v3009_v17 = vpack.c.bf16 %v2813_v59, %v2813_v59  ;;  %v2288_v13 = vpop.f32.mrf.mxu0  ;;  %v2408_v49 = vpop.f32.mrf.mxu1 }
 0x182   :  { %v2999_v18 = vpack.c.bf16 %v2803_v7, %v2803_v7  ;;  %v2998_v9 = vpack.c.bf16 %v2802_v24, %v2802_v24  ;;  %v2289_v63 = vadd.f32 %v2288_v13, %v4475_v48  ;;  %v2409_v40 = vadd.f32 %v2408_v49, %v5064_v36  ;;  %1147 = vperm.xlu2 %3919, %v365_v12  }
 0x183   :  { %3206 = vst.msk [vmem:[%s6254_s3 + $0x1b8] sm:$0xf] %vm3095_vm1, %v3009_v17  ;;  %1142 = vperm.xlu1 %3918, %v364_v61   ;;  %1137 = vperm.xlu0 %3917, %v363_v34  }
 0x184   :  { %3196 = vst.msk [vmem:[%s6254_s3 + $0x190] sm:$0xf] %vm3095_vm1, %v2999_v18  ;;  %v2733_v59 = vmax.f32 %v2289_v63, 0.0  ;;  %v2781_v10 = vmax.f32 %v2409_v40, 0.0  ;;  %3727 = vmatmul.msk.bf16.gmra.mxu0 %vm1909_vm0, %v3825_v52  ;;  %3751 = vmatmul.msk.bf16.gmra.mxu1 %vm1909_vm0, %v3849_v27  ;;  %v983_v48 = vpop.permute.xlu2 %982  ;;  %v368_v27 = vld [vmem:[%s6251_s2 + $0x4a8] sm:$0xff]  ;;  %v5383_v17 = vpop.f32.mrf.mxu3 }
 0x185   :  { %3195 = vst.msk [vmem:[%s6254_s3 + $0x18c] sm:$0xf] %vm3095_vm1, %v2998_v9  ;;  %3776 = vmatmul.msk.bf16.gmra.mxu2 %vm1909_vm0, %v3874_v60  ;;  %v2496_v36 = vadd.f32 %v4817_v4, %v983_v48  ;;  %v933_v23 = vpop.permute.xlu1 %932  ;;  %v928_v12 = vpop.permute.xlu0 %927  ;;  %v3896_v48 = vld [vmem:[%s6253_s0 + $0x2f0] sm:$0xff] }
 0x186   :  { %v2929_v7 = vpack.c.bf16 %v2733_v59, %v2733_v59  ;;  %v2977_v24 = vpack.c.bf16 %v2781_v10, %v2781_v10  ;;  %v2471_v61 = vadd.f32 %v4451_v26, %v933_v23  ;;  %v2469_v52 = vadd.f32 %v4420_v3, %v928_v12  ;;  %v367_v3 = vld [vmem:[%s6251_s2 + $0x4a0] sm:$0xff]  ;;  %v366_v26 = vld [vmem:[%s6251_s2 + $0x498] sm:$0xff] }
 0x187   :  { %v2816_v34 = vmax.f32 %v2496_v36, 0.0  ;;  %3798 = vmatmul.msk.bf16.gmra.mxu3 %vm1909_vm0, %v3896_v48 }
 0x188   :  { %3126 = vst.msk [vmem:[%s6254_s3 + $0x78] sm:$0xf] %vm3095_vm1, %v2929_v7  ;;  %v2806_v4 = vmax.f32 %v2471_v61, 0.0  ;;  %v2805_v13 = vmax.f32 %v2469_v52, 0.0  ;;  %v5389_v49 = vpop.f32.mrf.mxu2 }
 0x189   :  { %3174 = vst.msk [vmem:[%s6254_s3 + $0x138] sm:$0xf] %vm3095_vm1, %v2977_v24  ;;  %v3012_v60 = vpack.c.bf16 %v2816_v34, %v2816_v34  ;;  %v2290_v18 = vpop.f32.mrf.mxu0  ;;  %v2410_v9 = vpop.f32.mrf.mxu1 }
 0x18a   :  { %v3002_v63 = vpack.c.bf16 %v2806_v4, %v2806_v4  ;;  %v3001_v40 = vpack.c.bf16 %v2805_v13, %v2805_v13  ;;  %v2291_v59 = vadd.f32 %v2290_v18, %v4473_v47  ;;  %v2411_v10 = vadd.f32 %v2410_v9, %v5062_v45  ;;  %1162 = vperm.xlu2 %3919, %v368_v27   ;;  %v371_v4 = vld [vmem:[%s6251_s2 + $0x4c0] sm:$0xff] }
 0x18b   :  { %3209 = vst.msk [vmem:[%s6254_s3 + $0x1c4] sm:$0xf] %vm3095_vm1, %v3012_v60  ;;  %1157 = vperm.xlu1 %3918, %v367_v3   ;;  %1152 = vperm.xlu0 %3917, %v366_v26   ;;  %v3850_v13 = vld [vmem:[%s6253_s0 + $0x180] sm:$0xff]  ;;  %v369_v60 = vld [vmem:[%s6251_s2 + $0x4b0] sm:$0xff] }
 0x18c   :  { %3199 = vst.msk [vmem:[%s6254_s3 + $0x19c] sm:$0xf] %vm3095_vm1, %v3002_v63  ;;  %v2734_v47 = vmax.f32 %v2291_v59, 0.0  ;;  %v2782_v36 = vmax.f32 %v2411_v10, 0.0  ;;  %v998_v45 = vpop.permute.xlu2 %997  ;;  %v5428_v3 = vpop.f32.mrf.mxu3 }
 0x18d   :  { %3198 = vst.msk [vmem:[%s6254_s3 + $0x198] sm:$0xf] %vm3095_vm1, %v3001_v40  ;;  %v2504_v23 = vadd.f32 %v4931_v51, %v998_v45  ;;  %v948_v12 = vpop.permute.xlu1 %947  ;;  %v943_v7 = vpop.permute.xlu0 %942  ;;  %v3875_v40 = vld [vmem:[%s6253_s0 + $0x248] sm:$0xff] }
 0x18e   :  { %v2930_v24 = vpack.c.bf16 %v2734_v47, %v2734_v47  ;;  %v2978_v61 = vpack.c.bf16 %v2782_v36, %v2782_v36  ;;  %v2479_v52 = vadd.f32 %v4552_v1, %v948_v12  ;;  %v2476_v34 = vadd.f32 %v4517_v32, %v943_v7  ;;  %v370_v32 = vld [vmem:[%s6251_s2 + $0x4b8] sm:$0xff] }
 0x18f   :  { %v2819_v27 = vmax.f32 %v2504_v23, 0.0 }
 0x190   :  { %3127 = vst.msk [vmem:[%s6254_s3 + $0x7c] sm:$0xf] %vm3095_vm1, %v2930_v24  ;;  %v2809_v51 = vmax.f32 %v2479_v52, 0.0  ;;  %v2808_v1 = vmax.f32 %v2476_v34, 0.0  ;;  %v5434_v26 = vpop.f32.mrf.mxu2 }
 0x191   :  { %3175 = vst.msk [vmem:[%s6254_s3 + $0x13c] sm:$0xf] %vm3095_vm1, %v2978_v61  ;;  %v3015_v18 = vpack.c.bf16 %v2819_v27, %v2819_v27  ;;  %v2293_v9 = vpop.f32.mrf.mxu0  ;;  %v2413_v63 = vpop.f32.mrf.mxu1  ;;  %v374_v27 = vld [vmem:[%s6251_s2 + $0x4d8] sm:$0xff] }
 0x192   :  { %v3005_v59 = vpack.c.bf16 %v2809_v51, %v2809_v51  ;;  %v3004_v10 = vpack.c.bf16 %v2808_v1, %v2808_v1  ;;  %v2294_v48 = vadd.f32 %v2293_v9, %v4370_v35  ;;  %v2414_v47 = vadd.f32 %v2413_v63, %v4947_v41  ;;  %1177 = vperm.xlu2 %3919, %v371_v4  }
 0x193   :  { %3212 = vst.msk [vmem:[%s6254_s3 + $0x1d0] sm:$0xf] %vm3095_vm1, %v3015_v18  ;;  %1172 = vperm.xlu1 %3918, %v370_v32   ;;  %1167 = vperm.xlu0 %3917, %v369_v60  }
 0x194   :  { %3202 = vst.msk [vmem:[%s6254_s3 + $0x1a8] sm:$0xf] %vm3095_vm1, %v3005_v59  ;;  %v2735_v36 = vmax.f32 %v2294_v48, 0.0  ;;  %v2783_v45 = vmax.f32 %v2414_v47, 0.0  ;;  %3752 = vmatmul.msk.bf16.gmra.mxu1 %vm1909_vm0, %v3850_v13  ;;  %v1013_v35 = vpop.permute.xlu2 %1012  ;;  %v5471_v4 = vpop.f32.mrf.mxu3  ;;  %v3897_v59 = vld [vmem:[%s6253_s0 + $0x2f8] sm:$0xff] }
 0x195   :  { %3201 = vst.msk [vmem:[%s6254_s3 + $0x1a4] sm:$0xf] %vm3095_vm1, %v3004_v10  ;;  %3777 = vmatmul.msk.bf16.gmra.mxu2 %vm1909_vm0, %v3875_v40  ;;  %v2511_v41 = vadd.f32 %v5037_v53, %v1013_v35  ;;  %v963_v23 = vpop.permute.xlu1 %962  ;;  %v958_v12 = vpop.permute.xlu0 %957 }
 0x196   :  { %v2931_v7 = vpack.c.bf16 %v2735_v36, %v2735_v36  ;;  %v2979_v24 = vpack.c.bf16 %v2783_v45, %v2783_v45  ;;  %v2486_v61 = vadd.f32 %v4656_v44, %v963_v23  ;;  %v2484_v52 = vadd.f32 %v4622_v6, %v958_v12  ;;  %v373_v6 = vld [vmem:[%s6251_s2 + $0x4d0] sm:$0xff]  ;;  %v372_v44 = vld [vmem:[%s6251_s2 + $0x4c8] sm:$0xff] }
 0x197   :  { %v2822_v34 = vmax.f32 %v2511_v41, 0.0  ;;  %3799 = vmatmul.msk.bf16.gmra.mxu3 %vm1909_vm0, %v3897_v59 }
 0x198   :  { %3128 = vst.msk [vmem:[%s6254_s3 + $0x80] sm:$0xf] %vm3095_vm1, %v2931_v7  ;;  %v2812_v53 = vmax.f32 %v2486_v61, 0.0  ;;  %v2811_v13 = vmax.f32 %v2484_v52, 0.0  ;;  %v5477_v51 = vpop.f32.mrf.mxu2  ;;  %v377_v7 = vld [vmem:[%s6251_s2 + $0x4f0] sm:$0xff] }
 0x199   :  { %3176 = vst.msk [vmem:[%s6254_s3 + $0x140] sm:$0xf] %vm3095_vm1, %v2979_v24  ;;  %v3018_v1 = vpack.c.bf16 %v2822_v34, %v2822_v34  ;;  %v2295_v32 = vpop.f32.mrf.mxu0  ;;  %v2415_v60 = vpop.f32.mrf.mxu1 }
 0x19a   :  { %v3008_v18 = vpack.c.bf16 %v2812_v53, %v2812_v53  ;;  %v3007_v9 = vpack.c.bf16 %v2811_v13, %v2811_v13  ;;  %v2296_v63 = vadd.f32 %v2295_v32, %v4503_v14  ;;  %v2416_v40 = vadd.f32 %v2415_v60, %v5097_v22  ;;  %1192 = vperm.xlu2 %3919, %v374_v27  }
 0x19b   :  { %3215 = vst.msk [vmem:[%s6254_s3 + $0x1dc] sm:$0xf] %vm3095_vm1, %v3018_v1  ;;  %1187 = vperm.xlu1 %3918, %v373_v6   ;;  %1182 = vperm.xlu0 %3917, %v372_v44  }
 0x19c   :  { %3205 = vst.msk [vmem:[%s6254_s3 + $0x1b4] sm:$0xf] %vm3095_vm1, %v3008_v18  ;;  %v2736_v14 = vmax.f32 %v2296_v63, 0.0  ;;  %v2784_v10 = vmax.f32 %v2416_v40, 0.0  ;;  %v1028_v22 = vpop.permute.xlu2 %1027  ;;  %v5513_v24 = vpop.f32.mrf.mxu3 }
 0x19d   :  { %3204 = vst.msk [vmem:[%s6254_s3 + $0x1b0] sm:$0xf] %vm3095_vm1, %v3007_v9  ;;  %v2519_v48 = vadd.f32 %v5149_v19, %v1028_v22  ;;  %v978_v47 = vpop.permute.xlu1 %977  ;;  %v973_v36 = vpop.permute.xlu0 %972  ;;  %v380_v22 = vld [vmem:[%s6251_s2 + $0x508] sm:$0xff] }
 0x19e   :  { %v2932_v45 = vpack.c.bf16 %v2736_v14, %v2736_v14  ;;  %v2980_v35 = vpack.c.bf16 %v2784_v10, %v2784_v10  ;;  %v2494_v41 = vadd.f32 %v4771_v11, %v978_v47  ;;  %v2491_v23 = vadd.f32 %v4735_v8, %v973_v36  ;;  %v376_v8 = vld [vmem:[%s6251_s2 + $0x4e8] sm:$0xff]  ;;  %v375_v11 = vld [vmem:[%s6251_s2 + $0x4e0] sm:$0xff] }
 0x19f   :  { %v2825_v12 = vmax.f32 %v2519_v48, 0.0 }
 0x1a0   :  { %3129 = vst.msk [vmem:[%s6254_s3 + $0x84] sm:$0xf] %vm3095_vm1, %v2932_v45  ;;  %v2815_v19 = vmax.f32 %v2494_v41, 0.0  ;;  %v2814_v61 = vmax.f32 %v2491_v23, 0.0  ;;  %v5519_v52 = vpop.f32.mrf.mxu2 }
 0x1a1   :  { %3177 = vst.msk [vmem:[%s6254_s3 + $0x144] sm:$0xf] %vm3095_vm1, %v2980_v35  ;;  %v3021_v34 = vpack.c.bf16 %v2825_v12, %v2825_v12  ;;  %v2298_v27 = vpop.f32.mrf.mxu0  ;;  %v2418_v53 = vpop.f32.mrf.mxu1 }
 0x1a2   :  { %v3011_v13 = vpack.c.bf16 %v2815_v19, %v2815_v19  ;;  %v3010_v6 = vpack.c.bf16 %v2814_v61, %v2814_v61  ;;  %v2299_v44 = vadd.f32 %v2298_v27, %v4501_v15  ;;  %v2419_v1 = vadd.f32 %v2418_v53, %v5095_v50  ;;  %1207 = vperm.xlu2 %3919, %v377_v7   ;;  %v3898_v61 = vld [vmem:[%s6253_s0 + $0x300] sm:$0xff] }
 0x1a3   :  { %3218 = vst.msk [vmem:[%s6254_s3 + $0x1e8] sm:$0xf] %vm3095_vm1, %v3021_v34  ;;  %1202 = vperm.xlu1 %3918, %v376_v8   ;;  %1197 = vperm.xlu0 %3917, %v375_v11  }
 0x1a4   :  { %3208 = vst.msk [vmem:[%s6254_s3 + $0x1c0] sm:$0xf] %vm3095_vm1, %v3011_v13  ;;  %v2737_v32 = vmax.f32 %v2299_v44, 0.0  ;;  %v2785_v60 = vmax.f32 %v2419_v1, 0.0  ;;  %v1043_v18 = vpop.permute.xlu2 %1042  ;;  %v5551_v48 = vpop.f32.mrf.mxu3 }
 0x1a5   :  { %3207 = vst.msk [vmem:[%s6254_s3 + $0x1bc] sm:$0xf] %vm3095_vm1, %v3010_v6  ;;  %v2526_v15 = vadd.f32 %v5264_v55, %v1043_v18  ;;  %v993_v50 = vpop.permute.xlu1 %992  ;;  %v988_v9 = vpop.permute.xlu0 %987 }
 0x1a6   :  { %v2933_v63 = vpack.c.bf16 %v2737_v32, %v2737_v32  ;;  %v2981_v40 = vpack.c.bf16 %v2785_v60, %v2785_v60  ;;  %v2501_v59 = vadd.f32 %v4893_v38, %v993_v50  ;;  %v2499_v14 = vadd.f32 %v4853_v25, %v988_v9  ;;  %v379_v25 = vld [vmem:[%s6251_s2 + $0x500] sm:$0xff]  ;;  %v378_v38 = vld [vmem:[%s6251_s2 + $0x4f8] sm:$0xff] }
 0x1a7   :  { %v2828_v10 = vmax.f32 %v2526_v15, 0.0  ;;  %3800 = vmatmul.msk.bf16.gmra.mxu3 %vm1909_vm0, %v3898_v61  ;;  %v383_v32 = vld [vmem:[%s6251_s2 + $0x520] sm:$0xff] }
 0x1a8   :  { %3130 = vst.msk [vmem:[%s6254_s3 + $0x88] sm:$0xf] %vm3095_vm1, %v2933_v63  ;;  %v2818_v55 = vmax.f32 %v2501_v59, 0.0  ;;  %v2817_v47 = vmax.f32 %v2499_v14, 0.0  ;;  %v5557_v36 = vpop.f32.mrf.mxu2 }
 0x1a9   :  { %3178 = vst.msk [vmem:[%s6254_s3 + $0x148] sm:$0xf] %vm3095_vm1, %v2981_v40  ;;  %v3024_v45 = vpack.c.bf16 %v2828_v10, %v2828_v10  ;;  %v2300_v35 = vpop.f32.mrf.mxu0  ;;  %v2420_v41 = vpop.f32.mrf.mxu1 }
 0x1aa   :  { %v3014_v23 = vpack.c.bf16 %v2818_v55, %v2818_v55  ;;  %v3013_v12 = vpack.c.bf16 %v2817_v47, %v2817_v47  ;;  %v2301_v7 = vadd.f32 %v2300_v35, %v4406_v57  ;;  %v2421_v19 = vadd.f32 %v2420_v41, %v4986_v62  ;;  %1222 = vperm.xlu2 %3919, %v380_v22  }
 0x1ab   :  { %3221 = vst.msk [vmem:[%s6254_s3 + $0x1f4] sm:$0xf] %vm3095_vm1, %v3024_v45  ;;  %1217 = vperm.xlu1 %3918, %v379_v25   ;;  %1212 = vperm.xlu0 %3917, %v378_v38  }
 0x1ac   :  { %3211 = vst.msk [vmem:[%s6254_s3 + $0x1cc] sm:$0xf] %vm3095_vm1, %v3014_v23  ;;  %v2738_v57 = vmax.f32 %v2301_v7, 0.0  ;;  %v2786_v8 = vmax.f32 %v2421_v19, 0.0  ;;  %v1058_v62 = vpop.permute.xlu2 %1057  ;;  %v5593_v60 = vpop.f32.mrf.mxu3 }
 0x1ad   :  { %3210 = vst.msk [vmem:[%s6254_s3 + $0x1c8] sm:$0xf] %vm3095_vm1, %v3013_v12  ;;  %v2534_v11 = vadd.f32 %v5389_v49, %v1058_v62  ;;  %v1008_v34 = vpop.permute.xlu1 %1007  ;;  %v1003_v27 = vpop.permute.xlu0 %1002  ;;  %v386_v12 = vld [vmem:[%s6251_s2 + $0x538] sm:$0xff] }
 0x1ae   :  { %v2934_v53 = vpack.c.bf16 %v2738_v57, %v2738_v57  ;;  %v2982_v13 = vpack.c.bf16 %v2786_v8, %v2786_v8  ;;  %v2509_v6 = vadd.f32 %v5002_v33, %v1008_v34  ;;  %v2506_v44 = vadd.f32 %v4964_v21, %v1003_v27  ;;  %v382_v21 = vld [vmem:[%s6251_s2 + $0x518] sm:$0xff]  ;;  %v381_v33 = vld [vmem:[%s6251_s2 + $0x510] sm:$0xff]  ;;  %v6293_v27 = vld [vmem:[#allocation7_spill] sm:$0xff] }
 0x1af   :  { %v2831_v1 = vmax.f32 %v2534_v11, 0.0 }
 0x1b0   :  { %3131 = vst.msk [vmem:[%s6254_s3 + $0x8c] sm:$0xf] %vm3095_vm1, %v2934_v53  ;;  %v2821_v49 = vmax.f32 %v2509_v6, 0.0  ;;  %v2820_v18 = vmax.f32 %v2506_v44, 0.0  ;;  %v5599_v15 = vpop.f32.mrf.mxu2  ;;  %v3899_v6 = vld [vmem:[%s6253_s0 + $0x308] sm:$0xff] }
 0x1b1   :  { %3179 = vst.msk [vmem:[%s6254_s3 + $0x14c] sm:$0xf] %vm3095_vm1, %v2982_v13  ;;  %v3027_v50 = vpack.c.bf16 %v2831_v1, %v2831_v1  ;;  %v2303_v9 = vpop.f32.mrf.mxu0  ;;  %v2423_v63 = vpop.f32.mrf.mxu1 }
 0x1b2   :  { %v3017_v40 = vpack.c.bf16 %v2821_v49, %v2821_v49  ;;  %v3016_v59 = vpack.c.bf16 %v2820_v18, %v2820_v18  ;;  %v2304_v14 = vadd.f32 %v2303_v9, %v4541_v5  ;;  %v2424_v10 = vadd.f32 %v2423_v63, %v5138_v58  ;;  %1237 = vperm.xlu2 %3919, %v383_v32  }
 0x1b3   :  { %3224 = vst.msk [vmem:[%s6254_s3 + $0x200] sm:$0xf] %vm3095_vm1, %v3027_v50  ;;  %1232 = vperm.xlu1 %3918, %v382_v21   ;;  %1227 = vperm.xlu0 %3917, %v381_v33  }
 0x1b4   :  { %3214 = vst.msk [vmem:[%s6254_s3 + $0x1d8] sm:$0xf] %vm3095_vm1, %v3017_v40  ;;  %v2739_v22 = vmax.f32 %v2304_v14, 0.0  ;;  %v2787_v55 = vmax.f32 %v2424_v10, 0.0  ;;  %v1073_v47 = vpop.permute.xlu2 %1072  ;;  %v5631_v7 = vpop.f32.mrf.mxu3  ;;  %v389_v40 = vld [vmem:[%s6251_s2 + $0x550] sm:$0xff] }
 0x1b5   :  { %3213 = vst.msk [vmem:[%s6254_s3 + $0x1d4] sm:$0xf] %vm3095_vm1, %v3016_v59  ;;  %v2541_v58 = vadd.f32 %v5519_v52, %v1073_v47  ;;  %v1023_v5 = vpop.permute.xlu1 %1022  ;;  %v1018_v25 = vpop.permute.xlu0 %1017 }
 0x1b6   :  { %v2935_v38 = vpack.c.bf16 %v2739_v22, %v2739_v22  ;;  %v2983_v45 = vpack.c.bf16 %v2787_v55, %v2787_v55  ;;  %v2516_v35 = vadd.f32 %v5111_v46, %v1023_v5  ;;  %v2514_v41 = vadd.f32 %v5075_v20, %v1018_v25  ;;  %v385_v46 = vld [vmem:[%s6251_s2 + $0x530] sm:$0xff]  ;;  %v384_v20 = vld [vmem:[%s6251_s2 + $0x528] sm:$0xff] }
 0x1b7   :  { %v2834_v23 = vmax.f32 %v2541_v58, 0.0  ;;  %3801 = vmatmul.msk.bf16.gmra.mxu3 %vm1909_vm0, %v3899_v6 }
 0x1b8   :  { %3132 = vst.msk [vmem:[%s6254_s3 + $0x90] sm:$0xf] %vm3095_vm1, %v2935_v38  ;;  %v2824_v52 = vmax.f32 %v2516_v35, 0.0  ;;  %v2823_v19 = vmax.f32 %v2514_v41, 0.0  ;;  %v2548_v61 = vpop.f32.mrf.mxu2  ;;  %v6294_v38 = vld [vmem:[#allocation2_spill] sm:$0xff]  ;;  %v6295_v35 = vld [vmem:[#allocation27_spill] sm:$0xff] }
 0x1b9   :  { %3180 = vst.msk [vmem:[%s6254_s3 + $0x150] sm:$0xf] %vm3095_vm1, %v2983_v45  ;;  %v3030_v57 = vpack.c.bf16 %v2834_v23, %v2834_v23  ;;  %v2305_v8 = vpop.f32.mrf.mxu0  ;;  %v2425_v62 = vpop.f32.mrf.mxu1 }
 0x1ba   :  { %v3020_v11 = vpack.c.bf16 %v2824_v52, %v2824_v52  ;;  %v3019_v34 = vpack.c.bf16 %v2823_v19, %v2823_v19  ;;  %v2306_v53 = vadd.f32 %v2305_v8, %v6293_v27  ;;  %v2426_v13 = vadd.f32 %v2425_v62, %v5136_v16  ;;  %1252 = vperm.xlu2 %3919, %v386_v12   ;;  %v392_v62 = vld [vmem:[%s6251_s2 + $0x568] sm:$0xff] }
 0x1bb   :  { %3227 = vst.msk [vmem:[%s6254_s3 + $0x20c] sm:$0xf] %vm3095_vm1, %v3030_v57  ;;  %1247 = vperm.xlu1 %3918, %v385_v46   ;;  %1242 = vperm.xlu0 %3917, %v384_v20  }
 0x1bc   :  { %3217 = vst.msk [vmem:[%s6254_s3 + $0x1e4] sm:$0xf] %vm3095_vm1, %v3020_v11  ;;  %v2740_v44 = vmax.f32 %v2306_v53, 0.0  ;;  %v2788_v1 = vmax.f32 %v2426_v13, 0.0  ;;  %v1088_v16 = vpop.permute.xlu2 %1087  ;;  %v5670_v59 = vpop.f32.mrf.mxu3 }
 0x1bd   :  { %3216 = vst.msk [vmem:[%s6254_s3 + $0x1e0] sm:$0xf] %vm3095_vm1, %v3019_v34  ;;  %v2549_v32 = vadd.f32 %v2548_v61, %v1088_v16  ;;  %v1038_v49 = vpop.permute.xlu1 %1037  ;;  %v1033_v18 = vpop.permute.xlu0 %1032  ;;  %v6296_v16 = vld [vmem:[#allocation10_spill] sm:$0xff] }
 0x1be   :  { %v2936_v21 = vpack.c.bf16 %v2740_v44, %v2740_v44  ;;  %v2984_v33 = vpack.c.bf16 %v2788_v1, %v2788_v1  ;;  %v2524_v50 = vadd.f32 %v5225_v2, %v1038_v49  ;;  %v2521_v9 = vadd.f32 %v5184_v54, %v1033_v18  ;;  %v388_v54 = vld [vmem:[%s6251_s2 + $0x548] sm:$0xff]  ;;  %v387_v2 = vld [vmem:[%s6251_s2 + $0x540] sm:$0xff] }
 0x1bf   :  { %v2837_v63 = vmax.f32 %v2549_v32, 0.0 }
 0x1c0   :  { %3133 = vst.msk [vmem:[%s6254_s3 + $0x94] sm:$0xf] %vm3095_vm1, %v2936_v21  ;;  %v2827_v14 = vmax.f32 %v2524_v50, 0.0  ;;  %v2826_v10 = vmax.f32 %v2521_v9, 0.0  ;;  %v5676_v22 = vpop.f32.mrf.mxu2 }
 0x1c1   :  { %3181 = vst.msk [vmem:[%s6254_s3 + $0x154] sm:$0xf] %vm3095_vm1, %v2984_v33  ;;  %v3033_v55 = vpack.c.bf16 %v2837_v63, %v2837_v63  ;;  %v2308_v47 = vpop.f32.mrf.mxu0  ;;  %v2428_v58 = vpop.f32.mrf.mxu1 }
 0x1c2   :  { %v3023_v5 = vpack.c.bf16 %v2827_v14, %v2827_v14  ;;  %v3022_v25 = vpack.c.bf16 %v2826_v10, %v2826_v10  ;;  %v2309_v45 = vadd.f32 %v2308_v47, %v6294_v38  ;;  %v2429_v41 = vadd.f32 %v2428_v58, %v6295_v35  ;;  %1267 = vperm.xlu2 %3919, %v389_v40   ;;  %v395_v10 = vld [vmem:[%s6251_s2 + $0x580] sm:$0xff]  ;;  %v6297_v35 = vld [vmem:[#allocation9_spill] sm:$0xff] }
 0x1c3   :  { %3230 = vst.msk [vmem:[%s6254_s3 + $0x218] sm:$0xf] %vm3095_vm1, %v3033_v55  ;;  %1262 = vperm.xlu1 %3918, %v388_v54   ;;  %1257 = vperm.xlu0 %3917, %v387_v2  }
 0x1c4   :  { %3220 = vst.msk [vmem:[%s6254_s3 + $0x1f0] sm:$0xf] %vm3095_vm1, %v3023_v5  ;;  %v2741_v23 = vmax.f32 %v2309_v45, 0.0  ;;  %v2789_v12 = vmax.f32 %v2429_v41, 0.0  ;;  %v1103_v52 = vpop.permute.xlu2 %1102  ;;  %v5707_v11 = vpop.f32.mrf.mxu3 }
 0x1c5   :  { %3219 = vst.msk [vmem:[%s6254_s3 + $0x1ec] sm:$0xf] %vm3095_vm1, %v3022_v25  ;;  %v1053_v19 = vpop.permute.xlu1 %1052  ;;  %v1048_v61 = vpop.permute.xlu0 %1047 }
 0x1c6   :  { %v2937_v46 = vpack.c.bf16 %v2741_v23, %v2741_v23  ;;  %v2985_v20 = vpack.c.bf16 %v2789_v12, %v2789_v12  ;;  %v2531_v57 = vadd.f32 %v5345_v28, %v1053_v19  ;;  %v2529_v8 = vadd.f32 %v5305_v43, %v1048_v61  ;;  %v391_v28 = vld [vmem:[%s6251_s2 + $0x560] sm:$0xff]  ;;  %v390_v43 = vld [vmem:[%s6251_s2 + $0x558] sm:$0xff] }
 0x1c8   :  { %3134 = vst.msk [vmem:[%s6254_s3 + $0x98] sm:$0xf] %vm3095_vm1, %v2937_v46  ;;  %v2830_v34 = vmax.f32 %v2531_v57, 0.0  ;;  %v2829_v27 = vmax.f32 %v2529_v8, 0.0  ;;  %v5713_v53 = vpop.f32.mrf.mxu2 }
 0x1c9   :  { %3182 = vst.msk [vmem:[%s6254_s3 + $0x158] sm:$0xf] %vm3095_vm1, %v2985_v20  ;;  %v2310_v13 = vpop.f32.mrf.mxu0  ;;  %v2430_v6 = vpop.f32.mrf.mxu1 }
 0x1ca   :  { %v3026_v44 = vpack.c.bf16 %v2830_v34, %v2830_v34  ;;  %v3025_v1 = vpack.c.bf16 %v2829_v27, %v2829_v27  ;;  %v2311_v32 = vadd.f32 %v2310_v13, %v6296_v16  ;;  %v2431_v49 = vadd.f32 %v2430_v6, %v5170_v0  ;;  %1282 = vperm.xlu2 %3919, %v392_v62   ;;  %v398_v27 = vld [vmem:[%s6251_s2 + $0x598] sm:$0xff] }
 0x1cb   :  { %1277 = vperm.xlu1 %3918, %v391_v28   ;;  %1272 = vperm.xlu0 %3917, %v390_v43  }
 0x1cc   :  { %3223 = vst.msk [vmem:[%s6254_s3 + $0x1fc] sm:$0xf] %vm3095_vm1, %v3026_v44  ;;  %v2742_v18 = vmax.f32 %v2311_v32, 0.0  ;;  %v2790_v21 = vmax.f32 %v2431_v49, 0.0  ;;  %v5731_v33 = vpop.permute.xlu2 %1117  ;;  %v5742_v54 = vpop.f32.mrf.mxu3  ;;  %v6298_v49 = vld [vmem:[#allocation3_spill] sm:$0xff] }
 0x1cd   :  { %3222 = vst.msk [vmem:[%s6254_s3 + $0x1f8] sm:$0xf] %vm3095_vm1, %v3025_v1  ;;  %v1068_v50 = vpop.permute.xlu1 %1067  ;;  %v1063_v9 = vpop.permute.xlu0 %1062 }
 0x1ce   :  { %v2938_v0 = vpack.c.bf16 %v2742_v18, %v2742_v18  ;;  %v2986_v63 = vpack.c.bf16 %v2790_v21, %v2790_v21  ;;  %v2539_v40 = vadd.f32 %v5477_v51, %v1068_v50  ;;  %v2536_v14 = vadd.f32 %v5434_v26, %v1063_v9  ;;  %v394_v51 = vld [vmem:[%s6251_s2 + $0x578] sm:$0xff]  ;;  %v393_v26 = vld [vmem:[%s6251_s2 + $0x570] sm:$0xff] }
 0x1cf   :  { %v6299_v21 = vld [vmem:[#allocation29_spill] sm:$0xff] }
 0x1d0   :  { %3135 = vst.msk [vmem:[%s6254_s3 + $0x9c] sm:$0xf] %vm3095_vm1, %v2938_v0  ;;  %v2833_v2 = vmax.f32 %v2539_v40, 0.0  ;;  %v2832_v55 = vmax.f32 %v2536_v14, 0.0  ;;  %v2555_v47 = vpop.f32.mrf.mxu2 }
 0x1d1   :  { %3183 = vst.msk [vmem:[%s6254_s3 + $0x15c] sm:$0xf] %vm3095_vm1, %v2986_v63  ;;  %v2556_v58 = vadd.f32 %v2555_v47, %v1103_v52  ;;  %v2313_v5 = vpop.f32.mrf.mxu0  ;;  %v2433_v25 = vpop.f32.mrf.mxu1 }
 0x1d2   :  { %v3029_v38 = vpack.c.bf16 %v2833_v2, %v2833_v2  ;;  %v3028_v45 = vpack.c.bf16 %v2832_v55, %v2832_v55  ;;  %v2314_v41 = vadd.f32 %v2313_v5, %v6297_v35  ;;  %v2434_v23 = vadd.f32 %v2433_v25, %v5168_v42  ;;  %1297 = vperm.xlu2 %3919, %v395_v10   ;;  %v400_v25 = vld [vmem:[%s6251_s2 + $0x5a8] sm:$0xff] }
 0x1d3   :  { %v2840_v12 = vmax.f32 %v2556_v58, 0.0  ;;  %1292 = vperm.xlu1 %3918, %v394_v51   ;;  %1287 = vperm.xlu0 %3917, %v393_v26   ;;  %v401_v51 = vld [vmem:[%s6251_s2 + $0x5b0] sm:$0xff] }
 0x1d4   :  { %3226 = vst.msk [vmem:[%s6254_s3 + $0x208] sm:$0xf] %vm3095_vm1, %v3029_v38  ;;  %v2743_v19 = vmax.f32 %v2314_v41, 0.0  ;;  %v2791_v61 = vmax.f32 %v2434_v23, 0.0  ;;  %v5764_v52 = vpop.permute.xlu2 %1132  ;;  %v5789_v6 = vpop.f32.mrf.mxu3  ;;  %v6300_v41 = vld [vmem:[#allocation13_spill] sm:$0xff] }
 0x1d5   :  { %3225 = vst.msk [vmem:[%s6254_s3 + $0x204] sm:$0xf] %vm3095_vm1, %v3028_v45  ;;  %v3036_v46 = vpack.c.bf16 %v2840_v12, %v2840_v12  ;;  %v1083_v42 = vpop.permute.xlu1 %1082  ;;  %v1078_v20 = vpop.permute.xlu0 %1077 }
 0x1d6   :  { %v2939_v57 = vpack.c.bf16 %v2743_v19, %v2743_v19  ;;  %v2987_v8 = vpack.c.bf16 %v2791_v61, %v2791_v61  ;;  %v2546_v62 = vadd.f32 %v5599_v15, %v1083_v42  ;;  %v2544_v34 = vadd.f32 %v5557_v36, %v1078_v20  ;;  %v397_v36 = vld [vmem:[%s6251_s2 + $0x590] sm:$0xff]  ;;  %v396_v15 = vld [vmem:[%s6251_s2 + $0x588] sm:$0xff] }
 0x1d7   :  { %3233 = vst.msk [vmem:[%s6254_s3 + $0x224] sm:$0xf] %vm3095_vm1, %v3036_v46  ;;  %v6301_v20 = vld [vmem:[#allocation8_spill] sm:$0xff] }
 0x1d8   :  { %3136 = vst.msk [vmem:[%s6254_s3 + $0xa0] sm:$0xf] %vm3095_vm1, %v2939_v57  ;;  %v2836_v28 = vmax.f32 %v2546_v62, 0.0  ;;  %v2835_v43 = vmax.f32 %v2544_v34, 0.0  ;;  %v2558_v13 = vpop.f32.mrf.mxu2 }
 0x1d9   :  { %3184 = vst.msk [vmem:[%s6254_s3 + $0x160] sm:$0xf] %vm3095_vm1, %v2987_v8  ;;  %v2315_v44 = vpop.f32.mrf.mxu0  ;;  %v2435_v1 = vpop.f32.mrf.mxu1 }
 0x1da   :  { %v3032_v16 = vpack.c.bf16 %v2836_v28, %v2836_v28  ;;  %v3031_v32 = vpack.c.bf16 %v2835_v43, %v2835_v43  ;;  %v2316_v18 = vadd.f32 %v2315_v44, %v6298_v49  ;;  %v2436_v50 = vadd.f32 %v2435_v1, %v6299_v21  ;;  %1312 = vperm.xlu2 %3919, %v398_v27  }
 0x1db   :  { %1307 = vperm.xlu1 %3918, %v397_v36   ;;  %1302 = vperm.xlu0 %3917, %v396_v15   ;;  %v404_v36 = vld [vmem:[%s6251_s2 + $0x5c8] sm:$0xff] }
 0x1dc   :  { %3229 = vst.msk [vmem:[%s6254_s3 + $0x214] sm:$0xf] %vm3095_vm1, %v3032_v16  ;;  %v2744_v9 = vmax.f32 %v2316_v18, 0.0  ;;  %v2792_v0 = vmax.f32 %v2436_v50, 0.0  ;;  %v5801_v63 = vpop.permute.xlu2 %1147  ;;  %v5828_v19 = vpop.f32.mrf.mxu3  ;;  %v403_v16 = vld [vmem:[%s6251_s2 + $0x5c0] sm:$0xff] }
 0x1dd   :  { %3228 = vst.msk [vmem:[%s6254_s3 + $0x210] sm:$0xf] %vm3095_vm1, %v3031_v32  ;;  %v1098_v40 = vpop.permute.xlu1 %1097  ;;  %v1093_v14 = vpop.permute.xlu0 %1092 }
 0x1de   :  { %v2940_v10 = vpack.c.bf16 %v2744_v9, %v2744_v9  ;;  %v2988_v2 = vpack.c.bf16 %v2792_v0, %v2792_v0  ;;  %v2554_v55 = vadd.f32 %v5713_v53, %v1098_v40  ;;  %v2551_v47 = vadd.f32 %v5676_v22, %v1093_v14  ;;  %v399_v22 = vld [vmem:[%s6251_s2 + $0x5a0] sm:$0xff]  ;;  %v6302_v0 = vld [vmem:[#allocation12_spill] sm:$0xff] }
 0x1e0   :  { %3137 = vst.msk [vmem:[%s6254_s3 + $0xa4] sm:$0xf] %vm3095_vm1, %v2940_v10  ;;  %v2839_v26 = vmax.f32 %v2554_v55, 0.0  ;;  %v2838_v58 = vmax.f32 %v2551_v47, 0.0  ;;  %v2560_v5 = vpop.f32.mrf.mxu2 }
 0x1e1   :  { %3185 = vst.msk [vmem:[%s6254_s3 + $0x164] sm:$0xf] %vm3095_vm1, %v2988_v2  ;;  %v2318_v53 = vpop.f32.mrf.mxu0  ;;  %v2438_v38 = vpop.f32.mrf.mxu1 }
 0x1e2   :  { %v3035_v45 = vpack.c.bf16 %v2839_v26, %v2839_v26  ;;  %v3034_v35 = vpack.c.bf16 %v2838_v58, %v2838_v58  ;;  %v2319_v23 = vadd.f32 %v2318_v53, %v6300_v41  ;;  %v2439_v12 = vadd.f32 %v2438_v38, %v5214_v39  ;;  %1327 = vperm.xlu2 %3919, %v401_v51   ;;  %v6303_v51 = vld [vmem:[#allocation17_spill] sm:$0xff]  ;;  %v407_v38 = vld [vmem:[%s6251_s2 + $0x5e0] sm:$0xff]  ;;  %v405_v41 = vld [vmem:[%s6251_s2 + $0x5d0] sm:$0xff] }
 0x1e3   :  { %1322 = vperm.xlu1 %3918, %v400_v25   ;;  %1317 = vperm.xlu0 %3917, %v399_v22  }
 0x1e4   :  { %3232 = vst.msk [vmem:[%s6254_s3 + $0x220] sm:$0xf] %vm3095_vm1, %v3035_v45  ;;  %v2745_v61 = vmax.f32 %v2319_v23, 0.0  ;;  %v2793_v46 = vmax.f32 %v2439_v12, 0.0  ;;  %v1163_v42 = vpop.permute.xlu2 %1162  ;;  %v5867_v47 = vpop.f32.mrf.mxu3 }
 0x1e5   :  { %3231 = vst.msk [vmem:[%s6254_s3 + $0x21c] sm:$0xf] %vm3095_vm1, %v3034_v35  ;;  %v2586_v39 = vadd.f32 %v6301_v20, %v1163_v42  ;;  %v1113_v57 = vpop.permute.xlu1 %1112  ;;  %v1108_v8 = vpop.permute.xlu0 %1107  ;;  %v406_v35 = vld [vmem:[%s6251_s2 + $0x5d8] sm:$0xff]  ;;  %v6304_v42 = vld [vmem:[#allocation4_spill] sm:$0xff] }
 0x1e6   :  { %v2941_v62 = vpack.c.bf16 %v2745_v61, %v2745_v61  ;;  %v2989_v34 = vpack.c.bf16 %v2793_v46, %v2793_v46  ;;  %v2561_v27 = vadd.f32 %v2560_v5, %v1113_v57  ;;  %v2559_v28 = vadd.f32 %v2558_v13, %v1108_v8  ;;  %v402_v13 = vld [vmem:[%s6251_s2 + $0x5b8] sm:$0xff] }
 0x1e7   :  { %v2852_v43 = vmax.f32 %v2586_v39, 0.0  ;;  %v6305_v39 = vld [vmem:[#allocation31_spill] sm:$0xff] }
 0x1e8   :  { %3138 = vst.msk [vmem:[%s6254_s3 + $0xa8] sm:$0xf] %vm3095_vm1, %v2941_v62  ;;  %v2842_v15 = vmax.f32 %v2561_v27, 0.0  ;;  %v2841_v44 = vmax.f32 %v2559_v28, 0.0  ;;  %v2563_v1 = vpop.f32.mrf.mxu2 }
 0x1e9   :  { %3186 = vst.msk [vmem:[%s6254_s3 + $0x168] sm:$0xf] %vm3095_vm1, %v2989_v34  ;;  %v3048_v32 = vpack.c.bf16 %v2852_v43, %v2852_v43  ;;  %v2564_v49 = vadd.f32 %v2563_v1, %v5731_v33  ;;  %v2320_v18 = vpop.f32.mrf.mxu0  ;;  %v2440_v21 = vpop.f32.mrf.mxu1  ;;  %v6306_v43 = vld [vmem:[#allocation20_spill] sm:$0xff] }
 0x1ea   :  { %v3038_v50 = vpack.c.bf16 %v2842_v15, %v2842_v15  ;;  %v3037_v9 = vpack.c.bf16 %v2841_v44, %v2841_v44  ;;  %v2321_v40 = vadd.f32 %v2320_v18, %v6302_v0  ;;  %v2441_v14 = vadd.f32 %v2440_v21, %v5212_v37  ;;  %1342 = vperm.xlu2 %3919, %v404_v36   ;;  %v409_v21 = vld [vmem:[%s6251_s2 + $0x5f0] sm:$0xff] }
 0x1eb   :  { %3245 = vst.msk [vmem:[%s6254_s3 + $0x254] sm:$0xf] %vm3095_vm1, %v3048_v32  ;;  %v2843_v10 = vmax.f32 %v2564_v49, 0.0  ;;  %1337 = vperm.xlu1 %3918, %v403_v16   ;;  %1332 = vperm.xlu0 %3917, %v402_v13   ;;  %v410_v49 = vld [vmem:[%s6251_s2 + $0x5f8] sm:$0xff] }
 0x1ec   :  { %3235 = vst.msk [vmem:[%s6254_s3 + $0x22c] sm:$0xf] %vm3095_vm1, %v3038_v50  ;;  %v2746_v33 = vmax.f32 %v2321_v40, 0.0  ;;  %v2794_v2 = vmax.f32 %v2441_v14, 0.0  ;;  %v1178_v55 = vpop.permute.xlu2 %1177  ;;  %v5906_v13 = vpop.f32.mrf.mxu3  ;;  %v408_v50 = vld [vmem:[%s6251_s2 + $0x5e8] sm:$0xff] }
 0x1ed   :  { %3234 = vst.msk [vmem:[%s6254_s3 + $0x228] sm:$0xf] %vm3095_vm1, %v3037_v9  ;;  %v3039_v37 = vpack.c.bf16 %v2843_v10, %v2843_v10  ;;  %v2594_v26 = vadd.f32 %v6303_v51, %v1178_v55  ;;  %v1128_v58 = vpop.permute.xlu1 %1127  ;;  %v1123_v5 = vpop.permute.xlu0 %1122  ;;  %v6307_v10 = vld [vmem:[#allocation16_spill] sm:$0xff] }
 0x1ee   :  { %v2942_v25 = vpack.c.bf16 %v2746_v33, %v2746_v33  ;;  %v2990_v22 = vpack.c.bf16 %v2794_v2, %v2794_v2 }
 0x1ef   :  { %3236 = vst.msk [vmem:[%s6254_s3 + $0x230] sm:$0xf] %vm3095_vm1, %v3039_v37  ;;  %v2855_v53 = vmax.f32 %v2594_v26, 0.0 }
 0x1f0   :  { %3139 = vst.msk [vmem:[%s6254_s3 + $0xac] sm:$0xf] %vm3095_vm1, %v2942_v25  ;;  %v2565_v45 = vpop.f32.mrf.mxu2 }
 0x1f1   :  { %3187 = vst.msk [vmem:[%s6254_s3 + $0x16c] sm:$0xf] %vm3095_vm1, %v2990_v22  ;;  %v3051_v23 = vpack.c.bf16 %v2855_v53, %v2855_v53  ;;  %v2566_v12 = vadd.f32 %v2565_v45, %v1123_v5  ;;  %v2323_v61 = vpop.f32.mrf.mxu0  ;;  %v2443_v46 = vpop.f32.mrf.mxu1  ;;  %v6309_v45 = vld [vmem:[#allocation5_spill] sm:$0xff] }
 0x1f2   :  { %v2324_v20 = vadd.f32 %v2323_v61, %v6304_v42  ;;  %v2444_v57 = vadd.f32 %v2443_v46, %v6305_v39  ;;  %1357 = vperm.xlu2 %3919, %v407_v38   ;;  %v412_v46 = vld [vmem:[%s6251_s2 + $0x608] sm:$0xff]  ;;  %v411_v42 = vld [vmem:[%s6251_s2 + $0x600] sm:$0xff] }
 0x1f3   :  { %3248 = vst.msk [vmem:[%s6254_s3 + $0x260] sm:$0xf] %vm3095_vm1, %v3051_v23  ;;  %v2844_v8 = vmax.f32 %v2566_v12, 0.0  ;;  %1352 = vperm.xlu1 %3918, %v406_v35   ;;  %1347 = vperm.xlu0 %3917, %v405_v41   ;;  %v413_v23 = vld [vmem:[%s6251_s2 + $0x610] sm:$0xff] }
 0x1f4   :  { %v2747_v62 = vmax.f32 %v2324_v20, 0.0  ;;  %v2795_v34 = vmax.f32 %v2444_v57, 0.0  ;;  %v1193_v27 = vpop.permute.xlu2 %1192  ;;  %v5956_v20 = vpop.f32.mrf.mxu3 }
 0x1f5   :  { %v3040_v28 = vpack.c.bf16 %v2844_v8, %v2844_v8  ;;  %v2601_v36 = vadd.f32 %v6306_v43, %v1193_v27  ;;  %v5902_v15 = vpop.permute.xlu1 %1142  ;;  %v5904_v44 = vpop.permute.xlu0 %1137  ;;  %v6310_v27 = vld [vmem:[#allocation15_spill] sm:$0xff] }
 0x1f6   :  { %v2943_v1 = vpack.c.bf16 %v2747_v62, %v2747_v62  ;;  %v2991_v16 = vpack.c.bf16 %v2795_v34, %v2795_v34 }
 0x1f7   :  { %3237 = vst.msk [vmem:[%s6254_s3 + $0x234] sm:$0xf] %vm3095_vm1, %v3040_v28  ;;  %v2858_v32 = vmax.f32 %v2601_v36, 0.0 }
 0x1f8   :  { %3140 = vst.msk [vmem:[%s6254_s3 + $0xb0] sm:$0xf] %vm3095_vm1, %v2943_v1  ;;  %v2568_v18 = vpop.f32.mrf.mxu2 }
 0x1f9   :  { %3188 = vst.msk [vmem:[%s6254_s3 + $0x170] sm:$0xf] %vm3095_vm1, %v2991_v16  ;;  %v3054_v9 = vpack.c.bf16 %v2858_v32, %v2858_v32  ;;  %v2569_v0 = vadd.f32 %v2568_v18, %v1128_v58  ;;  %v2325_v40 = vpop.f32.mrf.mxu0  ;;  %v2445_v14 = vpop.f32.mrf.mxu1  ;;  %v6308_v58 = vld [vmem:[#allocation23_spill] sm:$0xff] }
 0x1fa   :  { %v2326_v33 = vadd.f32 %v2325_v40, %v6307_v10  ;;  %v2446_v2 = vadd.f32 %v2445_v14, %v5250_v31  ;;  %1372 = vperm.xlu2 %3919, %v410_v49   ;;  %v6311_v49 = vld [vmem:[#allocation26_spill] sm:$0xff]  ;;  %v6313_v14 = vld [vmem:[#allocation11_spill] sm:$0xff] }
 0x1fb   :  { %3251 = vst.msk [vmem:[%s6254_s3 + $0x26c] sm:$0xf] %vm3095_vm1, %v3054_v9  ;;  %v2845_v55 = vmax.f32 %v2569_v0, 0.0  ;;  %1367 = vperm.xlu1 %3918, %v409_v21   ;;  %1362 = vperm.xlu0 %3917, %v408_v50   ;;  %v6312_v0 = vld [vmem:[#allocation14_spill] sm:$0xff] }
 0x1fc   :  { %v2748_v37 = vmax.f32 %v2326_v33, 0.0  ;;  %v2796_v51 = vmax.f32 %v2446_v2, 0.0  ;;  %v1208_v26 = vpop.permute.xlu2 %1207 }
 0x1fd   :  { %v3041_v5 = vpack.c.bf16 %v2845_v55, %v2845_v55  ;;  %v2609_v25 = vadd.f32 %v6308_v58, %v1208_v26  ;;  %v1158_v22 = vpop.permute.xlu1 %1157  ;;  %v5936_v53 = vpop.permute.xlu0 %1152 }
 0x1fe   :  { %v2944_v38 = vpack.c.bf16 %v2748_v37, %v2748_v37  ;;  %v2992_v31 = vpack.c.bf16 %v2796_v51, %v2796_v51  ;;  %v2584_v35 = vadd.f32 %v6309_v45, %v1158_v22  ;;  %v414_v51 = vld [vmem:[%s6251_s2 + $0x618] sm:$0xff] }
 0x1ff   :  { %3238 = vst.msk [vmem:[%s6254_s3 + $0x238] sm:$0xf] %vm3095_vm1, %v3041_v5  ;;  %v2861_v41 = vmax.f32 %v2609_v25, 0.0 }
 0x200   :  { %3141 = vst.msk [vmem:[%s6254_s3 + $0xb4] sm:$0xf] %vm3095_vm1, %v2944_v38  ;;  %v2851_v12 = vmax.f32 %v2584_v35, 0.0  ;;  %v2570_v61 = vpop.f32.mrf.mxu2  ;;  %v6315_v35 = vld [vmem:[#allocation33_spill] sm:$0xff] }
 0x201   :  { %3189 = vst.msk [vmem:[%s6254_s3 + $0x174] sm:$0xf] %vm3095_vm1, %v2992_v31  ;;  %v3057_v39 = vpack.c.bf16 %v2861_v41, %v2861_v41  ;;  %v2571_v57 = vadd.f32 %v2570_v61, %v5764_v52  ;;  %v2328_v8 = vpop.f32.mrf.mxu0  ;;  %v2448_v62 = vpop.f32.mrf.mxu1  ;;  %v6314_v31 = vld [vmem:[#allocation6_spill] sm:$0xff] }
 0x202   :  { %v3047_v34 = vpack.c.bf16 %v2851_v12, %v2851_v12  ;;  %v2329_v28 = vadd.f32 %v2328_v8, %v6310_v27  ;;  %v2449_v43 = vadd.f32 %v2448_v62, %v5248_v29  ;;  %1387 = vperm.xlu2 %3919, %v413_v23   ;;  %v5994_v23 = vpop.f32.mrf.mxu3 }
 0x203   :  { %3254 = vst.msk [vmem:[%s6254_s3 + $0x278] sm:$0xf] %vm3095_vm1, %v3057_v39  ;;  %v2846_v36 = vmax.f32 %v2571_v57, 0.0  ;;  %1382 = vperm.xlu1 %3918, %v412_v46   ;;  %1377 = vperm.xlu0 %3917, %v411_v42   ;;  %v6316_v39 = vld [vmem:[#allocation32_spill] sm:$0xff] }
 0x204   :  { %3244 = vst.msk [vmem:[%s6254_s3 + $0x250] sm:$0xf] %vm3095_vm1, %v3047_v34  ;;  %v2749_v52 = vmax.f32 %v2329_v28, 0.0  ;;  %v2797_v1 = vmax.f32 %v2449_v43, 0.0  ;;  %v1223_v16 = vpop.permute.xlu2 %1222  ;;  %v6317_v28 = vld [vmem:[#allocation19_spill] sm:$0xff] }
 0x205   :  { %v3042_v32 = vpack.c.bf16 %v2846_v36, %v2846_v36  ;;  %v2616_v29 = vadd.f32 %v6311_v49, %v1223_v16  ;;  %v1173_v18 = vpop.permute.xlu1 %1172  ;;  %v1168_v21 = vpop.permute.xlu0 %1167  ;;  %v6318_v36 = vld [vmem:[#allocation18_spill] sm:$0xff] }
 0x206   :  { %v2945_v50 = vpack.c.bf16 %v2749_v52, %v2749_v52  ;;  %v2993_v9 = vpack.c.bf16 %v2797_v1, %v2797_v1  ;;  %v2591_v40 = vadd.f32 %v6312_v0, %v1173_v18  ;;  %v2589_v10 = vadd.f32 %v6313_v14, %v1168_v21 }
 0x207   :  { %3239 = vst.msk [vmem:[%s6254_s3 + $0x23c] sm:$0xf] %vm3095_vm1, %v3042_v32  ;;  %v2864_v33 = vmax.f32 %v2616_v29, 0.0 }
 0x208   :  { %3142 = vst.msk [vmem:[%s6254_s3 + $0xb8] sm:$0xf] %vm3095_vm1, %v2945_v50  ;;  %v2854_v2 = vmax.f32 %v2591_v40, 0.0  ;;  %v2853_v55 = vmax.f32 %v2589_v10, 0.0  ;;  %v2573_v37 = vpop.f32.mrf.mxu2 }
 0x209   :  { %3190 = vst.msk [vmem:[%s6254_s3 + $0x178] sm:$0xf] %vm3095_vm1, %v2993_v9  ;;  %v3060_v26 = vpack.c.bf16 %v2864_v33, %v2864_v33  ;;  %v2574_v5 = vadd.f32 %v2573_v37, %v5904_v44  ;;  %v2330_v58 = vpop.f32.mrf.mxu0  ;;  %v2450_v25 = vpop.f32.mrf.mxu1 }
 0x20a   :  { %v3050_v22 = vpack.c.bf16 %v2854_v2, %v2854_v2  ;;  %v3049_v38 = vpack.c.bf16 %v2853_v55, %v2853_v55  ;;  %v2331_v45 = vadd.f32 %v2330_v58, %v6314_v31  ;;  %v2451_v41 = vadd.f32 %v2450_v25, %v6315_v35  ;;  %v6033_v33 = vpop.f32.mrf.mxu3  ;;  %v6321_v58 = vld [vmem:[#allocation21_spill] sm:$0xff] }
 0x20b   :  { %3257 = vst.msk [vmem:[%s6254_s3 + $0x284] sm:$0xf] %vm3095_vm1, %v3060_v26  ;;  %v2847_v12 = vmax.f32 %v2574_v5, 0.0  ;;  %1392 = vperm.xlu0 %3917, %v414_v51   ;;  %v6320_v26 = vld [vmem:[#allocation22_spill] sm:$0xff] }
 0x20c   :  { %3247 = vst.msk [vmem:[%s6254_s3 + $0x25c] sm:$0xf] %vm3095_vm1, %v3050_v22  ;;  %v2750_v44 = vmax.f32 %v2331_v45, 0.0  ;;  %v2798_v61 = vmax.f32 %v2451_v41, 0.0  ;;  %v1238_v46 = vpop.permute.xlu2 %1237 }
 0x20d   :  { %3246 = vst.msk [vmem:[%s6254_s3 + $0x258] sm:$0xf] %vm3095_vm1, %v3049_v38  ;;  %v3043_v42 = vpack.c.bf16 %v2847_v12, %v2847_v12  ;;  %v2624_v57 = vadd.f32 %v6316_v39, %v1238_v46  ;;  %v1188_v8 = vpop.permute.xlu1 %1187  ;;  %v1183_v62 = vpop.permute.xlu0 %1182  ;;  %v6322_v46 = vld [vmem:[#allocation38_spill] sm:$0xff] }
 0x20e   :  { %v2946_v34 = vpack.c.bf16 %v2750_v44, %v2750_v44  ;;  %v2994_v27 = vpack.c.bf16 %v2798_v61, %v2798_v61  ;;  %v2599_v43 = vadd.f32 %v6317_v28, %v1188_v8  ;;  %v2596_v52 = vadd.f32 %v6318_v36, %v1183_v62 }
 0x20f   :  { %3240 = vst.msk [vmem:[%s6254_s3 + $0x240] sm:$0xf] %vm3095_vm1, %v3043_v42  ;;  %v2867_v1 = vmax.f32 %v2624_v57, 0.0 }
 0x210   :  { %3143 = vst.msk [vmem:[%s6254_s3 + $0xbc] sm:$0xf] %vm3095_vm1, %v2946_v34  ;;  %v2857_v16 = vmax.f32 %v2599_v43, 0.0  ;;  %v2856_v32 = vmax.f32 %v2596_v52, 0.0  ;;  %v2575_v49 = vpop.f32.mrf.mxu2  ;;  %v6323_v43 = vld [vmem:[#allocation25_spill] sm:$0xff]  ;;  %v6324_v52 = vld [vmem:[#allocation24_spill] sm:$0xff] }
 0x211   :  { %3191 = vst.msk [vmem:[%s6254_s3 + $0x17c] sm:$0xf] %vm3095_vm1, %v2994_v27  ;;  %v3063_v29 = vpack.c.bf16 %v2867_v1, %v2867_v1  ;;  %v2576_v18 = vadd.f32 %v2575_v49, %v5902_v15  ;;  %v2453_v21 = vpop.f32.mrf.mxu1  ;;  %v6319_v15 = vld [vmem:[#allocation36_spill] sm:$0xff] }
 0x212   :  { %v3053_v50 = vpack.c.bf16 %v2857_v16, %v2857_v16  ;;  %v3052_v9 = vpack.c.bf16 %v2856_v32, %v2856_v32  ;;  %v2454_v0 = vadd.f32 %v2453_v21, %v5294_v30  ;;  %v6067_v16 = vpop.f32.mrf.mxu3 }
 0x213   :  { %3260 = vst.msk [vmem:[%s6254_s3 + $0x290] sm:$0xf] %vm3095_vm1, %v3063_v29  ;;  %v2848_v40 = vmax.f32 %v2576_v18, 0.0 }
 0x214   :  { %3250 = vst.msk [vmem:[%s6254_s3 + $0x268] sm:$0xf] %vm3095_vm1, %v3053_v50  ;;  %v2799_v14 = vmax.f32 %v2454_v0, 0.0  ;;  %v1253_v10 = vpop.permute.xlu2 %1252 }
 0x215   :  { %3249 = vst.msk [vmem:[%s6254_s3 + $0x264] sm:$0xf] %vm3095_vm1, %v3052_v9  ;;  %v3044_v30 = vpack.c.bf16 %v2848_v40, %v2848_v40  ;;  %v2631_v2 = vadd.f32 %v6319_v15, %v1253_v10  ;;  %v1203_v55 = vpop.permute.xlu1 %1202  ;;  %v1198_v37 = vpop.permute.xlu0 %1197  ;;  %v6325_v15 = vld [vmem:[#allocation30_spill] sm:$0xff] }
 0x216   :  { %v2995_v51 = vpack.c.bf16 %v2799_v14, %v2799_v14  ;;  %v2606_v5 = vadd.f32 %v6320_v26, %v1203_v55  ;;  %v2604_v25 = vadd.f32 %v6321_v58, %v1198_v37  ;;  %v6326_v55 = vld [vmem:[#allocation28_spill] sm:$0xff] }
 0x217   :  { %3241 = vst.msk [vmem:[%s6254_s3 + $0x244] sm:$0xf] %vm3095_vm1, %v3044_v30  ;;  %v2870_v22 = vmax.f32 %v2631_v2, 0.0 }
 0x218   :  { %3192 = vst.msk [vmem:[%s6254_s3 + $0x180] sm:$0xf] %vm3095_vm1, %v2995_v51  ;;  %v2860_v38 = vmax.f32 %v2606_v5, 0.0  ;;  %v2859_v31 = vmax.f32 %v2604_v25, 0.0  ;;  %v2578_v45 = vpop.f32.mrf.mxu2 }
 0x219   :  { %v3066_v35 = vpack.c.bf16 %v2870_v22, %v2870_v22  ;;  %v2579_v41 = vadd.f32 %v2578_v45, %v5801_v63  ;;  %v2455_v12 = vpop.f32.mrf.mxu1 }
 0x21a   :  { %v3056_v44 = vpack.c.bf16 %v2860_v38, %v2860_v38  ;;  %v3055_v61 = vpack.c.bf16 %v2859_v31, %v2859_v31  ;;  %v2456_v42 = vadd.f32 %v2455_v12, %v6322_v46  ;;  %v6097_v58 = vpop.f32.mrf.mxu3 }
 0x21b   :  { %3263 = vst.msk [vmem:[%s6254_s3 + $0x29c] sm:$0xf] %vm3095_vm1, %v3066_v35  ;;  %v2849_v39 = vmax.f32 %v2579_v41, 0.0  ;;  %v6327_v41 = vld [vmem:[#allocation35_spill] sm:$0xff] }
 0x21c   :  { %3253 = vst.msk [vmem:[%s6254_s3 + $0x274] sm:$0xf] %vm3095_vm1, %v3056_v44  ;;  %v2800_v57 = vmax.f32 %v2456_v42, 0.0  ;;  %v1268_v8 = vpop.permute.xlu2 %1267  ;;  %v6328_v44 = vld [vmem:[#allocation34_spill] sm:$0xff] }
 0x21d   :  { %3252 = vst.msk [vmem:[%s6254_s3 + $0x270] sm:$0xf] %vm3095_vm1, %v3055_v61  ;;  %v3045_v63 = vpack.c.bf16 %v2849_v39, %v2849_v39  ;;  %v2639_v62 = vadd.f32 %v5339_v56, %v1268_v8  ;;  %v1218_v34 = vpop.permute.xlu1 %1217  ;;  %v1213_v27 = vpop.permute.xlu0 %1212 }
 0x21e   :  { %v2996_v28 = vpack.c.bf16 %v2800_v57, %v2800_v57  ;;  %v2614_v36 = vadd.f32 %v6323_v43, %v1218_v34  ;;  %v2611_v1 = vadd.f32 %v6324_v52, %v1213_v27  ;;  %v6329_v43 = vld [vmem:[#allocation39_spill] sm:$0xff]  ;;  %v6330_v52 = vld [vmem:[#allocation37_spill] sm:$0xff] }
 0x21f   :  { %3242 = vst.msk [vmem:[%s6254_s3 + $0x248] sm:$0xf] %vm3095_vm1, %v3045_v63  ;;  %v2873_v32 = vmax.f32 %v2639_v62, 0.0 }
 0x220   :  { %3193 = vst.msk [vmem:[%s6254_s3 + $0x184] sm:$0xf] %vm3095_vm1, %v2996_v28  ;;  %v2863_v56 = vmax.f32 %v2614_v36, 0.0  ;;  %v2862_v49 = vmax.f32 %v2611_v1, 0.0  ;;  %v2580_v29 = vpop.f32.mrf.mxu2 }
 0x221   :  { %v3069_v18 = vpack.c.bf16 %v2873_v32, %v2873_v32  ;;  %v2581_v21 = vadd.f32 %v2580_v29, %v5936_v53 }
 0x222   :  { %v3059_v50 = vpack.c.bf16 %v2863_v56, %v2863_v56  ;;  %v3058_v9 = vpack.c.bf16 %v2862_v49, %v2862_v49  ;;  %v6114_v62 = vpop.f32.mrf.mxu3 }
 0x223   :  { %3266 = vst.msk [vmem:[%s6254_s3 + $0x2a8] sm:$0xf] %vm3095_vm1, %v3069_v18  ;;  %v2850_v0 = vmax.f32 %v2581_v21, 0.0 }
 0x224   :  { %3256 = vst.msk [vmem:[%s6254_s3 + $0x280] sm:$0xf] %vm3095_vm1, %v3059_v50  ;;  %v1283_v40 = vpop.permute.xlu2 %1282 }
 0x225   :  { %3255 = vst.msk [vmem:[%s6254_s3 + $0x27c] sm:$0xf] %vm3095_vm1, %v3058_v9  ;;  %v3046_v53 = vpack.c.bf16 %v2850_v0, %v2850_v0  ;;  %v2646_v14 = vadd.f32 %v5471_v4, %v1283_v40  ;;  %v1233_v10 = vpop.permute.xlu1 %1232  ;;  %v1228_v30 = vpop.permute.xlu0 %1227 }
 0x226   :  { %v2621_v2 = vadd.f32 %v6325_v15, %v1233_v10  ;;  %v2619_v37 = vadd.f32 %v6326_v55, %v1228_v30 }
 0x227   :  { %3243 = vst.msk [vmem:[%s6254_s3 + $0x24c] sm:$0xf] %vm3095_vm1, %v3046_v53  ;;  %v2876_v51 = vmax.f32 %v2646_v14, 0.0 }
 0x228   :  { %v2866_v26 = vmax.f32 %v2621_v2, 0.0  ;;  %v2865_v5 = vmax.f32 %v2619_v37, 0.0 }
 0x229   :  { %v3072_v25 = vpack.c.bf16 %v2876_v51, %v2876_v51 }
 0x22a   :  { %v3062_v22 = vpack.c.bf16 %v2866_v26, %v2866_v26  ;;  %v3061_v38 = vpack.c.bf16 %v2865_v5, %v2865_v5  ;;  %v2690_v50 = vpop.f32.mrf.mxu3 }
 0x22b   :  { %3269 = vst.msk [vmem:[%s6254_s3 + $0x2b4] sm:$0xf] %vm3095_vm1, %v3072_v25 }
 0x22c   :  { %3259 = vst.msk [vmem:[%s6254_s3 + $0x28c] sm:$0xf] %vm3095_vm1, %v3062_v22  ;;  %v1298_v4 = vpop.permute.xlu2 %1297 }
 0x22d   :  { %3258 = vst.msk [vmem:[%s6254_s3 + $0x288] sm:$0xf] %vm3095_vm1, %v3061_v38  ;;  %v2654_v31 = vadd.f32 %v5593_v60, %v1298_v4  ;;  %v1248_v45 = vpop.permute.xlu1 %1247  ;;  %v1243_v35 = vpop.permute.xlu0 %1242 }
 0x22e   :  { %v2629_v12 = vadd.f32 %v6327_v41, %v1248_v45  ;;  %v2626_v61 = vadd.f32 %v6328_v44, %v1243_v35 }
 0x22f   :  { %v2879_v46 = vmax.f32 %v2654_v31, 0.0 }
 0x230   :  { %v2869_v42 = vmax.f32 %v2629_v12, 0.0  ;;  %v2868_v39 = vmax.f32 %v2626_v61, 0.0 }
 0x231   :  { %v3075_v57 = vpack.c.bf16 %v2879_v46, %v2879_v46 }
 0x232   :  { %v3065_v8 = vpack.c.bf16 %v2869_v42, %v2869_v42  ;;  %v3064_v63 = vpack.c.bf16 %v2868_v39, %v2868_v39  ;;  %v6161_v25 = vpop.f32.mrf.mxu3 }
 0x233   :  { %3272 = vst.msk [vmem:[%s6254_s3 + $0x2c0] sm:$0xf] %vm3095_vm1, %v3075_v57 }
 0x234   :  { %3262 = vst.msk [vmem:[%s6254_s3 + $0x298] sm:$0xf] %vm3095_vm1, %v3065_v8  ;;  %v1313_v60 = vpop.permute.xlu2 %1312 }
 0x235   :  { %3261 = vst.msk [vmem:[%s6254_s3 + $0x294] sm:$0xf] %vm3095_vm1, %v3064_v63  ;;  %v2661_v34 = vadd.f32 %v5707_v11, %v1313_v60  ;;  %v1263_v27 = vpop.permute.xlu1 %1262  ;;  %v1258_v28 = vpop.permute.xlu0 %1257 }
 0x236   :  { %v2636_v36 = vadd.f32 %v6329_v43, %v1263_v27  ;;  %v2634_v1 = vadd.f32 %v6330_v52, %v1258_v28 }
 0x237   :  { %v2882_v32 = vmax.f32 %v2661_v34, 0.0 }
 0x238   :  { %v2872_v56 = vmax.f32 %v2636_v36, 0.0  ;;  %v2871_v49 = vmax.f32 %v2634_v1, 0.0 }
 0x239   :  { %v3078_v29 = vpack.c.bf16 %v2882_v32, %v2882_v32 }
 0x23a   :  { %v3068_v18 = vpack.c.bf16 %v2872_v56, %v2872_v56  ;;  %v3067_v21 = vpack.c.bf16 %v2871_v49, %v2871_v49  ;;  %v2695_v39 = vpop.f32.mrf.mxu3 }
 0x23b   :  { %3275 = vst.msk [vmem:[%s6254_s3 + $0x2cc] sm:$0xf] %vm3095_vm1, %v3078_v29 }
 0x23c   :  { %3265 = vst.msk [vmem:[%s6254_s3 + $0x2a4] sm:$0xf] %vm3095_vm1, %v3068_v18  ;;  %v1328_v11 = vpop.permute.xlu2 %1327 }
 0x23d   :  { %3264 = vst.msk [vmem:[%s6254_s3 + $0x2a0] sm:$0xf] %vm3095_vm1, %v3067_v21  ;;  %v2669_v9 = vadd.f32 %v5828_v19, %v1328_v11  ;;  %v1278_v0 = vpop.permute.xlu1 %1277  ;;  %v1273_v40 = vpop.permute.xlu0 %1272 }
 0x23e   :  { %v2644_v53 = vadd.f32 %v5428_v3, %v1278_v0  ;;  %v2641_v14 = vadd.f32 %v5383_v17, %v1273_v40 }
 0x23f   :  { %v2885_v10 = vmax.f32 %v2669_v9, 0.0 }
 0x240   :  { %v2875_v30 = vmax.f32 %v2644_v53, 0.0  ;;  %v2874_v15 = vmax.f32 %v2641_v14, 0.0 }
 0x241   :  { %v3081_v2 = vpack.c.bf16 %v2885_v10, %v2885_v10 }
 0x242   :  { %v3071_v55 = vpack.c.bf16 %v2875_v30, %v2875_v30  ;;  %v3070_v37 = vpack.c.bf16 %v2874_v15, %v2874_v15  ;;  %v2698_v56 = vpop.f32.mrf.mxu3 }
 0x243   :  { %3278 = vst.msk [vmem:[%s6254_s3 + $0x2d8] sm:$0xf] %vm3095_vm1, %v3081_v2 }
 0x244   :  { %3268 = vst.msk [vmem:[%s6254_s3 + $0x2b0] sm:$0xf] %vm3095_vm1, %v3071_v55  ;;  %v1343_v19 = vpop.permute.xlu2 %1342 }
 0x245   :  { %3267 = vst.msk [vmem:[%s6254_s3 + $0x2ac] sm:$0xf] %vm3095_vm1, %v3070_v37  ;;  %v2676_v17 = vadd.f32 %v5956_v20, %v1343_v19  ;;  %v1293_v3 = vpop.permute.xlu1 %1292  ;;  %v1288_v51 = vpop.permute.xlu0 %1287 }
 0x246   :  { %v2651_v26 = vadd.f32 %v5551_v48, %v1293_v3  ;;  %v2649_v5 = vadd.f32 %v5513_v24, %v1288_v51 }
 0x247   :  { %v2888_v22 = vmax.f32 %v2676_v17, 0.0 }
 0x248   :  { %v2878_v38 = vmax.f32 %v2651_v26, 0.0  ;;  %v2877_v4 = vmax.f32 %v2649_v5, 0.0 }
 0x249   :  { %v3084_v31 = vpack.c.bf16 %v2888_v22, %v2888_v22 }
 0x24a   :  { %v3074_v45 = vpack.c.bf16 %v2878_v38, %v2878_v38  ;;  %v3073_v35 = vpack.c.bf16 %v2877_v4, %v2877_v4 }
 0x24b   :  { %3281 = vst.msk [vmem:[%s6254_s3 + $0x2e4] sm:$0xf] %vm3095_vm1, %v3084_v31 }
 0x24c   :  { %3271 = vst.msk [vmem:[%s6254_s3 + $0x2bc] sm:$0xf] %vm3095_vm1, %v3074_v45  ;;  %v1358_v48 = vpop.permute.xlu2 %1357 }
 0x24d   :  { %3270 = vst.msk [vmem:[%s6254_s3 + $0x2b8] sm:$0xf] %vm3095_vm1, %v3073_v35  ;;  %v2684_v24 = vadd.f32 %v6067_v16, %v1358_v48  ;;  %v1308_v20 = vpop.permute.xlu1 %1307  ;;  %v1303_v41 = vpop.permute.xlu0 %1302 }
 0x24e   :  { %v2659_v12 = vadd.f32 %v5670_v59, %v1308_v20  ;;  %v2656_v44 = vadd.f32 %v5631_v7, %v1303_v41  ;;  %v2700_v35 = vpop.f32.mrf.mxu3 }
 0x24f   :  { %v2891_v61 = vmax.f32 %v2684_v24, 0.0 }
 0x250   :  { %v2881_v46 = vmax.f32 %v2659_v12, 0.0  ;;  %v2880_v42 = vmax.f32 %v2656_v44, 0.0 }
 0x251   :  { %v3087_v57 = vpack.c.bf16 %v2891_v61, %v2891_v61 }
 0x252   :  { %v3077_v8 = vpack.c.bf16 %v2881_v46, %v2881_v46  ;;  %v3076_v63 = vpack.c.bf16 %v2880_v42, %v2880_v42 }
 0x253   :  { %3284 = vst.msk [vmem:[%s6254_s3 + $0x2f0] sm:$0xf] %vm3095_vm1, %v3087_v57 }
 0x254   :  { %3274 = vst.msk [vmem:[%s6254_s3 + $0x2c8] sm:$0xf] %vm3095_vm1, %v3077_v8  ;;  %v1373_v59 = vpop.permute.xlu2 %1372 }
 0x255   :  { %3273 = vst.msk [vmem:[%s6254_s3 + $0x2c4] sm:$0xf] %vm3095_vm1, %v3076_v63  ;;  %v2691_v7 = vadd.f32 %v2690_v50, %v1373_v59  ;;  %v1323_v16 = vpop.permute.xlu1 %1322  ;;  %v1318_v60 = vpop.permute.xlu0 %1317 }
 0x256   :  { %v2666_v34 = vadd.f32 %v5789_v6, %v1323_v16  ;;  %v2664_v27 = vadd.f32 %v5742_v54, %v1318_v60 }
 0x257   :  { %v2894_v28 = vmax.f32 %v2691_v7, 0.0 }
 0x258   :  { %v2884_v43 = vmax.f32 %v2666_v34, 0.0  ;;  %v2883_v36 = vmax.f32 %v2664_v27, 0.0 }
 0x259   :  { %v3090_v52 = vpack.c.bf16 %v2894_v28, %v2894_v28 }
 0x25a   :  { %v3080_v1 = vpack.c.bf16 %v2884_v43, %v2884_v43  ;;  %v3079_v32 = vpack.c.bf16 %v2883_v36, %v2883_v36 }
 0x25b   :  { %3287 = vst.msk [vmem:[%s6254_s3 + $0x2fc] sm:$0xf] %vm3095_vm1, %v3090_v52 }
 0x25c   :  { %3277 = vst.msk [vmem:[%s6254_s3 + $0x2d4] sm:$0xf] %vm3095_vm1, %v3080_v1  ;;  %v1388_v6 = vpop.permute.xlu2 %1387 }
 0x25d   :  { %3276 = vst.msk [vmem:[%s6254_s3 + $0x2d0] sm:$0xf] %vm3095_vm1, %v3079_v32  ;;  %v1338_v54 = vpop.permute.xlu1 %1337  ;;  %v1333_v49 = vpop.permute.xlu0 %1332  ;;  %v2699_v29 = vadd.f32 %v2698_v56, %v1388_v6 }
 0x25e   :  { %v2674_v18 = vadd.f32 %v5906_v13, %v1338_v54  ;;  %v2671_v21 = vadd.f32 %v5867_v47, %v1333_v49 }
 0x25f   :  { %v2897_v11 = vmax.f32 %v2699_v29, 0.0 }
 0x260   :  { %v2887_v50 = vmax.f32 %v2674_v18, 0.0  ;;  %v2886_v9 = vmax.f32 %v2671_v21, 0.0 }
 0x261   :  { %v3093_v0 = vpack.c.bf16 %v2897_v11, %v2897_v11 }
 0x262   :  { %v3083_v40 = vpack.c.bf16 %v2887_v50, %v2887_v50  ;;  %v3082_v53 = vpack.c.bf16 %v2886_v9, %v2886_v9 }
 0x263   :  { %3290 = vst.msk [vmem:[%s6254_s3 + $0x308] sm:$0xf] %vm3095_vm1, %v3093_v0 }
 0x264   :  { %3280 = vst.msk [vmem:[%s6254_s3 + $0x2e0] sm:$0xf] %vm3095_vm1, %v3083_v40 }
 0x265   :  { %3279 = vst.msk [vmem:[%s6254_s3 + $0x2dc] sm:$0xf] %vm3095_vm1, %v3082_v53  ;;  %v1353_v47 = vpop.permute.xlu1 %1352  ;;  %v1348_v13 = vpop.permute.xlu0 %1347 }
 0x266   :  { %v2681_v14 = vadd.f32 %v6033_v33, %v1353_v47  ;;  %v2679_v10 = vadd.f32 %v5994_v23, %v1348_v13 }
 0x268   :  { %v2890_v30 = vmax.f32 %v2681_v14, 0.0  ;;  %v2889_v15 = vmax.f32 %v2679_v10, 0.0 }
 0x26a   :  { %v3086_v2 = vpack.c.bf16 %v2890_v30, %v2890_v30  ;;  %v3085_v55 = vpack.c.bf16 %v2889_v15, %v2889_v15 }
 0x26c   :  { %3283 = vst.msk [vmem:[%s6254_s3 + $0x2ec] sm:$0xf] %vm3095_vm1, %v3086_v2 }
 0x26d   :  { %3282 = vst.msk [vmem:[%s6254_s3 + $0x2e8] sm:$0xf] %vm3095_vm1, %v3085_v55  ;;  %v1368_v37 = vpop.permute.xlu1 %1367  ;;  %v1363_v19 = vpop.permute.xlu0 %1362 }
 0x26e   :  { %v2689_v33 = vadd.f32 %v6114_v62, %v1368_v37  ;;  %v2686_v23 = vadd.f32 %v6097_v58, %v1363_v19 }
 0x270   :  { %v2893_v17 = vmax.f32 %v2689_v33, 0.0  ;;  %v2892_v3 = vmax.f32 %v2686_v23, 0.0 }
 0x272   :  { %v3089_v51 = vpack.c.bf16 %v2893_v17, %v2893_v17  ;;  %v3088_v26 = vpack.c.bf16 %v2892_v3, %v2892_v3 }
 0x274   :  { %3286 = vst.msk [vmem:[%s6254_s3 + $0x2f8] sm:$0xf] %vm3095_vm1, %v3089_v51 }
 0x275   :  { %3285 = vst.msk [vmem:[%s6254_s3 + $0x2f4] sm:$0xf] %vm3095_vm1, %v3088_v26  ;;  %v1383_v5 = vpop.permute.xlu1 %1382  ;;  %v1378_v22 = vpop.permute.xlu0 %1377 }
 0x276   :  { %v2696_v38 = vadd.f32 %v2695_v39, %v1383_v5  ;;  %v2694_v62 = vadd.f32 %v6161_v25, %v1378_v22 }
 0x278   :  { %v2896_v58 = vmax.f32 %v2696_v38, 0.0  ;;  %v2895_v4 = vmax.f32 %v2694_v62, 0.0 }
 0x27a   :  { %v3092_v31 = vpack.c.bf16 %v2896_v58, %v2896_v58  ;;  %v3091_v45 = vpack.c.bf16 %v2895_v4, %v2895_v4 }
 0x27c   :  { %3289 = vst.msk [vmem:[%s6254_s3 + $0x304] sm:$0xf] %vm3095_vm1, %v3092_v31 }
 0x27d   :  { %3288 = vst.msk [vmem:[%s6254_s3 + $0x300] sm:$0xf] %vm3095_vm1, %v3091_v45  ;;  %v1393_v48 = vpop.permute.xlu0 %1392 }
 0x27e   :  { %v2701_v24 = vadd.f32 %v2700_v35, %v1393_v48 }
 0x280   :  { %v2898_v20 = vmax.f32 %v2701_v24, 0.0 }
 0x282   :  { %v3094_v41 = vpack.c.bf16 %v2898_v20, %v2898_v20 }
 0x284   :  { %3291 = vst.msk [vmem:[%s6254_s3 + $0x30c] sm:$0xf] %vm3095_vm1, %v3094_v41 }

// kernel: tile.28
= control target key start
LH: loop header
LB: loop body
LE: loop exit
PB: predicated region body
PF: predicated region fallthrough
CT: control target
= control target key end

     0   :  { %s22_s0 = inlined_call_operand.vmem [shape: f32[16], index: 0, kind: input, shape index: {}]   ;;  %s23_s1 = inlined_call_operand.vmem [shape: f32[4,16], index: 1, kind: output, shape index: {}]  }
   0x1   :  { %v4_v0 = vld [vmem:[%s22_s0] ss:$0 sm:$0xff] }
   0x2   :  { %5 = vst [vmem:[%s23_s1] sm:$0xf] %v4_v0 }

// kernel: tile.0
= control target key start
LH: loop header
LB: loop body
LE: loop exit
PB: predicated region body
PF: predicated region fallthrough
CT: control target
= control target key end

     0   :  { %s176_s8 = smov 127   ;;  %s177_s9 = smov 123   ;;  %vm7_vm0 = vcmask 7168   ;;  %s331_s0 = inlined_call_operand.vmem [shape: f32[4,16], index: 0, kind: input, shape index: {}]   ;;  %s332_s1 = inlined_call_operand.vmem [shape: f32[64,1], index: 1, kind: output, shape index: {}]  }
   0x1   :  { %v4_v0 = vld [vmem:[%s331_s0] sm:$0xf]  ;;  %s175_s0 = smov 125   ;;  %s178_s10 = smov 124  }
   0x2   :  { %5 = vst [vmem:[#allocation0] sm:$0xf] %v4_v0  ;;  %s179_s11 = smov 126   ;;  %s180_s12 = smov 122  }
   0x3   :  { %s181_s13 = smov 120   ;;  %s182_s14 = smov 121  }
   0x4   :  { %s183_s15 = smov 119   ;;  %s184_s16 = smov 117  }
   0x5   :  { %s185_s17 = smov 118   ;;  %s186_s18 = smov 116  }
   0x6   :  { %s187_s19 = smov 114   ;;  %s188_s20 = smov 115  }
   0x7   :  { %s189_s21 = smov 113  }
   0x9   :  { %v26_v1 = vld [vmem:[#allocation0] sm:$0xf]  }
   0xa   :  { %v10_v2 = vld [vmem:[#allocation0] sm:$0xf]   ;;  %27 = vrot.lane.b32.xlu1 %v26_v1, %s175_s0 }
   0xb   :  { %11 = vrot.lane.b32.xlu0 %v10_v2, %s176_s8  ;;  %v42_v3 = vld [vmem:[#allocation0] sm:$0xf]  }
   0xc   :  { %43 = vrot.lane.b32.xlu2 %v42_v3, %s177_s9  ;;  %v34_v4 = vld [vmem:[#allocation0] sm:$0xf]  }
   0xd   :  { %v18_v5 = vld [vmem:[#allocation0] sm:$0xf]  }
   0xe   :  { %v50_v6 = vld [vmem:[#allocation0] sm:$0xf]  }
   0xf   :  { %v66_v7 = vld [vmem:[#allocation0] sm:$0xf]  }
  0x10   :  { %v58_v8 = vld [vmem:[#allocation0] sm:$0xf]  }
  0x11   :  { %v74_v9 = vld [vmem:[#allocation0] sm:$0xf]  }
  0x12   :  { %35 = vrot.lane.b32.xlu1 %v34_v4, %s178_s10  ;;  %v90_v10 = vld [vmem:[#allocation0] sm:$0xf]  }
  0x13   :  { %19 = vrot.lane.b32.xlu0 %v18_v5, %s179_s11  ;;  %v82_v11 = vld [vmem:[#allocation0] sm:$0xf]  }
  0x14   :  { %51 = vrot.lane.b32.xlu2 %v50_v6, %s180_s12  ;;  %v98_v12 = vld [vmem:[#allocation0] sm:$0xf]  }
  0x15   :  { %v114_v13 = vld [vmem:[#allocation0] sm:$0xf]  }
  0x16   :  { %v106_v14 = vld [vmem:[#allocation0] sm:$0xf]  }
  0x17   :  { %v122_v15 = vld [vmem:[#allocation0] sm:$0xf]  }
  0x18   :  { %v6_v22 = vld [vmem:[#allocation0] sm:$0xf]  }
  0x19   :  { %8 = vst.msk [vmem:[%s332_s1] ss:$16 sm:$0x3] %vm7_vm0, %v6_v22  }
  0x1a   :  { %67 = vrot.lane.b32.xlu1 %v66_v7, %s181_s13  ;;  %9 = vst.msk [vmem:[%s332_s1] ss:$16 sm:$0xc] %vm7_vm0, %v6_v22  }
  0x1b   :  { %59 = vrot.lane.b32.xlu0 %v58_v8, %s182_s14 }
  0x1c   :  { %75 = vrot.lane.b32.xlu2 %v74_v9, %s183_s15 }
  0x22   :  { %91 = vrot.lane.b32.xlu1 %v90_v10, %s184_s16 }
  0x23   :  { %83 = vrot.lane.b32.xlu0 %v82_v11, %s185_s17 }
  0x24   :  { %99 = vrot.lane.b32.xlu2 %v98_v12, %s186_s18 }
  0x2a   :  { %115 = vrot.lane.b32.xlu1 %v114_v13, %s187_s19 }
  0x2b   :  { %107 = vrot.lane.b32.xlu0 %v106_v14, %s188_s20 }
  0x2c   :  { %123 = vrot.lane.b32.xlu2 %v122_v15, %s189_s21 }
  0x66   :  { %v44_v16 = vpop.permute.xlu2 %43  }
  0x67   :  { %138 = vst.msk [vmem:[%s332_s1 + $0x5] ss:$16 sm:$0x3] %vm7_vm0, %v44_v16  }
  0x68   :  { %139 = vst.msk [vmem:[%s332_s1 + $0x5] ss:$16 sm:$0xc] %vm7_vm0, %v44_v16  }
  0x6e   :  { %v52_v17 = vpop.permute.xlu2 %51  }
  0x6f   :  { %140 = vst.msk [vmem:[%s332_s1 + $0x6] ss:$16 sm:$0x3] %vm7_vm0, %v52_v17  }
  0x70   :  { %141 = vst.msk [vmem:[%s332_s1 + $0x6] ss:$16 sm:$0xc] %vm7_vm0, %v52_v17  }
  0x76   :  { %v76_v18 = vpop.permute.xlu2 %75  }
  0x77   :  { %146 = vst.msk [vmem:[%s332_s1 + $0x9] ss:$16 sm:$0x3] %vm7_vm0, %v76_v18  }
  0x78   :  { %147 = vst.msk [vmem:[%s332_s1 + $0x9] ss:$16 sm:$0xc] %vm7_vm0, %v76_v18  }
  0x7c   :  { %v28_v19 = vpop.permute.xlu1 %27  }
  0x7d   :  { %v12_v20 = vpop.permute.xlu0 %11   ;;  %134 = vst.msk [vmem:[%s332_s1 + $0x3] ss:$16 sm:$0x3] %vm7_vm0, %v28_v19  }
  0x7e   :  { %135 = vst.msk [vmem:[%s332_s1 + $0x3] ss:$16 sm:$0xc] %vm7_vm0, %v28_v19   ;;  %v100_v21 = vpop.permute.xlu2 %99  }
  0x7f   :  { %130 = vst.msk [vmem:[%s332_s1 + $0x1] ss:$16 sm:$0x3] %vm7_vm0, %v12_v20  }
  0x80   :  { %131 = vst.msk [vmem:[%s332_s1 + $0x1] ss:$16 sm:$0xc] %vm7_vm0, %v12_v20  }
  0x81   :  { %152 = vst.msk [vmem:[%s332_s1 + $0xc] ss:$16 sm:$0x3] %vm7_vm0, %v100_v21  }
  0x82   :  { %153 = vst.msk [vmem:[%s332_s1 + $0xc] ss:$16 sm:$0xc] %vm7_vm0, %v100_v21  }
  0x84   :  { %v36_v23 = vpop.permute.xlu1 %35  }
  0x85   :  { %v20_v24 = vpop.permute.xlu0 %19   ;;  %136 = vst.msk [vmem:[%s332_s1 + $0x4] ss:$16 sm:$0x3] %vm7_vm0, %v36_v23  }
  0x86   :  { %137 = vst.msk [vmem:[%s332_s1 + $0x4] ss:$16 sm:$0xc] %vm7_vm0, %v36_v23   ;;  %v124_v25 = vpop.permute.xlu2 %123  }
  0x87   :  { %132 = vst.msk [vmem:[%s332_s1 + $0x2] ss:$16 sm:$0x3] %vm7_vm0, %v20_v24  }
  0x88   :  { %133 = vst.msk [vmem:[%s332_s1 + $0x2] ss:$16 sm:$0xc] %vm7_vm0, %v20_v24  }
  0x89   :  { %158 = vst.msk [vmem:[%s332_s1 + $0xf] ss:$16 sm:$0x3] %vm7_vm0, %v124_v25  }
  0x8a   :  { %159 = vst.msk [vmem:[%s332_s1 + $0xf] ss:$16 sm:$0xc] %vm7_vm0, %v124_v25  }
  0x8c   :  { %v68_v26 = vpop.permute.xlu1 %67  }
  0x8d   :  { %v60_v27 = vpop.permute.xlu0 %59   ;;  %144 = vst.msk [vmem:[%s332_s1 + $0x8] ss:$16 sm:$0x3] %vm7_vm0, %v68_v26  }
  0x8e   :  { %145 = vst.msk [vmem:[%s332_s1 + $0x8] ss:$16 sm:$0xc] %vm7_vm0, %v68_v26  }
  0x8f   :  { %142 = vst.msk [vmem:[%s332_s1 + $0x7] ss:$16 sm:$0x3] %vm7_vm0, %v60_v27  }
  0x90   :  { %143 = vst.msk [vmem:[%s332_s1 + $0x7] ss:$16 sm:$0xc] %vm7_vm0, %v60_v27  }
  0x94   :  { %v92_v28 = vpop.permute.xlu1 %91  }
  0x95   :  { %v84_v29 = vpop.permute.xlu0 %83   ;;  %150 = vst.msk [vmem:[%s332_s1 + $0xb] ss:$16 sm:$0x3] %vm7_vm0, %v92_v28  }
  0x96   :  { %151 = vst.msk [vmem:[%s332_s1 + $0xb] ss:$16 sm:$0xc] %vm7_vm0, %v92_v28  }
  0x97   :  { %148 = vst.msk [vmem:[%s332_s1 + $0xa] ss:$16 sm:$0x3] %vm7_vm0, %v84_v29  }
  0x98   :  { %149 = vst.msk [vmem:[%s332_s1 + $0xa] ss:$16 sm:$0xc] %vm7_vm0, %v84_v29  }
  0x9c   :  { %v116_v30 = vpop.permute.xlu1 %115  }
  0x9d   :  { %v108_v31 = vpop.permute.xlu0 %107   ;;  %156 = vst.msk [vmem:[%s332_s1 + $0xe] ss:$16 sm:$0x3] %vm7_vm0, %v116_v30  }
  0x9e   :  { %157 = vst.msk [vmem:[%s332_s1 + $0xe] ss:$16 sm:$0xc] %vm7_vm0, %v116_v30  }
  0x9f   :  { %154 = vst.msk [vmem:[%s332_s1 + $0xd] ss:$16 sm:$0x3] %vm7_vm0, %v108_v31  }
  0xa0   :  { %155 = vst.msk [vmem:[%s332_s1 + $0xd] ss:$16 sm:$0xc] %vm7_vm0, %v108_v31  }

// kernel: generator_forward.8
= control target key start
LH: loop header
LB: loop body
LE: loop exit
PB: predicated region body
PF: predicated region fallthrough
CT: control target
= control target key end

     0   :  { %v205_v0 = vmov 0   ;;  %s310_s0 = inlined_call_operand.vmem [shape: f32[64,1], index: 0, kind: input, shape index: {}]   ;;  %s311_s1 = inlined_call_operand.vmem [shape: f32[64,1], index: 1, kind: input, shape index: {}]   ;;  %s312_s2 = inlined_call_operand.vmem [shape: f32[64,128], index: 2, kind: input, shape index: {}]   ;;  %s313_s3 = inlined_call_operand.vmem [shape: bf16[64,128], index: 3, kind: output, shape index: {}]  }
   0x1   :  { %204 = vset.pattern.permute.xlu2 %v205_v0  ;;  %203 = vset.pattern.permute.xlu1 %v205_v0  ;;  %v26_v1 = vld [vmem:[%s310_s0 + $0x20] sm:$0xff]  ;;  %v24_v2 = vld [vmem:[%s310_s0 + $0x10] sm:$0xff]  ;;  %v27_v4 = vld [vmem:[%s310_s0 + $0x28] sm:$0xff] }
   0x2   :  { %v22_v3 = vld [vmem:[%s310_s0] sm:$0xff]  ;;  %202 = vset.pattern.permute.xlu0 %v205_v0  ;;  %52 = vperm.xlu2 %204, %v26_v1   ;;  %v25_v5 = vld [vmem:[%s310_s0 + $0x18] sm:$0xff]  ;;  %v23_v6 = vld [vmem:[%s310_s0 + $0x8] sm:$0xff] }
   0x3   :  { %42 = vperm.xlu1 %203, %v24_v2   ;;  %32 = vperm.xlu0 %202, %v22_v3   ;;  %v78_v7 = vld [vmem:[%s311_s1] sm:$0xff]  ;;  %v29_v8 = vld [vmem:[%s310_s0 + $0x38] sm:$0xff]  ;;  %v28_v9 = vld [vmem:[%s310_s0 + $0x30] sm:$0xff] }
   0x4   :  { %v81_v10 = vld [vmem:[%s311_s1 + $0x18] sm:$0xff]  ;;  %v80_v11 = vld [vmem:[%s311_s1 + $0x10] sm:$0xff]  ;;  %v79_v12 = vld [vmem:[%s311_s1 + $0x8] sm:$0xff] }
   0x5   :  { %v84_v13 = vld [vmem:[%s311_s1 + $0x30] sm:$0xff]  ;;  %v83_v14 = vld [vmem:[%s311_s1 + $0x28] sm:$0xff]  ;;  %v82_v15 = vld [vmem:[%s311_s1 + $0x20] sm:$0xff] }
   0x6   :  { %v85_v16 = vld [vmem:[%s311_s1 + $0x38] sm:$0xff]  ;;  %v14_v24 = vld [vmem:[%s312_s2] sm:$0xff]  ;;  %v16_v31 = vld [vmem:[%s312_s2 + $0x10] sm:$0xff] }
   0x7   :  { %v17_v25 = vld [vmem:[%s312_s2 + $0x18] sm:$0xff]  ;;  %v15_v32 = vld [vmem:[%s312_s2 + $0x8] sm:$0xff]  ;;  %v18_v45 = vld [vmem:[%s312_s2 + $0x20] sm:$0xff] }
   0x8   :  { %v19_v46 = vld [vmem:[%s312_s2 + $0x28] sm:$0xff]  ;;  %v20_v51 = vld [vmem:[%s312_s2 + $0x30] sm:$0xff]  ;;  %v21_v0 = vld [vmem:[%s312_s2 + $0x38] sm:$0xff] }
   0xa   :  { %57 = vperm.xlu2 %204, %v27_v4  }
   0xb   :  { %47 = vperm.xlu1 %203, %v25_v5   ;;  %37 = vperm.xlu0 %202, %v23_v6  }
  0x12   :  { %88 = vperm.xlu2 %204, %v78_v7  }
  0x13   :  { %67 = vperm.xlu1 %203, %v29_v8   ;;  %62 = vperm.xlu0 %202, %v28_v9  }
  0x1a   :  { %103 = vperm.xlu2 %204, %v81_v10  }
  0x1b   :  { %98 = vperm.xlu1 %203, %v80_v11   ;;  %93 = vperm.xlu0 %202, %v79_v12  }
  0x22   :  { %118 = vperm.xlu2 %204, %v84_v13  }
  0x23   :  { %113 = vperm.xlu1 %203, %v83_v14   ;;  %108 = vperm.xlu0 %202, %v82_v15  }
  0x2b   :  { %123 = vperm.xlu0 %202, %v85_v16  }
  0x5c   :  { %v53_v17 = vpop.permute.xlu2 %52 }
  0x5d   :  { %v74_v54 = vmul.f32 %v53_v17, %v18_v45 }
  0x64   :  { %v58_v18 = vpop.permute.xlu2 %57 }
  0x65   :  { %v75_v55 = vmul.f32 %v58_v18, %v19_v46 }
  0x6c   :  { %v89_v23 = vpop.permute.xlu2 %88 }
  0x74   :  { %v104_v30 = vpop.permute.xlu2 %103 }
  0x75   :  { %v43_v19 = vpop.permute.xlu1 %42  ;;  %v33_v20 = vpop.permute.xlu0 %32 }
  0x76   :  { %v70_v28 = vmul.f32 %v33_v20, %v14_v24  ;;  %v72_v35 = vmul.f32 %v43_v19, %v16_v31 }
  0x78   :  { %v126_v33 = vadd.f32 %v89_v23, %v70_v28 }
  0x7a   :  { %v142_v39 = vmul.f32 0.2, %v126_v33  ;;  %vm134_vm0 = vcmp.ge.f32.partialorder %v126_v33, 0.0 }
  0x7c   :  { %v150_v49 = vsel %vm134_vm0, %v126_v33, %v142_v39  ;;  %v119_v63 = vpop.permute.xlu2 %118 }
  0x7d   :  { %v48_v21 = vpop.permute.xlu1 %47  ;;  %v38_v22 = vpop.permute.xlu0 %37 }
  0x7e   :  { %v73_v29 = vmul.f32 %v48_v21, %v17_v25  ;;  %v71_v36 = vmul.f32 %v38_v22, %v15_v32 }
  0x80   :  { %v129_v34 = vadd.f32 %v104_v30, %v73_v29 }
  0x82   :  { %v145_v40 = vmul.f32 0.2, %v129_v34  ;;  %vm137_vm1 = vcmp.ge.f32.partialorder %v129_v34, 0.0 }
  0x84   :  { %v153_v47 = vsel %vm137_vm1, %v129_v34, %v145_v40 }
  0x85   :  { %v68_v26 = vpop.permute.xlu1 %67  ;;  %v63_v27 = vpop.permute.xlu0 %62 }
  0x86   :  { %v76_v58 = vmul.f32 %v63_v27, %v20_v51  ;;  %v77_v5 = vmul.f32 %v68_v26, %v21_v0 }
  0x88   :  { %v132_v1 = vadd.f32 %v119_v63, %v76_v58 }
  0x8a   :  { %v148_v7 = vmul.f32 0.2, %v132_v1  ;;  %vm140_vm6 = vcmp.ge.f32.partialorder %v132_v1, 0.0 }
  0x8c   :  { %v156_v10 = vsel %vm140_vm6, %v132_v1, %v148_v7 }
  0x8d   :  { %v99_v37 = vpop.permute.xlu1 %98  ;;  %v94_v38 = vpop.permute.xlu0 %93 }
  0x8e   :  { %v128_v41 = vadd.f32 %v99_v37, %v72_v35  ;;  %v127_v42 = vadd.f32 %v94_v38, %v71_v36 }
  0x90   :  { %vm136_vm2 = vcmp.ge.f32.partialorder %v128_v41, 0.0  ;;  %v144_v43 = vmul.f32 0.2, %v128_v41  ;;  %vm135_vm3 = vcmp.ge.f32.partialorder %v127_v42, 0.0  ;;  %v143_v44 = vmul.f32 0.2, %v127_v42 }
  0x92   :  { %v152_v48 = vsel %vm136_vm2, %v128_v41, %v144_v43  ;;  %v151_v50 = vsel %vm135_vm3, %v127_v42, %v143_v44 }
  0x93   :  { %v186_v52 = vpack.c.bf16 %v153_v47, %v152_v48  ;;  %v181_v53 = vpack.c.bf16 %v151_v50, %v150_v49 }
  0x95   :  { %198 = vst [vmem:[%s313_s3 + $0x8] sm:$0xff] %v186_v52   ;;  %v114_v56 = vpop.permute.xlu1 %113  ;;  %v109_v57 = vpop.permute.xlu0 %108 }
  0x96   :  { %182 = vst [vmem:[%s313_s3] sm:$0xff] %v181_v53   ;;  %v131_v59 = vadd.f32 %v114_v56, %v75_v55  ;;  %v130_v60 = vadd.f32 %v109_v57, %v74_v54 }
  0x98   :  { %vm139_vm4 = vcmp.ge.f32.partialorder %v131_v59, 0.0  ;;  %v147_v61 = vmul.f32 0.2, %v131_v59  ;;  %vm138_vm5 = vcmp.ge.f32.partialorder %v130_v60, 0.0  ;;  %v146_v62 = vmul.f32 0.2, %v130_v60 }
  0x9a   :  { %v155_v2 = vsel %vm139_vm4, %v131_v59, %v147_v61  ;;  %v154_v3 = vsel %vm138_vm5, %v130_v60, %v146_v62 }
  0x9b   :  { %v191_v4 = vpack.c.bf16 %v155_v2, %v154_v3 }
  0x9d   :  { %199 = vst [vmem:[%s313_s3 + $0x10] sm:$0xff] %v191_v4   ;;  %v124_v6 = vpop.permute.xlu0 %123 }
  0x9e   :  { %v133_v8 = vadd.f32 %v124_v6, %v77_v5 }
  0xa0   :  { %vm141_vm7 = vcmp.ge.f32.partialorder %v133_v8, 0.0  ;;  %v149_v9 = vmul.f32 0.2, %v133_v8 }
  0xa2   :  { %v157_v11 = vsel %vm141_vm7, %v133_v8, %v149_v9 }
  0xa3   :  { %v196_v12 = vpack.c.bf16 %v157_v11, %v156_v10 }
  0xa5   :  { %200 = vst [vmem:[%s313_s3 + $0x18] sm:$0xff] %v196_v12  }

// kernel: generator_forward.7
= control target key start
LH: loop header
LB: loop body
LE: loop exit
PB: predicated region body
PF: predicated region fallthrough
CT: control target
= control target key end

     0   :  { %vm235_vm0 = vcmask 261120   ;;  %vm359_vm1 = vcmask 7168   ;;  %s825_s1 = inlined_call_operand.vmem [shape: bf16[288,128], index: 1, kind: input, shape index: {}]   ;;  %s826_s0 = inlined_call_operand.vmem [shape: bf16[64,288], index: 0, kind: input, shape index: {}]   ;;  %s827_s2 = inlined_call_operand.vmem [shape: f32[64,128], index: 2, kind: output, shape index: {0}]   ;;  %s828_s3 = inlined_call_operand.vmem [shape: f32[1,64,1], index: 3, kind: output, shape index: {1}]   ;;  %s829_s4 = inlined_call_operand.vmem [shape: f32[1,64,1], index: 4, kind: output, shape index: {2}]  }
   0x1   :  { %v555_v0 = vld [vmem:[%s825_s1 + $0x38] sm:$0xff]  ;;  %v565_v2 = vld [vmem:[%s825_s1 + $0x88] sm:$0xff]  ;;  %v554_v3 = vld [vmem:[%s825_s1 + $0x30] sm:$0xff] }
   0x2   :  { %v563_v1 = vld [vmem:[%s825_s1 + $0x78] sm:$0xff]  ;;  %248 = vmatpush.bf16.msra.mxu0 %v555_v0  ;;  %566 = vmatpush.bf16.msra.mxu3 %v555_v0  ;;  %v562_v4 = vld [vmem:[%s825_s1 + $0x70] sm:$0xff]  ;;  %v564_v5 = vld [vmem:[%s825_s1 + $0x80] sm:$0xff] }
   0x3   :  { %574 = vmatpush.bf16.msra.mxu1 %v563_v1  ;;  %312 = vmatpush.bf16.msra.mxu2 %v565_v2  ;;  %v422_v6 = vld [vmem:[%s826_s0 + $0x8] sm:$0xf]  ;;  %v538_v7 = vld [vmem:[%s826_s0 + $0x10] sm:$0xf0]  ;;  %v552_v11 = vld [vmem:[%s825_s1 + $0x20] sm:$0xff] }
   0x4   :  { %v553_v8 = vld [vmem:[%s825_s1 + $0x28] sm:$0xff]  ;;  %v423_v10 = vor.u32 %v538_v7, %v422_v6  ;;  %v560_v12 = vld [vmem:[%s825_s1 + $0x60] sm:$0xff]  ;;  %v551_v13 = vld [vmem:[%s825_s1 + $0x18] sm:$0xff] }
   0x5   :  { %v561_v9 = vld [vmem:[%s825_s1 + $0x68] sm:$0xff]  ;;  %v559_v14 = vld [vmem:[%s825_s1 + $0x58] sm:$0xff]  ;;  %v550_v15 = vld [vmem:[%s825_s1 + $0x10] sm:$0xff] }
   0x6   :  { %249 = vmatpush.bf16.msra.mxu0 %v554_v3  ;;  %567 = vmatpush.bf16.msra.mxu3 %v554_v3  ;;  %v558_v16 = vld [vmem:[%s825_s1 + $0x50] sm:$0xff]  ;;  %v434_v17 = vld [vmem:[%s826_s0 + $0x20] sm:$0xf]  ;;  %v541_v18 = vld [vmem:[%s826_s0 + $0x28] sm:$0xf0] }
   0x7   :  { %575 = vmatpush.bf16.msra.mxu1 %v562_v4  ;;  %313 = vmatpush.bf16.msra.mxu2 %v564_v5  ;;  %v549_v19 = vld [vmem:[%s825_s1 + $0x8] sm:$0xff]  ;;  %v435_v21 = vor.u32 %v541_v18, %v434_v17  ;;  %v548_v22 = vld [vmem:[%s825_s1] sm:$0xff]  ;;  %v426_v23 = vld [vmem:[%s826_s0 + $0x18] sm:$0xf] }
   0x8   :  { %v557_v20 = vld [vmem:[%s825_s1 + $0x48] sm:$0xff]  ;;  %v540_v24 = vld [vmem:[%s826_s0 + $0x20] sm:$0xf0]  ;;  %v414_v25 = vld [vmem:[%s826_s0] sm:$0xf] }
   0x9   :  { %v537_v26 = vld [vmem:[%s826_s0 + $0x8] sm:$0xf0]  ;;  %v556_v27 = vld [vmem:[%s825_s1 + $0x40] sm:$0xff]  ;;  %v539_v28 = vld [vmem:[%s826_s0 + $0x1c] sm:$0xf]  ;;  %v427_v30 = vor.u32 %v540_v24, %v426_v23 }
   0xa   :  { %250 = vmatpush.bf16.msra.mxu0 %v553_v8  ;;  %568 = vmatpush.bf16.msra.mxu3 %v553_v8  ;;  %v428_v29 = vld [vmem:[%s826_s0 + $0x24] sm:$0xf0]  ;;  %v415_v31 = vor.u32 %v537_v26, %v414_v25  ;;  %v446_v33 = vld [vmem:[%s826_s0 + $0x38] sm:$0xf]  ;;  %v544_v34 = vld [vmem:[%s826_s0 + $0x40] sm:$0xf0] }
   0xb   :  { %576 = vmatpush.bf16.msra.mxu1 %v561_v9  ;;  %532 = vmatmul.msk.bf16.vlgmr.msra.gmra.mxu2 %vm235_vm0, %v423_v10  ;;  %v431_v32 = vor.u32 %v539_v28, %v428_v29  ;;  %v447_v35 = vor.u32 %v544_v34, %v446_v33  ;;  %v438_v36 = vld [vmem:[%s826_s0 + $0x30] sm:$0xf]  ;;  %v543_v37 = vld [vmem:[%s826_s0 + $0x38] sm:$0xf0]  ;;  %v542_v38 = vld [vmem:[%s826_s0 + $0x34] sm:$0xf] }
   0xc   :  { %v440_v39 = vld [vmem:[%s826_s0 + $0x3c] sm:$0xf0]  ;;  %v439_v40 = vor.u32 %v543_v37, %v438_v36  ;;  %v458_v42 = vld [vmem:[%s826_s0 + $0x50] sm:$0xf]  ;;  %v547_v43 = vld [vmem:[%s826_s0 + $0x58] sm:$0xf0] }
   0xd   :  { %v443_v41 = vor.u32 %v542_v38, %v440_v39  ;;  %v536_v44 = vld [vmem:[%s826_s0 + $0x4] sm:$0xf]  ;;  %v416_v45 = vld [vmem:[%s826_s0 + $0xc] sm:$0xf0]  ;;  %v459_v46 = vor.u32 %v547_v43, %v458_v42  ;;  %v450_v48 = vld [vmem:[%s826_s0 + $0x48] sm:$0xf] }
   0xe   :  { %251 = vmatpush.bf16.msra.mxu0 %v552_v11  ;;  %569 = vmatpush.bf16.msra.mxu3 %v552_v11  ;;  %v419_v47 = vor.u32 %v536_v44, %v416_v45  ;;  %v546_v49 = vld [vmem:[%s826_s0 + $0x50] sm:$0xf0]  ;;  %v545_v50 = vld [vmem:[%s826_s0 + $0x4c] sm:$0xf]  ;;  %v452_v51 = vld [vmem:[%s826_s0 + $0x54] sm:$0xf0] }
   0xf   :  { %577 = vmatpush.bf16.msra.mxu1 %v560_v12  ;;  %v451_v52 = vor.u32 %v546_v49, %v450_v48  ;;  %v455_v53 = vor.u32 %v545_v50, %v452_v51 }
  0x12   :  { %252 = vmatpush.bf16.msra.mxu0 %v551_v13  ;;  %570 = vmatpush.bf16.msra.mxu3 %v551_v13 }
  0x13   :  { %578 = vmatpush.bf16.msra.mxu1 %v559_v14 }
  0x16   :  { %253 = vmatpush.bf16.msra.mxu0 %v550_v15  ;;  %571 = vmatpush.bf16.msra.mxu3 %v550_v15 }
  0x17   :  { %579 = vmatpush.bf16.msra.mxu1 %v558_v16 }
  0x1a   :  { %254 = vmatpush.bf16.msra.mxu0 %v549_v19  ;;  %572 = vmatpush.bf16.msra.mxu3 %v549_v19 }
  0x1b   :  { %580 = vmatpush.bf16.msra.mxu1 %v557_v20  ;;  %533 = vmatmul.msk.bf16.gmra.mxu2 %vm235_vm0, %v435_v21 }
  0x1e   :  { %255 = vmatpush.bf16.msra.mxu0 %v548_v22  ;;  %573 = vmatpush.bf16.msra.mxu3 %v548_v22 }
  0x1f   :  { %581 = vmatpush.bf16.msra.mxu1 %v556_v27 }
  0x21   :  { %261 = vmatmul.bf16.vlgmr.msra.gmra.mxu3 %v427_v30  ;;  %256 = vmatmul.bf16.vlgmr.msra.gmra.mxu0 %v415_v31 }
  0x22   :  { %277 = vmatpush.bf16.msrb.mxu0 %v563_v1  ;;  %290 = vmatmul.bf16.vlgmr.msra.gmra.mxu1 %v431_v32 }
  0x26   :  { %278 = vmatpush.bf16.msrb.mxu0 %v562_v4 }
  0x2a   :  { %279 = vmatpush.bf16.msrb.mxu0 %v561_v9 }
  0x2b   :  { %534 = vmatmul.msk.bf16.gmra.mxu2 %vm235_vm0, %v447_v35 }
  0x2e   :  { %280 = vmatpush.bf16.msrb.mxu0 %v560_v12 }
  0x31   :  { %266 = vmatmul.bf16.gmra.mxu3 %v439_v40 }
  0x32   :  { %281 = vmatpush.bf16.msrb.mxu0 %v559_v14  ;;  %295 = vmatmul.bf16.gmra.mxu1 %v443_v41 }
  0x36   :  { %282 = vmatpush.bf16.msrb.mxu0 %v558_v16 }
  0x3a   :  { %283 = vmatpush.bf16.msrb.mxu0 %v557_v20 }
  0x3b   :  { %535 = vmatmul.msk.bf16.gmra.mxu2 %vm235_vm0, %v459_v46 }
  0x3e   :  { %284 = vmatpush.bf16.msrb.mxu0 %v556_v27 }
  0x41   :  { %285 = vmatmul.bf16.vlgmr.msrb.gmra.mxu0 %v419_v47  ;;  %271 = vmatmul.bf16.gmra.mxu3 %v451_v52 }
  0x42   :  { %300 = vmatmul.bf16.gmra.mxu1 %v455_v53 }
  0x8e   :  { %v315_v54 = vpop.f32.mrf.mxu2 }
  0x96   :  { %v317_v55 = vpop.f32.mrf.mxu2 }
  0x9e   :  { %v320_v56 = vpop.f32.mrf.mxu2  ;;  %v257_v63 = vpop.f32.mrf.mxu0 }
  0x9f   :  { %v291_v57 = vpop.f32.mrf.mxu1 }
  0xa4   :  { %v262_v58 = vpop.f32.mrf.mxu3 }
  0xa5   :  { %v292_v59 = vadd.f32 %v291_v57, %v262_v58 }
  0xa6   :  { %v322_v60 = vpop.f32.mrf.mxu2  ;;  %v259_v7 = vpop.f32.mrf.mxu0 }
  0xa7   :  { %v321_v61 = vadd.f32 %v320_v56, %v292_v59  ;;  %v293_v62 = vpop.f32.mrf.mxu1 }
  0xa9   :  { %337 = vst [vmem:[%s827_s2 + $0x10] sm:$0xff] %v321_v61  ;;  %347 = vadd.xlane.f32.xlu1 %v321_v61  ;;  %v370_v2 = vmul.f32 %v321_v61, %v321_v61 }
  0xac   :  { %v264_v0 = vpop.f32.mrf.mxu3 }
  0xad   :  { %v294_v1 = vadd.f32 %v293_v62, %v264_v0 }
  0xae   :  { %v325_v3 = vpop.f32.mrf.mxu2 }
  0xaf   :  { %v323_v4 = vadd.f32 %v322_v60, %v294_v1  ;;  %v296_v5 = vpop.f32.mrf.mxu1 }
  0xb1   :  { %338 = vst [vmem:[%s827_s2 + $0x18] sm:$0xff] %v323_v4  ;;  %380 = vadd.xlane.f32.xlu1 %v370_v2  ;;  %v371_v6 = vmul.f32 %v323_v4, %v323_v4 }
  0xb3   :  { %382 = vadd.xlane.f32.xlu2 %v371_v6 }
  0xb4   :  { %v267_v8 = vpop.f32.mrf.mxu3 }
  0xb5   :  { %v297_v9 = vadd.f32 %v296_v5, %v267_v8 }
  0xb6   :  { %v327_v12 = vpop.f32.mrf.mxu2 }
  0xb7   :  { %v326_v10 = vadd.f32 %v325_v3, %v297_v9  ;;  %v298_v11 = vpop.f32.mrf.mxu1 }
  0xb9   :  { %339 = vst [vmem:[%s827_s2 + $0x20] sm:$0xff] %v326_v10  ;;  %349 = vadd.xlane.f32.xlu1 %v323_v4  ;;  %v372_v32 = vmul.f32 %v326_v10, %v326_v10 }
  0xbc   :  { %v269_v15 = vpop.f32.mrf.mxu3 }
  0xbd   :  { %v299_v16 = vadd.f32 %v298_v11, %v269_v15 }
  0xbe   :  { %v286_v13 = vpop.f32.mrf.mxu0  ;;  %v330_v21 = vpop.f32.mrf.mxu2 }
  0xbf   :  { %v287_v14 = vadd.f32 %v286_v13, %v257_v63  ;;  %v328_v18 = vadd.f32 %v327_v12, %v299_v16  ;;  %v301_v20 = vpop.f32.mrf.mxu1 }
  0xc1   :  { %v316_v17 = vadd.f32 %v315_v54, %v287_v14  ;;  %340 = vst [vmem:[%s827_s2 + $0x28] sm:$0xff] %v328_v18  ;;  %v373_v36 = vmul.f32 %v328_v18, %v328_v18 }
  0xc3   :  { %335 = vst [vmem:[%s827_s2] sm:$0xff] %v316_v17  ;;  %343 = vadd.xlane.f32.xlu0 %v316_v17  ;;  %v368_v19 = vmul.f32 %v316_v17, %v316_v17 }
  0xc4   :  { %v272_v24 = vpop.f32.mrf.mxu3 }
  0xc5   :  { %376 = vadd.xlane.f32.xlu2 %v368_v19  ;;  %v302_v25 = vadd.f32 %v301_v20, %v272_v24 }
  0xc6   :  { %v288_v22 = vpop.f32.mrf.mxu0  ;;  %v332_v30 = vpop.f32.mrf.mxu2 }
  0xc7   :  { %v289_v23 = vadd.f32 %v288_v22, %v259_v7  ;;  %v331_v27 = vadd.f32 %v330_v21, %v302_v25  ;;  %v303_v28 = vpop.f32.mrf.mxu1 }
  0xc9   :  { %v318_v26 = vadd.f32 %v317_v55, %v289_v23  ;;  %341 = vst [vmem:[%s827_s2 + $0x30] sm:$0xff] %v331_v27  ;;  %v374_v35 = vmul.f32 %v331_v27, %v331_v27 }
  0xcb   :  { %336 = vst [vmem:[%s827_s2 + $0x8] sm:$0xff] %v318_v26  ;;  %345 = vadd.xlane.f32.xlu0 %v318_v26  ;;  %v369_v34 = vmul.f32 %v318_v26, %v318_v26 }
  0xcc   :  { %v274_v29 = vpop.f32.mrf.mxu3 }
  0xcd   :  { %351 = vadd.xlane.f32.xlu2 %v326_v10  ;;  %v304_v31 = vadd.f32 %v303_v28, %v274_v29 }
  0xcf   :  { %v333_v33 = vadd.f32 %v332_v30, %v304_v31 }
  0xd1   :  { %342 = vst [vmem:[%s827_s2 + $0x38] sm:$0xff] %v333_v33  ;;  %357 = vadd.xlane.f32.xlu1 %v333_v33  ;;  %v375_v37 = vmul.f32 %v333_v33, %v333_v33 }
  0xd3   :  { %384 = vadd.xlane.f32.xlu0 %v372_v32 }
  0xd5   :  { %353 = vadd.xlane.f32.xlu2 %v328_v18 }
  0xd9   :  { %386 = vadd.xlane.f32.xlu1 %v373_v36 }
  0xdb   :  { %378 = vadd.xlane.f32.xlu0 %v369_v34 }
  0xdd   :  { %388 = vadd.xlane.f32.xlu2 %v374_v35 }
  0xe3   :  { %355 = vadd.xlane.f32.xlu0 %v331_v27 }
  0xeb   :  { %390 = vadd.xlane.f32.xlu0 %v375_v37 }
 0x11c   :  { %v348_v38 = vpop.xlane.xlu1 %347 }
 0x11d   :  { %362 = vst.msk [vmem:[%s828_s3 + $0x10] sm:$0xff] %vm359_vm1, %v348_v38 }
 0x124   :  { %v381_v39 = vpop.xlane.xlu1 %380 }
 0x125   :  { %394 = vst.msk [vmem:[%s829_s4 + $0x10] sm:$0xff] %vm359_vm1, %v381_v39 }
 0x126   :  { %v383_v40 = vpop.xlane.xlu2 %382 }
 0x127   :  { %395 = vst.msk [vmem:[%s829_s4 + $0x18] sm:$0xff] %vm359_vm1, %v383_v40 }
 0x12c   :  { %v350_v41 = vpop.xlane.xlu1 %349 }
 0x12d   :  { %363 = vst.msk [vmem:[%s828_s3 + $0x18] sm:$0xff] %vm359_vm1, %v350_v41 }
 0x136   :  { %v344_v42 = vpop.xlane.xlu0 %343 }
 0x137   :  { %360 = vst.msk [vmem:[%s828_s3] sm:$0xff] %vm359_vm1, %v344_v42 }
 0x138   :  { %v377_v43 = vpop.xlane.xlu2 %376 }
 0x139   :  { %392 = vst.msk [vmem:[%s829_s4] sm:$0xff] %vm359_vm1, %v377_v43 }
 0x13e   :  { %v346_v44 = vpop.xlane.xlu0 %345 }
 0x13f   :  { %361 = vst.msk [vmem:[%s828_s3 + $0x8] sm:$0xff] %vm359_vm1, %v346_v44 }
 0x140   :  { %v352_v45 = vpop.xlane.xlu2 %351 }
 0x141   :  { %364 = vst.msk [vmem:[%s828_s3 + $0x20] sm:$0xff] %vm359_vm1, %v352_v45 }
 0x144   :  { %v358_v47 = vpop.xlane.xlu1 %357 }
 0x145   :  { %367 = vst.msk [vmem:[%s828_s3 + $0x38] sm:$0xff] %vm359_vm1, %v358_v47 }
 0x146   :  { %v385_v46 = vpop.xlane.xlu0 %384 }
 0x147   :  { %396 = vst.msk [vmem:[%s829_s4 + $0x20] sm:$0xff] %vm359_vm1, %v385_v46 }
 0x148   :  { %v354_v48 = vpop.xlane.xlu2 %353 }
 0x149   :  { %365 = vst.msk [vmem:[%s828_s3 + $0x28] sm:$0xff] %vm359_vm1, %v354_v48 }
 0x14c   :  { %v387_v50 = vpop.xlane.xlu1 %386 }
 0x14d   :  { %397 = vst.msk [vmem:[%s829_s4 + $0x28] sm:$0xff] %vm359_vm1, %v387_v50 }
 0x14e   :  { %v379_v49 = vpop.xlane.xlu0 %378 }
 0x14f   :  { %393 = vst.msk [vmem:[%s829_s4 + $0x8] sm:$0xff] %vm359_vm1, %v379_v49 }
 0x150   :  { %v389_v51 = vpop.xlane.xlu2 %388 }
 0x151   :  { %398 = vst.msk [vmem:[%s829_s4 + $0x30] sm:$0xff] %vm359_vm1, %v389_v51 }
 0x156   :  { %v356_v52 = vpop.xlane.xlu0 %355 }
 0x157   :  { %366 = vst.msk [vmem:[%s828_s3 + $0x30] sm:$0xff] %vm359_vm1, %v356_v52 }
 0x15e   :  { %v391_v53 = vpop.xlane.xlu0 %390 }
 0x15f   :  { %399 = vst.msk [vmem:[%s829_s4 + $0x38] sm:$0xff] %vm359_vm1, %v391_v53 }

// kernel: tile.38
= control target key start
LH: loop header
LB: loop body
LE: loop exit
PB: predicated region body
PF: predicated region fallthrough
CT: control target
= control target key end

     0   :  { %s22_s0 = inlined_call_operand.vmem [shape: f32[8], index: 0, kind: input, shape index: {}]   ;;  %s23_s1 = inlined_call_operand.vmem [shape: f32[4,8], index: 1, kind: output, shape index: {}]  }
   0x1   :  { %v4_v0 = vld [vmem:[%s22_s0] ss:$0 sm:$0xff] }
   0x2   :  { %5 = vst [vmem:[%s23_s1] sm:$0xf] %v4_v0 }

// kernel: tile.2
= control target key start
LH: loop header
LB: loop body
LE: loop exit
PB: predicated region body
PF: predicated region fallthrough
CT: control target
= control target key end

     0   :  { %s66_s8 = smov 125   ;;  %s67_s9 = smov 123   ;;  %vm7_vm0 = vcmask 7168   ;;  %s117_s0 = inlined_call_operand.vmem [shape: f32[4,8], index: 0, kind: input, shape index: {}]   ;;  %s118_s1 = inlined_call_operand.vmem [shape: f32[32,1], index: 1, kind: output, shape index: {}]  }
   0x1   :  { %v4_v0 = vld [vmem:[%s117_s0] sm:$0xf]  ;;  %s65_s0 = smov 127   ;;  %s68_s10 = smov 126  }
   0x2   :  { %5 = vst [vmem:[#allocation0] sm:$0xf] %v4_v0  ;;  %s69_s11 = smov 124   ;;  %s70_s12 = smov 122  }
   0x3   :  { %s71_s13 = smov 121  }
   0x9   :  { %v9_v1 = vld [vmem:[#allocation0] sm:$0xf]  }
   0xa   :  { %v21_v2 = vld [vmem:[#allocation0] sm:$0xf]   ;;  %10 = vrot.lane.b32.xlu0 %v9_v1, %s65_s0 }
   0xb   :  { %22 = vrot.lane.b32.xlu1 %v21_v2, %s66_s8  ;;  %v33_v3 = vld [vmem:[#allocation0] sm:$0xf]  }
   0xc   :  { %34 = vrot.lane.b32.xlu2 %v33_v3, %s67_s9  ;;  %v15_v4 = vld [vmem:[#allocation0] sm:$0xf]  }
   0xd   :  { %v27_v5 = vld [vmem:[#allocation0] sm:$0xf]  }
   0xe   :  { %v39_v6 = vld [vmem:[#allocation0] sm:$0xf]  }
   0xf   :  { %v45_v7 = vld [vmem:[#allocation0] sm:$0xf]  }
  0x10   :  { %v6_v8 = vld [vmem:[#allocation0] sm:$0xf]  }
  0x11   :  { %8 = vst.msk [vmem:[%s118_s1] ss:$8 sm:$0xf] %vm7_vm0, %v6_v8  }
  0x12   :  { %16 = vrot.lane.b32.xlu0 %v15_v4, %s68_s10 }
  0x13   :  { %28 = vrot.lane.b32.xlu1 %v27_v5, %s69_s11 }
  0x14   :  { %40 = vrot.lane.b32.xlu2 %v39_v6, %s70_s12 }
  0x1a   :  { %46 = vrot.lane.b32.xlu0 %v45_v7, %s71_s13 }
  0x66   :  { %v35_v9 = vpop.permute.xlu2 %34  }
  0x67   :  { %55 = vst.msk [vmem:[%s118_s1 + $0x5] ss:$8 sm:$0xf] %vm7_vm0, %v35_v9  }
  0x6e   :  { %v41_v10 = vpop.permute.xlu2 %40  }
  0x6f   :  { %56 = vst.msk [vmem:[%s118_s1 + $0x6] ss:$8 sm:$0xf] %vm7_vm0, %v41_v10  }
  0x7c   :  { %v11_v11 = vpop.permute.xlu0 %10  }
  0x7d   :  { %v23_v12 = vpop.permute.xlu1 %22   ;;  %51 = vst.msk [vmem:[%s118_s1 + $0x1] ss:$8 sm:$0xf] %vm7_vm0, %v11_v11  }
  0x7e   :  { %53 = vst.msk [vmem:[%s118_s1 + $0x3] ss:$8 sm:$0xf] %vm7_vm0, %v23_v12  }
  0x84   :  { %v17_v13 = vpop.permute.xlu0 %16  }
  0x85   :  { %v29_v14 = vpop.permute.xlu1 %28   ;;  %52 = vst.msk [vmem:[%s118_s1 + $0x2] ss:$8 sm:$0xf] %vm7_vm0, %v17_v13  }
  0x86   :  { %54 = vst.msk [vmem:[%s118_s1 + $0x4] ss:$8 sm:$0xf] %vm7_vm0, %v29_v14  }
  0x8c   :  { %v47_v15 = vpop.permute.xlu0 %46  }
  0x8d   :  { %57 = vst.msk [vmem:[%s118_s1 + $0x7] ss:$8 sm:$0xf] %vm7_vm0, %v47_v15  }

// kernel: generator_forward.9
= control target key start
LH: loop header
LB: loop body
LE: loop exit
PB: predicated region body
PF: predicated region fallthrough
CT: control target
= control target key end

     0   :  { %vm253_vm0 = vcmask 130048   ;;  %vm448_vm1 = vcmask 7168   ;;  %s1093_s1 = inlined_call_operand.vmem [shape: bf16[144,512], index: 1, kind: input, shape index: {}]   ;;  %s1094_s0 = inlined_call_operand.vmem [shape: bf16[32,144], index: 0, kind: input, shape index: {}]   ;;  %s1095_s2 = inlined_call_operand.vmem [shape: f32[32,512], index: 2, kind: output, shape index: {0}]   ;;  %s1096_s3 = inlined_call_operand.vmem [shape: f32[1,32,1], index: 3, kind: output, shape index: {1}]   ;;  %s1097_s4 = inlined_call_operand.vmem [shape: f32[1,32,1], index: 4, kind: output, shape index: {2}]  }
   0x1   :  { %v635_v0 = vld [vmem:[%s1093_s1 + $0xe0] sm:$0xf]  ;;  %v707_v1 = vld [vmem:[%s1093_s1 + $0xec] sm:$0xf0]  ;;  %v705_v5 = vld [vmem:[%s1093_s1 + $0xe4] sm:$0xf] }
   0x2   :  { %v651_v2 = vld [vmem:[%s1093_s1 + $0x100] sm:$0xf]  ;;  %v636_v3 = vor.u32 %v707_v1, %v635_v0  ;;  %v711_v4 = vld [vmem:[%s1093_s1 + $0x10c] sm:$0xf0]  ;;  %v637_v6 = vld [vmem:[%s1093_s1 + $0xf0] sm:$0xf0] }
   0x3   :  { %v652_v7 = vor.u32 %v711_v4, %v651_v2  ;;  %v640_v8 = vor.u32 %v705_v5, %v637_v6  ;;  %v709_v9 = vld [vmem:[%s1093_s1 + $0x104] sm:$0xf]  ;;  %v653_v10 = vld [vmem:[%s1093_s1 + $0x110] sm:$0xf0]  ;;  %v509_v13 = vld [vmem:[%s1094_s0 + $0x8] sm:$0xf0] }
   0x4   :  { %v673_v11 = vld [vmem:[%s1094_s0 + $0x4] sm:$0xf]  ;;  %260 = vmatpush.bf16.msra.mxu0 %v636_v3  ;;  %v656_v12 = vor.u32 %v709_v9, %v653_v10  ;;  %v659_v14 = vld [vmem:[%s1093_s1 + $0x108] sm:$0xf]  ;;  %v712_v15 = vld [vmem:[%s1093_s1 + $0x114] sm:$0xf0] }
   0x5   :  { %286 = vmatpush.bf16.msra.mxu1 %v652_v7  ;;  %298 = vmatpush.bf16.msra.mxu2 %v640_v8  ;;  %v783_v16 = vor.u32 %v673_v11, %v509_v13  ;;  %v660_v17 = vor.u32 %v712_v15, %v659_v14  ;;  %v619_v18 = vld [vmem:[%s1093_s1 + $0xc0] sm:$0xf]  ;;  %v703_v19 = vld [vmem:[%s1093_s1 + $0xcc] sm:$0xf0]  ;;  %v701_v20 = vld [vmem:[%s1093_s1 + $0xc4] sm:$0xf] }
   0x6   :  { %324 = vmatpush.bf16.msra.mxu3 %v656_v12  ;;  %v620_v21 = vor.u32 %v703_v19, %v619_v18  ;;  %v621_v22 = vld [vmem:[%s1093_s1 + $0xd0] sm:$0xf0]  ;;  %v643_v23 = vld [vmem:[%s1093_s1 + $0xe8] sm:$0xf]  ;;  %v708_v24 = vld [vmem:[%s1093_s1 + $0xf4] sm:$0xf0] }
   0x7   :  { %v624_v25 = vor.u32 %v701_v20, %v621_v22  ;;  %v644_v26 = vor.u32 %v708_v24, %v643_v23  ;;  %v603_v27 = vld [vmem:[%s1093_s1 + $0xa0] sm:$0xf]  ;;  %v699_v28 = vld [vmem:[%s1093_s1 + $0xac] sm:$0xf0]  ;;  %v697_v29 = vld [vmem:[%s1093_s1 + $0xa4] sm:$0xf] }
   0x8   :  { %665 = vmatmul.msk.bf16.vlgmr.msra.gmra.mxu1 %vm253_vm0, %v783_v16  ;;  %261 = vmatpush.bf16.msra.mxu0 %v620_v21  ;;  %v604_v30 = vor.u32 %v699_v28, %v603_v27  ;;  %v605_v31 = vld [vmem:[%s1093_s1 + $0xb0] sm:$0xf0]  ;;  %v627_v32 = vld [vmem:[%s1093_s1 + $0xc8] sm:$0xf]  ;;  %v704_v33 = vld [vmem:[%s1093_s1 + $0xd4] sm:$0xf0] }
   0x9   :  { %667 = vmatmul.msk.bf16.vlgmr.msra.gmra.mxu3 %vm253_vm0, %v783_v16  ;;  %299 = vmatpush.bf16.msra.mxu2 %v624_v25  ;;  %v608_v34 = vor.u32 %v697_v29, %v605_v31  ;;  %v587_v35 = vld [vmem:[%s1093_s1 + $0x80] sm:$0xf]  ;;  %v695_v36 = vld [vmem:[%s1093_s1 + $0x8c] sm:$0xf0]  ;;  %v628_v37 = vor.u32 %v704_v33, %v627_v32  ;;  %v693_v38 = vld [vmem:[%s1093_s1 + $0x84] sm:$0xf] }
   0xa   :  { %362 = vmatpush.bf16.msrb.mxu3 %v660_v17  ;;  %336 = vmatpush.bf16.msrb.mxu1 %v644_v26  ;;  %v589_v39 = vld [vmem:[%s1093_s1 + $0x90] sm:$0xf0]  ;;  %v611_v40 = vld [vmem:[%s1093_s1 + $0xa8] sm:$0xf]  ;;  %v700_v41 = vld [vmem:[%s1093_s1 + $0xb4] sm:$0xf0]  ;;  %v588_v42 = vor.u32 %v695_v36, %v587_v35 }
   0xb   :  { %v592_v43 = vor.u32 %v693_v38, %v589_v39  ;;  %v571_v44 = vld [vmem:[%s1093_s1 + $0x60] sm:$0xf]  ;;  %v691_v45 = vld [vmem:[%s1093_s1 + $0x6c] sm:$0xf0]  ;;  %v612_v46 = vor.u32 %v700_v41, %v611_v40  ;;  %v689_v47 = vld [vmem:[%s1093_s1 + $0x64] sm:$0xf] }
   0xc   :  { %262 = vmatpush.bf16.msra.mxu0 %v604_v30  ;;  %v573_v48 = vld [vmem:[%s1093_s1 + $0x70] sm:$0xf0]  ;;  %v595_v49 = vld [vmem:[%s1093_s1 + $0x88] sm:$0xf]  ;;  %v696_v50 = vld [vmem:[%s1093_s1 + $0x94] sm:$0xf0]  ;;  %v572_v51 = vor.u32 %v691_v45, %v571_v44 }
   0xd   :  { %300 = vmatpush.bf16.msra.mxu2 %v608_v34  ;;  %v675_v52 = vld [vmem:[%s1094_s0 + $0x14] sm:$0xf]  ;;  %v576_v53 = vor.u32 %v689_v47, %v573_v48  ;;  %v517_v54 = vld [vmem:[%s1094_s0 + $0x18] sm:$0xf0]  ;;  %v555_v55 = vld [vmem:[%s1093_s1 + $0x40] sm:$0xf]  ;;  %v596_v57 = vor.u32 %v696_v50, %v595_v49 }
   0xe   :  { %337 = vmatpush.bf16.msrb.mxu1 %v628_v37  ;;  %v687_v56 = vld [vmem:[%s1093_s1 + $0x4c] sm:$0xf0]  ;;  %v685_v58 = vld [vmem:[%s1093_s1 + $0x44] sm:$0xf]  ;;  %v557_v59 = vld [vmem:[%s1093_s1 + $0x50] sm:$0xf0]  ;;  %v885_v62 = vor.u32 %v675_v52, %v517_v54 }
   0xf   :  { %v579_v60 = vld [vmem:[%s1093_s1 + $0x68] sm:$0xf]  ;;  %v692_v61 = vld [vmem:[%s1093_s1 + $0x74] sm:$0xf0]  ;;  %v556_v63 = vor.u32 %v687_v56, %v555_v55  ;;  %v560_v0 = vor.u32 %v685_v58, %v557_v59  ;;  %v539_v1 = vld [vmem:[%s1093_s1 + $0x20] sm:$0xf] }
  0x10   :  { %263 = vmatpush.bf16.msra.mxu0 %v588_v42  ;;  %v683_v2 = vld [vmem:[%s1093_s1 + $0x2c] sm:$0xf0]  ;;  %v710_v3 = vld [vmem:[%s1093_s1 + $0x10c] sm:$0xf]  ;;  %v580_v4 = vor.u32 %v692_v61, %v579_v60  ;;  %v681_v5 = vld [vmem:[%s1093_s1 + $0x24] sm:$0xf] }
  0x11   :  { %301 = vmatpush.bf16.msra.mxu2 %v592_v43  ;;  %v541_v6 = vld [vmem:[%s1093_s1 + $0x30] sm:$0xf0]  ;;  %v661_v7 = vld [vmem:[%s1093_s1 + $0x118] sm:$0xf0]  ;;  %v563_v8 = vld [vmem:[%s1093_s1 + $0x48] sm:$0xf]  ;;  %v540_v10 = vor.u32 %v683_v2, %v539_v1 }
  0x12   :  { %338 = vmatpush.bf16.msrb.mxu1 %v612_v46  ;;  %v688_v9 = vld [vmem:[%s1093_s1 + $0x54] sm:$0xf0]  ;;  %v664_v11 = vor.u32 %v710_v3, %v661_v7  ;;  %v544_v12 = vor.u32 %v681_v5, %v541_v6  ;;  %v523_v13 = vld [vmem:[%s1093_s1] sm:$0xf]  ;;  %v679_v14 = vld [vmem:[%s1093_s1 + $0xc] sm:$0xf0] }
  0x13   :  { %v677_v15 = vld [vmem:[%s1093_s1 + $0x4] sm:$0xf]  ;;  %v564_v17 = vor.u32 %v688_v9, %v563_v8  ;;  %v525_v18 = vld [vmem:[%s1093_s1 + $0x10] sm:$0xf0]  ;;  %v706_v19 = vld [vmem:[%s1093_s1 + $0xec] sm:$0xf]  ;;  %v524_v23 = vor.u32 %v679_v14, %v523_v13 }
  0x14   :  { %264 = vmatpush.bf16.msra.mxu0 %v572_v51  ;;  %v645_v20 = vld [vmem:[%s1093_s1 + $0xf8] sm:$0xf0]  ;;  %721 = vmatpush.bf16.msra.mxu3 %v664_v11  ;;  %v547_v21 = vld [vmem:[%s1093_s1 + $0x28] sm:$0xf]  ;;  %v684_v22 = vld [vmem:[%s1093_s1 + $0x34] sm:$0xf0]  ;;  %v528_v26 = vor.u32 %v677_v15, %v525_v18 }
  0x15   :  { %302 = vmatpush.bf16.msra.mxu2 %v576_v53  ;;  %v507_v24 = vld [vmem:[%s1094_s0] sm:$0xf]  ;;  %v674_v25 = vld [vmem:[%s1094_s0 + $0x4] sm:$0xf0]  ;;  %v648_v27 = vor.u32 %v706_v19, %v645_v20  ;;  %v548_v28 = vor.u32 %v684_v22, %v547_v21  ;;  %v702_v29 = vld [vmem:[%s1093_s1 + $0xcc] sm:$0xf] }
  0x16   :  { %339 = vmatpush.bf16.msrb.mxu1 %v596_v57  ;;  %v629_v30 = vld [vmem:[%s1093_s1 + $0xd8] sm:$0xf0]  ;;  %v508_v31 = vor.u32 %v674_v25, %v507_v24  ;;  %v531_v32 = vld [vmem:[%s1093_s1 + $0x8] sm:$0xf]  ;;  %v680_v33 = vld [vmem:[%s1093_s1 + $0x14] sm:$0xf0] }
  0x17   :  { %v632_v34 = vor.u32 %v702_v29, %v629_v30  ;;  %v532_v35 = vor.u32 %v680_v33, %v531_v32  ;;  %v698_v36 = vld [vmem:[%s1093_s1 + $0xac] sm:$0xf]  ;;  %v613_v37 = vld [vmem:[%s1093_s1 + $0xb8] sm:$0xf0]  ;;  %v515_v44 = vld [vmem:[%s1094_s0 + $0x10] sm:$0xf] }
  0x18   :  { %666 = vmatmul.msk.bf16.gmra.mxu1 %vm253_vm0, %v885_v62  ;;  %265 = vmatpush.bf16.msra.mxu0 %v556_v63  ;;  %v616_v38 = vor.u32 %v698_v36, %v613_v37  ;;  %v694_v39 = vld [vmem:[%s1093_s1 + $0x8c] sm:$0xf]  ;;  %v597_v40 = vld [vmem:[%s1093_s1 + $0x98] sm:$0xf0]  ;;  %v676_v45 = vld [vmem:[%s1094_s0 + $0x14] sm:$0xf0] }
  0x19   :  { %668 = vmatmul.msk.bf16.gmra.mxu3 %vm253_vm0, %v885_v62  ;;  %303 = vmatpush.bf16.msra.mxu2 %v560_v0  ;;  %v600_v41 = vor.u32 %v694_v39, %v597_v40  ;;  %v690_v42 = vld [vmem:[%s1093_s1 + $0x6c] sm:$0xf]  ;;  %v581_v43 = vld [vmem:[%s1093_s1 + $0x78] sm:$0xf0]  ;;  %v516_v47 = vor.u32 %v676_v45, %v515_v44 }
  0x1a   :  { %340 = vmatpush.bf16.msrb.mxu1 %v580_v4  ;;  %v584_v46 = vor.u32 %v690_v42, %v581_v43  ;;  %v686_v48 = vld [vmem:[%s1093_s1 + $0x4c] sm:$0xf]  ;;  %v565_v49 = vld [vmem:[%s1093_s1 + $0x58] sm:$0xf0] }
  0x1b   :  { %v568_v50 = vor.u32 %v686_v48, %v565_v49  ;;  %v682_v51 = vld [vmem:[%s1093_s1 + $0x2c] sm:$0xf]  ;;  %v549_v52 = vld [vmem:[%s1093_s1 + $0x38] sm:$0xf0] }
  0x1c   :  { %266 = vmatpush.bf16.msra.mxu0 %v540_v10  ;;  %v552_v53 = vor.u32 %v682_v51, %v549_v52  ;;  %v678_v54 = vld [vmem:[%s1093_s1 + $0xc] sm:$0xf]  ;;  %v533_v55 = vld [vmem:[%s1093_s1 + $0x18] sm:$0xf0] }
  0x1d   :  { %304 = vmatpush.bf16.msra.mxu2 %v544_v12  ;;  %v536_v56 = vor.u32 %v678_v54, %v533_v55 }
  0x1e   :  { %341 = vmatpush.bf16.msrb.mxu1 %v564_v17 }
  0x20   :  { %267 = vmatpush.bf16.msra.mxu0 %v524_v23 }
  0x21   :  { %305 = vmatpush.bf16.msra.mxu2 %v528_v26 }
  0x22   :  { %342 = vmatpush.bf16.msrb.mxu1 %v548_v28 }
  0x23   :  { %268 = vmatmul.bf16.vlgmr.msra.gmra.mxu0 %v508_v31 }
  0x24   :  { %374 = vmatpush.bf16.msrb.mxu0 %v648_v27  ;;  %306 = vmatmul.bf16.vlgmr.msra.gmra.mxu2 %v508_v31 }
  0x25   :  { %400 = vmatpush.bf16.msrb.mxu2 %v664_v11 }
  0x26   :  { %343 = vmatpush.bf16.msrb.mxu1 %v532_v35 }
  0x28   :  { %375 = vmatpush.bf16.msrb.mxu0 %v632_v34 }
  0x29   :  { %344 = vmatmul.bf16.vlgmr.msrb.gmra.mxu1 %v508_v31  ;;  %669 = vmatmul.msk.bf16.vlgmr.msrb.gmra.mxu3 %vm253_vm0, %v783_v16 }
  0x2a   :  { %713 = vmatpush.bf16.msra.mxu1 %v648_v27 }
  0x2c   :  { %376 = vmatpush.bf16.msrb.mxu0 %v616_v38 }
  0x2e   :  { %714 = vmatpush.bf16.msra.mxu1 %v632_v34 }
  0x30   :  { %377 = vmatpush.bf16.msrb.mxu0 %v600_v41 }
  0x32   :  { %715 = vmatpush.bf16.msra.mxu1 %v616_v38 }
  0x33   :  { %273 = vmatmul.bf16.gmra.mxu0 %v516_v47 }
  0x34   :  { %378 = vmatpush.bf16.msrb.mxu0 %v584_v46  ;;  %311 = vmatmul.bf16.gmra.mxu2 %v516_v47 }
  0x36   :  { %716 = vmatpush.bf16.msra.mxu1 %v600_v41 }
  0x38   :  { %379 = vmatpush.bf16.msrb.mxu0 %v568_v50 }
  0x39   :  { %349 = vmatmul.bf16.gmra.mxu1 %v516_v47  ;;  %670 = vmatmul.msk.bf16.gmra.mxu3 %vm253_vm0, %v885_v62 }
  0x3a   :  { %717 = vmatpush.bf16.msra.mxu1 %v584_v46 }
  0x3c   :  { %380 = vmatpush.bf16.msrb.mxu0 %v552_v53 }
  0x3e   :  { %718 = vmatpush.bf16.msra.mxu1 %v568_v50 }
  0x40   :  { %381 = vmatpush.bf16.msrb.mxu0 %v536_v56 }
  0x42   :  { %719 = vmatpush.bf16.msra.mxu1 %v552_v53 }
  0x43   :  { %382 = vmatmul.bf16.vlgmr.msrb.gmra.mxu0 %v508_v31 }
  0x44   :  { %671 = vmatmul.msk.bf16.vlgmr.msrb.gmra.mxu2 %vm253_vm0, %v783_v16 }
  0x46   :  { %720 = vmatpush.bf16.msra.mxu1 %v536_v56 }
  0x49   :  { %387 = vmatmul.bf16.vlgmr.msra.gmra.mxu1 %v516_v47  ;;  %672 = vmatmul.msk.bf16.vlgmr.msra.gmra.mxu3 %vm253_vm0, %v885_v62 }
  0x85   :  { %v288_v57 = vpop.f32.mrf.mxu1 }
  0x8c   :  { %v326_v58 = vpop.f32.mrf.mxu3 }
  0x8d   :  { %v290_v59 = vpop.f32.mrf.mxu1 }
  0x94   :  { %v328_v60 = vpop.f32.mrf.mxu3 }
  0x95   :  { %v293_v61 = vpop.f32.mrf.mxu1 }
  0x9c   :  { %v331_v63 = vpop.f32.mrf.mxu3 }
  0x9d   :  { %v295_v0 = vpop.f32.mrf.mxu1 }
  0xa0   :  { %v269_v1 = vpop.f32.mrf.mxu0 }
  0xa1   :  { %v289_v2 = vadd.f32 %v288_v57, %v269_v1 }
  0xa3   :  { %412 = vst [vmem:[%s1095_s2] sm:$0xff] %v289_v2  ;;  %v453_v31 = vmul.f32 %v289_v2, %v289_v2 }
  0xa4   :  { %v333_v3 = vpop.f32.mrf.mxu3 }
  0xa6   :  { %v345_v4 = vpop.f32.mrf.mxu1 }
  0xa7   :  { %v307_v16 = vpop.f32.mrf.mxu2 }
  0xa8   :  { %v327_v5 = vadd.f32 %v326_v58, %v307_v16  ;;  %v271_v6 = vpop.f32.mrf.mxu0 }
  0xa9   :  { %v291_v7 = vadd.f32 %v290_v59, %v271_v6 }
  0xaa   :  { %413 = vst [vmem:[%s1095_s2 + $0x8] sm:$0xff] %v327_v5  ;;  %v454_v27 = vmul.f32 %v327_v5, %v327_v5  ;;  %v428_v32 = vadd.f32 %v327_v5, %v289_v2 }
  0xab   :  { %416 = vst [vmem:[%s1095_s2 + $0x20] sm:$0xff] %v291_v7  ;;  %v457_v48 = vmul.f32 %v291_v7, %v291_v7 }
  0xac   :  { %v364_v62 = vpop.f32.mrf.mxu3  ;;  %v469_v37 = vadd.f32 %v454_v27, %v453_v31 }
  0xad   :  { %v365_v8 = vadd.f32 %v364_v62, %v345_v4 }
  0xae   :  { %v347_v9 = vpop.f32.mrf.mxu1 }
  0xaf   :  { %414 = vst [vmem:[%s1095_s2 + $0x10] sm:$0xff] %v365_v8  ;;  %v309_v10 = vpop.f32.mrf.mxu2  ;;  %v455_v33 = vmul.f32 %v365_v8, %v365_v8  ;;  %v429_v36 = vadd.f32 %v428_v32, %v365_v8 }
  0xb0   :  { %v329_v11 = vadd.f32 %v328_v60, %v309_v10  ;;  %v274_v12 = vpop.f32.mrf.mxu0 }
  0xb1   :  { %v294_v13 = vadd.f32 %v293_v61, %v274_v12  ;;  %v470_v41 = vadd.f32 %v469_v37, %v455_v33 }
  0xb2   :  { %417 = vst [vmem:[%s1095_s2 + $0x28] sm:$0xff] %v329_v11  ;;  %v458_v43 = vmul.f32 %v329_v11, %v329_v11  ;;  %v433_v49 = vadd.f32 %v329_v11, %v291_v7 }
  0xb3   :  { %420 = vst [vmem:[%s1095_s2 + $0x40] sm:$0xff] %v294_v13 }
  0xb4   :  { %v366_v14 = vpop.f32.mrf.mxu3  ;;  %v474_v56 = vadd.f32 %v458_v43, %v457_v48 }
  0xb5   :  { %v367_v15 = vadd.f32 %v366_v14, %v347_v9 }
  0xb6   :  { %v350_v17 = vpop.f32.mrf.mxu1 }
  0xb7   :  { %418 = vst [vmem:[%s1095_s2 + $0x30] sm:$0xff] %v367_v15  ;;  %v312_v18 = vpop.f32.mrf.mxu2  ;;  %v459_v50 = vmul.f32 %v367_v15, %v367_v15  ;;  %v434_v55 = vadd.f32 %v433_v49, %v367_v15 }
  0xb8   :  { %v332_v19 = vadd.f32 %v331_v63, %v312_v18  ;;  %v276_v20 = vpop.f32.mrf.mxu0  ;;  %v461_v63 = vmul.f32 %v294_v13, %v294_v13 }
  0xb9   :  { %v1028_v21 = vadd.f32 %v295_v0, %v276_v20  ;;  %v475_v60 = vadd.f32 %v474_v56, %v459_v50 }
  0xba   :  { %421 = vst [vmem:[%s1095_s2 + $0x48] sm:$0xff] %v332_v19  ;;  %v438_v42 = vadd.f32 %v332_v19, %v294_v13  ;;  %v462_v57 = vmul.f32 %v332_v19, %v332_v19 }
  0xbb   :  { %424 = vst [vmem:[%s1095_s2 + $0x60] sm:$0xff] %v1028_v21  ;;  %v465_v9 = vmul.f32 %v1028_v21, %v1028_v21 }
  0xbc   :  { %v369_v22 = vpop.f32.mrf.mxu3  ;;  %v479_v6 = vadd.f32 %v462_v57, %v461_v63 }
  0xbd   :  { %v370_v23 = vadd.f32 %v369_v22, %v350_v17 }
  0xbe   :  { %v352_v25 = vpop.f32.mrf.mxu1 }
  0xbf   :  { %422 = vst [vmem:[%s1095_s2 + $0x50] sm:$0xff] %v370_v23  ;;  %v314_v24 = vpop.f32.mrf.mxu2  ;;  %v439_v47 = vadd.f32 %v438_v42, %v370_v23  ;;  %v463_v0 = vmul.f32 %v370_v23, %v370_v23 }
  0xc0   :  { %v334_v26 = vadd.f32 %v333_v3, %v314_v24  ;;  %v383_v30 = vpop.f32.mrf.mxu0 }
  0xc1   :  { %v480_v8 = vadd.f32 %v479_v6, %v463_v0 }
  0xc2   :  { %425 = vst [vmem:[%s1095_s2 + $0x68] sm:$0xff] %v334_v26  ;;  %v443_v61 = vadd.f32 %v334_v26, %v1028_v21  ;;  %v466_v7 = vmul.f32 %v334_v26, %v334_v26 }
  0xc4   :  { %v371_v28 = vpop.f32.mrf.mxu3  ;;  %v484_v13 = vadd.f32 %v466_v7, %v465_v9 }
  0xc5   :  { %v372_v29 = vadd.f32 %v371_v28, %v352_v25 }
  0xc6   :  { %v388_v38 = vpop.f32.mrf.mxu1 }
  0xc7   :  { %426 = vst [vmem:[%s1095_s2 + $0x70] sm:$0xff] %v372_v29  ;;  %v402_v34 = vpop.f32.mrf.mxu2  ;;  %v444_v16 = vadd.f32 %v443_v61, %v372_v29  ;;  %v467_v10 = vmul.f32 %v372_v29, %v372_v29 }
  0xc8   :  { %v403_v35 = vadd.f32 %v402_v34, %v383_v30  ;;  %v385_v51 = vpop.f32.mrf.mxu0 }
  0xc9   :  { %v485_v14 = vadd.f32 %v484_v13, %v467_v10 }
  0xca   :  { %415 = vst [vmem:[%s1095_s2 + $0x18] sm:$0xff] %v403_v35  ;;  %v430_v39 = vadd.f32 %v429_v36, %v403_v35  ;;  %v456_v40 = vmul.f32 %v403_v35, %v403_v35 }
  0xcc   :  { %v407_v44 = vpop.f32.mrf.mxu3  ;;  %431 = vadd.xlane.f32.xlu0 %v430_v39  ;;  %v471_v45 = vadd.f32 %v470_v41, %v456_v40 }
  0xcd   :  { %v408_v46 = vadd.f32 %v407_v44, %v388_v38 }
  0xce   :  { %472 = vadd.xlane.f32.xlu2 %v471_v45  ;;  %v390_v1 = vpop.f32.mrf.mxu1 }
  0xcf   :  { %423 = vst [vmem:[%s1095_s2 + $0x58] sm:$0xff] %v408_v46  ;;  %v404_v52 = vpop.f32.mrf.mxu2  ;;  %v440_v53 = vadd.f32 %v439_v47, %v408_v46  ;;  %v464_v5 = vmul.f32 %v408_v46, %v408_v46 }
  0xd0   :  { %v405_v54 = vadd.f32 %v404_v52, %v385_v51 }
  0xd1   :  { %441 = vadd.xlane.f32.xlu1 %v440_v53  ;;  %v481_v11 = vadd.f32 %v480_v8, %v464_v5 }
  0xd2   :  { %419 = vst [vmem:[%s1095_s2 + $0x38] sm:$0xff] %v405_v54  ;;  %v435_v58 = vadd.f32 %v434_v55, %v405_v54  ;;  %v460_v59 = vmul.f32 %v405_v54, %v405_v54 }
  0xd4   :  { %v409_v2 = vpop.f32.mrf.mxu3  ;;  %436 = vadd.xlane.f32.xlu0 %v435_v58  ;;  %v476_v3 = vadd.f32 %v475_v60, %v460_v59 }
  0xd5   :  { %v410_v4 = vadd.f32 %v409_v2, %v390_v1 }
  0xd6   :  { %477 = vadd.xlane.f32.xlu2 %v476_v3 }
  0xd7   :  { %427 = vst [vmem:[%s1095_s2 + $0x78] sm:$0xff] %v410_v4  ;;  %v445_v62 = vadd.f32 %v444_v16, %v410_v4  ;;  %v468_v12 = vmul.f32 %v410_v4, %v410_v4 }
  0xd9   :  { %446 = vadd.xlane.f32.xlu1 %v445_v62  ;;  %v486_v15 = vadd.f32 %v485_v14, %v468_v12 }
  0xdc   :  { %482 = vadd.xlane.f32.xlu0 %v481_v11 }
  0xe1   :  { %487 = vadd.xlane.f32.xlu1 %v486_v15 }
 0x13f   :  { %v432_v17 = vpop.xlane.xlu0 %431 }
 0x140   :  { %449 = vst.msk [vmem:[%s1096_s3] sm:$0xff] %vm448_vm1, %v432_v17 }
 0x141   :  { %v473_v18 = vpop.xlane.xlu2 %472 }
 0x142   :  { %489 = vst.msk [vmem:[%s1097_s4] sm:$0xff] %vm448_vm1, %v473_v18 }
 0x144   :  { %v442_v19 = vpop.xlane.xlu1 %441 }
 0x145   :  { %451 = vst.msk [vmem:[%s1096_s3 + $0x10] sm:$0xff] %vm448_vm1, %v442_v19 }
 0x147   :  { %v437_v20 = vpop.xlane.xlu0 %436 }
 0x148   :  { %450 = vst.msk [vmem:[%s1096_s3 + $0x8] sm:$0xff] %vm448_vm1, %v437_v20 }
 0x149   :  { %v478_v21 = vpop.xlane.xlu2 %477 }
 0x14a   :  { %490 = vst.msk [vmem:[%s1097_s4 + $0x8] sm:$0xff] %vm448_vm1, %v478_v21 }
 0x14c   :  { %v447_v22 = vpop.xlane.xlu1 %446 }
 0x14d   :  { %452 = vst.msk [vmem:[%s1096_s3 + $0x18] sm:$0xff] %vm448_vm1, %v447_v22 }
 0x14f   :  { %v483_v23 = vpop.xlane.xlu0 %482 }
 0x150   :  { %491 = vst.msk [vmem:[%s1097_s4 + $0x10] sm:$0xff] %vm448_vm1, %v483_v23 }
 0x154   :  { %v488_v24 = vpop.xlane.xlu1 %487 }
 0x155   :  { %492 = vst.msk [vmem:[%s1097_s4 + $0x18] sm:$0xff] %vm448_vm1, %v488_v24 }

// kernel: generator_forward.10
= control target key start
LH: loop header
LB: loop body
LE: loop exit
PB: predicated region body
PF: predicated region fallthrough
CT: control target
= control target key end

     0   :  { %v182_v0 = vmov 0   ;;  %s300_s0 = inlined_call_operand.vmem [shape: f32[32,1], index: 0, kind: input, shape index: {}]   ;;  %s301_s1 = inlined_call_operand.vmem [shape: f32[32,1], index: 1, kind: input, shape index: {}]   ;;  %s302_s2 = inlined_call_operand.vmem [shape: f32[32,512], index: 2, kind: input, shape index: {}]   ;;  %s303_s3 = inlined_call_operand.vmem [shape: bf16[32,512], index: 3, kind: output, shape index: {}]  }
   0x1   :  { %180 = vset.pattern.permute.xlu1 %v182_v0  ;;  %179 = vset.pattern.permute.xlu0 %v182_v0  ;;  %v32_v1 = vld [vmem:[%s300_s0 + $0x10] sm:$0xff]  ;;  %v30_v2 = vld [vmem:[%s300_s0] sm:$0xff]  ;;  %v33_v4 = vld [vmem:[%s300_s0 + $0x18] sm:$0xff] }
   0x2   :  { %46 = vperm.xlu1 %180, %v32_v1   ;;  %36 = vperm.xlu0 %179, %v30_v2   ;;  %v70_v3 = vld [vmem:[%s301_s1] sm:$0xff]  ;;  %v31_v5 = vld [vmem:[%s300_s0 + $0x8] sm:$0xff]  ;;  %v73_v7 = vld [vmem:[%s301_s1 + $0x18] sm:$0xff] }
   0x3   :  { %181 = vset.pattern.permute.xlu2 %v182_v0  ;;  %v71_v6 = vld [vmem:[%s301_s1 + $0x8] sm:$0xff]  ;;  %v72_v8 = vld [vmem:[%s301_s1 + $0x10] sm:$0xff]  ;;  %v14_v9 = vld [vmem:[%s302_s2] sm:$0xff] }
   0x4   :  { %76 = vperm.xlu2 %181, %v70_v3   ;;  %v15_v10 = vld [vmem:[%s302_s2 + $0x8] sm:$0xff]  ;;  %v16_v11 = vld [vmem:[%s302_s2 + $0x10] sm:$0xff]  ;;  %v17_v12 = vld [vmem:[%s302_s2 + $0x18] sm:$0xff] }
   0x5   :  { %v18_v24 = vld [vmem:[%s302_s2 + $0x20] sm:$0xff]  ;;  %v19_v25 = vld [vmem:[%s302_s2 + $0x28] sm:$0xff]  ;;  %v20_v30 = vld [vmem:[%s302_s2 + $0x30] sm:$0xff] }
   0x6   :  { %v21_v31 = vld [vmem:[%s302_s2 + $0x38] sm:$0xff]  ;;  %v22_v32 = vld [vmem:[%s302_s2 + $0x40] sm:$0xff]  ;;  %v23_v38 = vld [vmem:[%s302_s2 + $0x48] sm:$0xff] }
   0x7   :  { %v24_v39 = vld [vmem:[%s302_s2 + $0x50] sm:$0xff]  ;;  %v26_v44 = vld [vmem:[%s302_s2 + $0x60] sm:$0xff]  ;;  %v25_v45 = vld [vmem:[%s302_s2 + $0x58] sm:$0xff] }
   0x8   :  { %v27_v57 = vld [vmem:[%s302_s2 + $0x68] sm:$0xff]  ;;  %v28_v58 = vld [vmem:[%s302_s2 + $0x70] sm:$0xff]  ;;  %v29_v59 = vld [vmem:[%s302_s2 + $0x78] sm:$0xff] }
   0xa   :  { %51 = vperm.xlu1 %180, %v33_v4   ;;  %41 = vperm.xlu0 %179, %v31_v5  }
   0xc   :  { %81 = vperm.xlu2 %181, %v71_v6  }
  0x12   :  { %91 = vperm.xlu1 %180, %v73_v7   ;;  %86 = vperm.xlu0 %179, %v72_v8  }
  0x5e   :  { %v77_v13 = vpop.permute.xlu2 %76 }
  0x66   :  { %v82_v47 = vpop.permute.xlu2 %81 }
  0x74   :  { %v47_v14 = vpop.permute.xlu1 %46  ;;  %v37_v15 = vpop.permute.xlu0 %36 }
  0x75   :  { %v54_v16 = vmul.f32 %v37_v15, %v14_v9  ;;  %v55_v17 = vmul.f32 %v37_v15, %v15_v10  ;;  %v56_v18 = vmul.f32 %v37_v15, %v16_v11  ;;  %v57_v19 = vmul.f32 %v37_v15, %v17_v12 }
  0x76   :  { %v62_v50 = vmul.f32 %v47_v14, %v22_v32  ;;  %v63_v53 = vmul.f32 %v47_v14, %v23_v38  ;;  %v64_v54 = vmul.f32 %v47_v14, %v24_v39  ;;  %v65_v61 = vmul.f32 %v47_v14, %v25_v45 }
  0x77   :  { %v94_v20 = vadd.f32 %v77_v13, %v54_v16  ;;  %v95_v21 = vadd.f32 %v77_v13, %v55_v17  ;;  %v96_v22 = vadd.f32 %v77_v13, %v56_v18  ;;  %v97_v23 = vadd.f32 %v77_v13, %v57_v19 }
  0x79   :  { %vm110_vm0 = vcmp.ge.f32.partialorder %v94_v20, 0.0  ;;  %vm111_vm1 = vcmp.ge.f32.partialorder %v95_v21, 0.0  ;;  %vm112_vm2 = vcmp.ge.f32.partialorder %v96_v22, 0.0  ;;  %vm113_vm3 = vcmp.ge.f32.partialorder %v97_v23, 0.0 }
  0x7a   :  { %v126_v26 = vmul.f32 0.2, %v94_v20  ;;  %v127_v27 = vmul.f32 0.2, %v95_v21  ;;  %v128_v28 = vmul.f32 0.2, %v96_v22 }
  0x7b   :  { %v129_v29 = vmul.f32 0.2, %v97_v23 }
  0x7c   :  { %v142_v33 = vsel %vm110_vm0, %v94_v20, %v126_v26  ;;  %v143_v34 = vsel %vm111_vm1, %v95_v21, %v127_v27  ;;  %v144_v35 = vsel %vm112_vm2, %v96_v22, %v128_v28  ;;  %v52_v36 = vpop.permute.xlu1 %51  ;;  %v42_v37 = vpop.permute.xlu0 %41 }
  0x7d   :  { %v145_v40 = vsel %vm113_vm3, %v97_v23, %v129_v29  ;;  %v158_v41 = vpack.c.bf16 %v143_v34, %v142_v33  ;;  %v58_v42 = vmul.f32 %v42_v37, %v18_v24  ;;  %v59_v43 = vmul.f32 %v42_v37, %v19_v25 }
  0x7e   :  { %v159_v46 = vpack.c.bf16 %v145_v40, %v144_v35  ;;  %v60_v48 = vmul.f32 %v42_v37, %v20_v30  ;;  %v61_v49 = vmul.f32 %v42_v37, %v21_v31  ;;  %v66_v60 = vmul.f32 %v52_v36, %v26_v44 }
  0x7f   :  { %166 = vst [vmem:[%s303_s3] sm:$0xff] %v158_v41  ;;  %v98_v51 = vadd.f32 %v82_v47, %v58_v42  ;;  %v99_v52 = vadd.f32 %v82_v47, %v59_v43  ;;  %v67_v4 = vmul.f32 %v52_v36, %v27_v57  ;;  %v68_v5 = vmul.f32 %v52_v36, %v28_v58 }
  0x80   :  { %167 = vst [vmem:[%s303_s3 + $0x8] sm:$0xff] %v159_v46  ;;  %v100_v55 = vadd.f32 %v82_v47, %v60_v48  ;;  %v101_v56 = vadd.f32 %v82_v47, %v61_v49  ;;  %v69_v9 = vmul.f32 %v52_v36, %v29_v59 }
  0x81   :  { %vm114_vm4 = vcmp.ge.f32.partialorder %v98_v51, 0.0  ;;  %vm115_vm5 = vcmp.ge.f32.partialorder %v99_v52, 0.0  ;;  %v130_v62 = vmul.f32 0.2, %v98_v51  ;;  %v131_v63 = vmul.f32 0.2, %v99_v52 }
  0x82   :  { %vm116_vm6 = vcmp.ge.f32.partialorder %v100_v55, 0.0  ;;  %vm117_vm7 = vcmp.ge.f32.partialorder %v101_v56, 0.0  ;;  %v132_v0 = vmul.f32 0.2, %v100_v55  ;;  %v133_v1 = vmul.f32 0.2, %v101_v56 }
  0x83   :  { %v146_v2 = vsel %vm114_vm4, %v98_v51, %v130_v62  ;;  %v147_v3 = vsel %vm115_vm5, %v99_v52, %v131_v63 }
  0x84   :  { %v148_v6 = vsel %vm116_vm6, %v100_v55, %v132_v0  ;;  %v149_v7 = vsel %vm117_vm7, %v101_v56, %v133_v1  ;;  %v160_v8 = vpack.c.bf16 %v147_v3, %v146_v2  ;;  %v92_v10 = vpop.permute.xlu1 %91  ;;  %v87_v11 = vpop.permute.xlu0 %86 }
  0x85   :  { %v161_v12 = vpack.c.bf16 %v149_v7, %v148_v6  ;;  %v106_v13 = vadd.f32 %v92_v10, %v66_v60  ;;  %v107_v14 = vadd.f32 %v92_v10, %v67_v4  ;;  %v108_v15 = vadd.f32 %v92_v10, %v68_v5 }
  0x86   :  { %168 = vst [vmem:[%s303_s3 + $0x10] sm:$0xff] %v160_v8  ;;  %v109_v16 = vadd.f32 %v92_v10, %v69_v9  ;;  %v102_v17 = vadd.f32 %v87_v11, %v62_v50  ;;  %v103_v18 = vadd.f32 %v87_v11, %v63_v53  ;;  %v104_v19 = vadd.f32 %v87_v11, %v64_v54 }
  0x87   :  { %169 = vst [vmem:[%s303_s3 + $0x18] sm:$0xff] %v161_v12  ;;  %vm122_vm8 = vcmp.ge.f32.partialorder %v106_v13, 0.0  ;;  %vm123_vm9 = vcmp.ge.f32.partialorder %v107_v14, 0.0  ;;  %vm124_vm10 = vcmp.ge.f32.partialorder %v108_v15, 0.0  ;;  %v138_v20 = vmul.f32 0.2, %v106_v13 }
  0x88   :  { %vm125_vm11 = vcmp.ge.f32.partialorder %v109_v16, 0.0  ;;  %v139_v21 = vmul.f32 0.2, %v107_v14  ;;  %v140_v22 = vmul.f32 0.2, %v108_v15  ;;  %v105_v23 = vadd.f32 %v87_v11, %v65_v61 }
  0x89   :  { %v141_v24 = vmul.f32 0.2, %v109_v16  ;;  %v154_v25 = vsel %vm122_vm8, %v106_v13, %v138_v20  ;;  %vm118_vm12 = vcmp.ge.f32.partialorder %v102_v17, 0.0  ;;  %vm119_vm13 = vcmp.ge.f32.partialorder %v103_v18, 0.0 }
  0x8a   :  { %v155_v26 = vsel %vm123_vm9, %v107_v14, %v139_v21  ;;  %v156_v27 = vsel %vm124_vm10, %v108_v15, %v140_v22  ;;  %vm120_vm14 = vcmp.ge.f32.partialorder %v104_v19, 0.0  ;;  %vm121_vm15 = vcmp.ge.f32.partialorder %v105_v23, 0.0 }
  0x8b   :  { %v157_v28 = vsel %vm125_vm11, %v109_v16, %v141_v24  ;;  %v164_v29 = vpack.c.bf16 %v155_v26, %v154_v25  ;;  %v134_v30 = vmul.f32 0.2, %v102_v17  ;;  %v135_v31 = vmul.f32 0.2, %v103_v18 }
  0x8c   :  { %v165_v32 = vpack.c.bf16 %v157_v28, %v156_v27  ;;  %v136_v33 = vmul.f32 0.2, %v104_v19  ;;  %v137_v34 = vmul.f32 0.2, %v105_v23 }
  0x8d   :  { %172 = vst [vmem:[%s303_s3 + $0x30] sm:$0xff] %v164_v29  ;;  %v150_v35 = vsel %vm118_vm12, %v102_v17, %v134_v30  ;;  %v151_v36 = vsel %vm119_vm13, %v103_v18, %v135_v31 }
  0x8e   :  { %173 = vst [vmem:[%s303_s3 + $0x38] sm:$0xff] %v165_v32  ;;  %v152_v37 = vsel %vm120_vm14, %v104_v19, %v136_v33  ;;  %v153_v38 = vsel %vm121_vm15, %v105_v23, %v137_v34  ;;  %v162_v39 = vpack.c.bf16 %v151_v36, %v150_v35 }
  0x8f   :  { %v163_v40 = vpack.c.bf16 %v153_v38, %v152_v37 }
  0x90   :  { %170 = vst [vmem:[%s303_s3 + $0x20] sm:$0xff] %v162_v39 }
  0x91   :  { %171 = vst [vmem:[%s303_s3 + $0x28] sm:$0xff] %v163_v40 }

// kernel: generator_forward.11
= control target key start
LH: loop header
LB: loop body
LE: loop exit
PB: predicated region body
PF: predicated region fallthrough
CT: control target
= control target key end

     0   :  { %s1092_s9 = smov 0   ;;  %s1094_s10 = smov 0   ;;  %s1375_s0 = inlined_call_operand.vmem [shape: bf16[8,200], index: 0, kind: input, shape index: {}]   ;;  %s1376_s1 = inlined_call_operand.vmem [shape: bf16[200,2048], index: 1, kind: input, shape index: {}]   ;;  %s1377_s2 = inlined_call_operand.vmem [shape: f32[8,2048], index: 2, kind: output, shape index: {}]  }
   0x1   :  { %s1096_s11 = smov 0  }
   0x2 LB: > { %s763_s12 = sadd.s32 4294967295, %s1075_s11   ;;  %s1109_s13 = sadd.s32 1, %s1075_s11   ;;  %s1075_s11 = sphi %s1096_s11, %s1380_s11   ;;  %s1071_s10 = sphi %s1094_s10, %s1379_s10   ;;  %s1067_s9 = sphi %s1092_s9, %s1378_s9  }
   0x3   : > { %s37_s14 = ssub.s32 %s1075_s11, %s1109_s13  ;;  %s40_s15 = sadd.s32 1, %s1071_s10 }
   0x4   : > { %p38_p0 = scmp.eq.s32.totalorder %s37_s14, 0  ;;  %p47_p1 = scmp.ne.s32.totalorder %s1071_s10, %s1067_s9 }
   0x5   : > { %p48_p2 = scmp.eq.s32.totalorder %s1075_s11, 0  ;;  %p766_p4 = scmp.ge.s32.totalorder %s1075_s11, 4 }
   0x6   : > { %s1118_s16 = scalar_select %p38_p0, %s1071_s10, %s40_s15  }
   0x7   : > { %p49_p3 = por %p48_p2, %p47_p1  ;;  %102 = sbr.rel (%p766_p4) target bundleno = 66 (0x42), region = 20 }
   0xc   : > { %105 = sbr.rel (!%p49_p3) target bundleno = 66 (0x42), region = 24  ;;  %s107_s17 = sand.u32 (%p49_p3), 1, %s1071_s10  }
   0xd   : > { %s970_s18 = sshll.u32 (%p49_p3), %s1075_s11, 4  ;;  %s1019_s19 = smul.u32 (%p49_p3), 400, %s107_s17 }
   0xe   : > { %s1126_s22 = scalar_lea.vmem (%p49_p3), %s1376_s1, %s970_s18 }
   0xf   : > { %v125_v0 = vld [vmem:[%s1126_s22] sm:$0xff] (%p49_p3)  ;;  %v127_v1 = vld [vmem:[%s1126_s22 + $0x8] sm:$0xff] (%p49_p3)  ;;  %s1131_s23 = scalar_lea.vmem (%p49_p3), [#allocation2], %s1019_s19 }
  0x10   : > { %v129_v2 = vld [vmem:[%s1126_s22 + $0x40] sm:$0xff] (%p49_p3)  ;;  %126 = vst [vmem:[%s1131_s23] sm:$0xff] (%p49_p3), %v125_v0  ;;  %v131_v3 = vld [vmem:[%s1126_s22 + $0x48] sm:$0xff] (%p49_p3) }
  0x11   : > { %128 = vst [vmem:[%s1131_s23 + $0x8] sm:$0xff] %v127_v1  ;;  %v133_v4 = vld [vmem:[%s1126_s22 + $0x80] sm:$0xff]  ;;  %v135_v5 = vld [vmem:[%s1126_s22 + $0x88] sm:$0xff] }
  0x12   : > { %130 = vst [vmem:[%s1131_s23 + $0x10] sm:$0xff] %v129_v2  ;;  %v137_v6 = vld [vmem:[%s1126_s22 + $0xc0] sm:$0xff]  ;;  %v139_v7 = vld [vmem:[%s1126_s22 + $0xc8] sm:$0xff] }
  0x13   : > { %132 = vst [vmem:[%s1131_s23 + $0x18] sm:$0xff] %v131_v3  ;;  %v141_v8 = vld [vmem:[%s1126_s22 + $0x100] sm:$0xff]  ;;  %v143_v9 = vld [vmem:[%s1126_s22 + $0x108] sm:$0xff] }
  0x14   : > { %134 = vst [vmem:[%s1131_s23 + $0x20] sm:$0xff] %v133_v4  ;;  %v145_v10 = vld [vmem:[%s1126_s22 + $0x140] sm:$0xff]  ;;  %v147_v11 = vld [vmem:[%s1126_s22 + $0x148] sm:$0xff] }
  0x15   : > { %136 = vst [vmem:[%s1131_s23 + $0x28] sm:$0xff] %v135_v5  ;;  %v149_v12 = vld [vmem:[%s1126_s22 + $0x180] sm:$0xff]  ;;  %v151_v13 = vld [vmem:[%s1126_s22 + $0x188] sm:$0xff] }
  0x16   : > { %138 = vst [vmem:[%s1131_s23 + $0x30] sm:$0xff] %v137_v6  ;;  %v153_v14 = vld [vmem:[%s1126_s22 + $0x1c0] sm:$0xff]  ;;  %v155_v15 = vld [vmem:[%s1126_s22 + $0x1c8] sm:$0xff] }
  0x17   : > { %140 = vst [vmem:[%s1131_s23 + $0x38] sm:$0xff] %v139_v7  ;;  %v157_v16 = vld [vmem:[%s1126_s22 + $0x200] sm:$0xff]  ;;  %v159_v17 = vld [vmem:[%s1126_s22 + $0x208] sm:$0xff] }
  0x18   : > { %142 = vst [vmem:[%s1131_s23 + $0x40] sm:$0xff] %v141_v8  ;;  %v161_v18 = vld [vmem:[%s1126_s22 + $0x240] sm:$0xff]  ;;  %v163_v19 = vld [vmem:[%s1126_s22 + $0x248] sm:$0xff] }
  0x19   : > { %144 = vst [vmem:[%s1131_s23 + $0x48] sm:$0xff] %v143_v9  ;;  %v165_v20 = vld [vmem:[%s1126_s22 + $0x280] sm:$0xff]  ;;  %v167_v21 = vld [vmem:[%s1126_s22 + $0x288] sm:$0xff] }
  0x1a   : > { %146 = vst [vmem:[%s1131_s23 + $0x50] sm:$0xff] %v145_v10  ;;  %v169_v22 = vld [vmem:[%s1126_s22 + $0x2c0] sm:$0xff]  ;;  %v171_v23 = vld [vmem:[%s1126_s22 + $0x2c8] sm:$0xff] }
  0x1b   : > { %148 = vst [vmem:[%s1131_s23 + $0x58] sm:$0xff] %v147_v11  ;;  %v173_v24 = vld [vmem:[%s1126_s22 + $0x300] sm:$0xff]  ;;  %v175_v25 = vld [vmem:[%s1126_s22 + $0x308] sm:$0xff] }
  0x1c   : > { %150 = vst [vmem:[%s1131_s23 + $0x60] sm:$0xff] %v149_v12  ;;  %v177_v26 = vld [vmem:[%s1126_s22 + $0x340] sm:$0xff]  ;;  %v179_v27 = vld [vmem:[%s1126_s22 + $0x348] sm:$0xff] }
  0x1d   : > { %152 = vst [vmem:[%s1131_s23 + $0x68] sm:$0xff] %v151_v13  ;;  %v181_v28 = vld [vmem:[%s1126_s22 + $0x380] sm:$0xff]  ;;  %v183_v29 = vld [vmem:[%s1126_s22 + $0x388] sm:$0xff] }
  0x1e   : > { %154 = vst [vmem:[%s1131_s23 + $0x70] sm:$0xff] %v153_v14  ;;  %v185_v30 = vld [vmem:[%s1126_s22 + $0x3c0] sm:$0xff]  ;;  %v187_v31 = vld [vmem:[%s1126_s22 + $0x3c8] sm:$0xff] }
  0x1f   : > { %156 = vst [vmem:[%s1131_s23 + $0x78] sm:$0xff] %v155_v15  ;;  %v189_v32 = vld [vmem:[%s1126_s22 + $0x400] sm:$0xff]  ;;  %v191_v33 = vld [vmem:[%s1126_s22 + $0x408] sm:$0xff] }
  0x20   : > { %158 = vst [vmem:[%s1131_s23 + $0x80] sm:$0xff] %v157_v16  ;;  %v193_v34 = vld [vmem:[%s1126_s22 + $0x440] sm:$0xff]  ;;  %v195_v35 = vld [vmem:[%s1126_s22 + $0x448] sm:$0xff] }
  0x21   : > { %160 = vst [vmem:[%s1131_s23 + $0x88] sm:$0xff] %v159_v17  ;;  %v197_v36 = vld [vmem:[%s1126_s22 + $0x480] sm:$0xff]  ;;  %v199_v37 = vld [vmem:[%s1126_s22 + $0x488] sm:$0xff] }
  0x22   : > { %162 = vst [vmem:[%s1131_s23 + $0x90] sm:$0xff] %v161_v18  ;;  %v201_v38 = vld [vmem:[%s1126_s22 + $0x4c0] sm:$0xff]  ;;  %v203_v39 = vld [vmem:[%s1126_s22 + $0x4c8] sm:$0xff] }
  0x23   : > { %164 = vst [vmem:[%s1131_s23 + $0x98] sm:$0xff] %v163_v19  ;;  %v205_v40 = vld [vmem:[%s1126_s22 + $0x500] sm:$0xff]  ;;  %v207_v41 = vld [vmem:[%s1126_s22 + $0x508] sm:$0xff] }
  0x24   : > { %166 = vst [vmem:[%s1131_s23 + $0xa0] sm:$0xff] %v165_v20  ;;  %v209_v42 = vld [vmem:[%s1126_s22 + $0x540] sm:$0xff]  ;;  %v211_v43 = vld [vmem:[%s1126_s22 + $0x548] sm:$0xff] }
  0x25   : > { %168 = vst [vmem:[%s1131_s23 + $0xa8] sm:$0xff] %v167_v21  ;;  %v213_v44 = vld [vmem:[%s1126_s22 + $0x580] sm:$0xff]  ;;  %v215_v45 = vld [vmem:[%s1126_s22 + $0x588] sm:$0xff] }
  0x26   : > { %170 = vst [vmem:[%s1131_s23 + $0xb0] sm:$0xff] %v169_v22  ;;  %v217_v46 = vld [vmem:[%s1126_s22 + $0x5c0] sm:$0xff]  ;;  %v219_v47 = vld [vmem:[%s1126_s22 + $0x5c8] sm:$0xff] }
  0x27   : > { %172 = vst [vmem:[%s1131_s23 + $0xb8] sm:$0xff] %v171_v23  ;;  %v221_v48 = vld [vmem:[%s1126_s22 + $0x600] sm:$0xff]  ;;  %v223_v49 = vld [vmem:[%s1126_s22 + $0x608] sm:$0xff] }
  0x28   : > { %174 = vst [vmem:[%s1131_s23 + $0xc0] sm:$0xff] %v173_v24 }
  0x29   : > { %176 = vst [vmem:[%s1131_s23 + $0xc8] sm:$0xff] %v175_v25 }
  0x2a   : > { %178 = vst [vmem:[%s1131_s23 + $0xd0] sm:$0xff] %v177_v26 }
  0x2b   : > { %180 = vst [vmem:[%s1131_s23 + $0xd8] sm:$0xff] %v179_v27 }
  0x2c   : > { %182 = vst [vmem:[%s1131_s23 + $0xe0] sm:$0xff] %v181_v28 }
  0x2d   : > { %184 = vst [vmem:[%s1131_s23 + $0xe8] sm:$0xff] %v183_v29 }
  0x2e   : > { %186 = vst [vmem:[%s1131_s23 + $0xf0] sm:$0xff] %v185_v30 }
  0x2f   : > { %188 = vst [vmem:[%s1131_s23 + $0xf8] sm:$0xff] %v187_v31 }
  0x30   : > { %190 = vst [vmem:[%s1131_s23 + $0x100] sm:$0xff] %v189_v32 }
  0x31   : > { %192 = vst [vmem:[%s1131_s23 + $0x108] sm:$0xff] %v191_v33 }
  0x32   : > { %194 = vst [vmem:[%s1131_s23 + $0x110] sm:$0xff] %v193_v34 }
  0x33   : > { %196 = vst [vmem:[%s1131_s23 + $0x118] sm:$0xff] %v195_v35 }
  0x34   : > { %198 = vst [vmem:[%s1131_s23 + $0x120] sm:$0xff] %v197_v36 }
  0x35   : > { %200 = vst [vmem:[%s1131_s23 + $0x128] sm:$0xff] %v199_v37 }
  0x36   : > { %202 = vst [vmem:[%s1131_s23 + $0x130] sm:$0xff] %v201_v38 }
  0x37   : > { %204 = vst [vmem:[%s1131_s23 + $0x138] sm:$0xff] %v203_v39 }
  0x38   : > { %206 = vst [vmem:[%s1131_s23 + $0x140] sm:$0xff] %v205_v40 }
  0x39   : > { %208 = vst [vmem:[%s1131_s23 + $0x148] sm:$0xff] %v207_v41 }
  0x3a   : > { %210 = vst [vmem:[%s1131_s23 + $0x150] sm:$0xff] %v209_v42 }
  0x3b   : > { %212 = vst [vmem:[%s1131_s23 + $0x158] sm:$0xff] %v211_v43 }
  0x3c   : > { %214 = vst [vmem:[%s1131_s23 + $0x160] sm:$0xff] %v213_v44 }
  0x3d   : > { %216 = vst [vmem:[%s1131_s23 + $0x168] sm:$0xff] %v215_v45 }
  0x3e   : > { %218 = vst [vmem:[%s1131_s23 + $0x170] sm:$0xff] %v217_v46 }
  0x3f   : > { %220 = vst [vmem:[%s1131_s23 + $0x178] sm:$0xff] %v219_v47 }
  0x40   : > { %222 = vst [vmem:[%s1131_s23 + $0x180] sm:$0xff] %v221_v48 }
  0x41   : > { %224 = vst [vmem:[%s1131_s23 + $0x188] sm:$0xff] %v223_v49 }
  0x42 PF: > { %p769_p5 = scmp.ge.s32.totalorder %s1075_s11, 1  ;;  %p229_p6 = scmp.lt.s32.totalorder %s1075_s11, 5 }
  0x44   : > { %p230_p7 = pnand %p769_p5, %p229_p6 }
  0x45   : > { %s236_s24 = sand.u32 (!%p230_p7), 1, %s1067_s9   ;;  %s770_s29 = sshll.u32 (!%p230_p7), %s763_s12, 2 }
  0x46   : > { %233 = sbr.rel (%p230_p7) target bundleno = 277 (0x115), region = 47  ;;  %p259_p8 = scmp.lt.s32.totalorder (!%p230_p7), %s770_s29, 15 }
  0x47   : > { %s1020_s25 = smul.u32 (!%p230_p7), 400, %s236_s24 }
  0x49   : > { %s1233_s26 = scalar_lea.vmem (!%p230_p7), [#allocation2], %s1020_s25 }
  0x4b   : > { %v886_v50 = vld [vmem:[%s1233_s26 + $0xe0] sm:$0xf]  ;;  %v1001_v51 = vld [vmem:[%s1233_s26 + $0xec] sm:$0xf0]  ;;  %v999_v52 = vld [vmem:[%s1233_s26 + $0xe4] sm:$0xf] }
  0x4c   : > { %v887_v53 = vor.u32 %v1001_v51, %v886_v50  ;;  %v888_v54 = vld [vmem:[%s1233_s26 + $0xf0] sm:$0xf0]  ;;  %v870_v55 = vld [vmem:[%s1233_s26 + $0xc0] sm:$0xf]  ;;  %v997_v56 = vld [vmem:[%s1233_s26 + $0xcc] sm:$0xf0] }
  0x4d   : > { %v891_v57 = vor.u32 %v999_v52, %v888_v54  ;;  %v314_v58 = vld [vmem:[%s1233_s26 + $0x180] sm:$0xff]  ;;  %v872_v60 = vld [vmem:[%s1233_s26 + $0xd0] sm:$0xf0]  ;;  %v871_v61 = vor.u32 %v997_v56, %v870_v55  ;;  %vm576_vm0 = vcmask 1043456   ;;  %v993_v2 = vld [vmem:[%s1233_s26 + $0xac] sm:$0xf0] }
  0x4e   : > { %v995_v59 = vld [vmem:[%s1233_s26 + $0xc4] sm:$0xf]  ;;  %589 = vmatpush.bf16.msra.mxu0 %v887_v53  ;;  %v468_v62 = vunpack.c.l.b16 %v314_v58  ;;  %v469_v63 = vunpack.c.h.b16 %v314_v58  ;;  %v854_v1 = vld [vmem:[%s1233_s26 + $0xa0] sm:$0xf]  ;;  %v1017_v5 = vld [vmem:[%s1233_s26 + $0x16c] sm:$0xf0] }
  0x4f   : > { %615 = vmatpush.bf16.msra.mxu2 %v891_v57  ;;  %v875_v0 = vor.u32 %v995_v59, %v872_v60  ;;  %v950_v3 = vld [vmem:[%s1233_s26 + $0x160] sm:$0xf]  ;;  %v991_v6 = vld [vmem:[%s1233_s26 + $0xa4] sm:$0xf]  ;;  %v856_v7 = vld [vmem:[%s1233_s26 + $0xb0] sm:$0xf0]  ;;  %v855_v10 = vor.u32 %v993_v2, %v854_v1 }
  0x50   : > { %v520_v4 = vpack.c.b16 %v468_v62, %v468_v62  ;;  %v521_v8 = vpack.c.b16 %v469_v63, %v469_v63  ;;  %v1015_v12 = vld [vmem:[%s1233_s26 + $0x164] sm:$0xf]  ;;  %v952_v13 = vld [vmem:[%s1233_s26 + $0x170] sm:$0xf0]  ;;  %v951_v14 = vor.u32 %v1017_v5, %v950_v3  ;;  %v859_v15 = vor.u32 %v991_v6, %v856_v7  ;;  %v838_v16 = vld [vmem:[%s1233_s26 + $0x80] sm:$0xf] }
  0x51   : > { %v989_v17 = vld [vmem:[%s1233_s26 + $0x8c] sm:$0xf0]  ;;  %v934_v18 = vld [vmem:[%s1233_s26 + $0x140] sm:$0xf]  ;;  %v987_v20 = vld [vmem:[%s1233_s26 + $0x84] sm:$0xf]  ;;  %v955_v22 = vor.u32 %v1015_v12, %v952_v13 }
  0x52   : > { %590 = vmatpush.bf16.msra.mxu0 %v871_v61  ;;  %v578_v9 = vsel %vm576_vm0, %v520_v4, 0  ;;  %v581_v11 = vsel %vm576_vm0, %v521_v8, 0  ;;  %v1013_v19 = vld [vmem:[%s1233_s26 + $0x14c] sm:$0xf0]  ;;  %v840_v21 = vld [vmem:[%s1233_s26 + $0x90] sm:$0xf0]  ;;  %v839_v25 = vor.u32 %v989_v17, %v838_v16 }
  0x53   : > { %605 = vmatpush.bf16.msra.mxu1 %v578_v9  ;;  %616 = vmatpush.bf16.msra.mxu2 %v875_v0  ;;  %v1011_v23 = vld [vmem:[%s1233_s26 + $0x144] sm:$0xf]  ;;  %v936_v24 = vld [vmem:[%s1233_s26 + $0x150] sm:$0xf0]  ;;  %v935_v26 = vor.u32 %v1013_v19, %v934_v18  ;;  %v843_v27 = vor.u32 %v987_v20, %v840_v21  ;;  %v822_v28 = vld [vmem:[%s1233_s26 + $0x60] sm:$0xf] }
  0x54   : > { %631 = vmatpush.bf16.msra.mxu3 %v581_v11  ;;  %v985_v29 = vld [vmem:[%s1233_s26 + $0x6c] sm:$0xf0]  ;;  %v918_v30 = vld [vmem:[%s1233_s26 + $0x120] sm:$0xf]  ;;  %v983_v32 = vld [vmem:[%s1233_s26 + $0x64] sm:$0xf]  ;;  %v939_v34 = vor.u32 %v1011_v23, %v936_v24 }
  0x55   : > { %v1009_v31 = vld [vmem:[%s1233_s26 + $0x12c] sm:$0xf0]  ;;  %v824_v33 = vld [vmem:[%s1233_s26 + $0x70] sm:$0xf0]  ;;  %v1007_v35 = vld [vmem:[%s1233_s26 + $0x124] sm:$0xf]  ;;  %v823_v37 = vor.u32 %v985_v29, %v822_v28 }
  0x56   : > { %591 = vmatpush.bf16.msra.mxu0 %v855_v10  ;;  %v920_v36 = vld [vmem:[%s1233_s26 + $0x130] sm:$0xf0]  ;;  %v806_v38 = vld [vmem:[%s1233_s26 + $0x40] sm:$0xf]  ;;  %v981_v39 = vld [vmem:[%s1233_s26 + $0x4c] sm:$0xf0]  ;;  %v919_v41 = vor.u32 %v1009_v31, %v918_v30  ;;  %v827_v42 = vor.u32 %v983_v32, %v824_v33 }
  0x57   : > { %606 = vmatpush.bf16.msra.mxu1 %v951_v14  ;;  %617 = vmatpush.bf16.msra.mxu2 %v859_v15  ;;  %v1275_v40 = vld [vmem:[%s1375_s0] sm:$0xff]  ;;  %v315_v45 = vld [vmem:[%s1233_s26 + $0x188] sm:$0xff]  ;;  %v923_v49 = vor.u32 %v1007_v35, %v920_v36  ;;  %v1002_v51 = vld [vmem:[%s1233_s26 + $0xf4] sm:$0xf0]  ;;  %v807_v54 = vor.u32 %v981_v39, %v806_v38  ;;  %vm572_vm1 = vcmask 588800   ;;  %s1382_s29 = smov (!%p259_p8, %s770_s29), 15 }
  0x58   : > { %632 = vmatpush.bf16.msra.mxu3 %v955_v22  ;;  %v902_v43 = vld [vmem:[%s1233_s26 + $0x100] sm:$0xf]  ;;  %v1005_v44 = vld [vmem:[%s1233_s26 + $0x10c] sm:$0xf0]  ;;  %v979_v46 = vld [vmem:[%s1233_s26 + $0x44] sm:$0xf]  ;;  %v470_v50 = vunpack.c.l.b16 %v315_v45  ;;  %v318_v60 = vunpack.c.h.b16 %v1275_v40  ;;  %v471_v3 = vunpack.c.h.b16 %v315_v45  ;;  %v317_v22 = vunpack.c.l.b16 %v1275_v40 }
  0x59   : > { %v808_v47 = vld [vmem:[%s1233_s26 + $0x50] sm:$0xf0]  ;;  %v894_v48 = vld [vmem:[%s1233_s26 + $0xe8] sm:$0xf]  ;;  %v1003_v52 = vld [vmem:[%s1233_s26 + $0x104] sm:$0xf]  ;;  %v903_v56 = vor.u32 %v1005_v44, %v902_v43 }
  0x5a   : > { %592 = vmatpush.bf16.msra.mxu0 %v839_v25  ;;  %v904_v53 = vld [vmem:[%s1233_s26 + $0x110] sm:$0xf0]  ;;  %v522_v55 = vpack.c.b16 %v470_v50, %v470_v50  ;;  %v811_v57 = vor.u32 %v979_v46, %v808_v47  ;;  %v790_v58 = vld [vmem:[%s1233_s26 + $0x20] sm:$0xf]  ;;  %v977_v59 = vld [vmem:[%s1233_s26 + $0x2c] sm:$0xf0]  ;;  %v895_v61 = vor.u32 %v1002_v51, %v894_v48  ;;  %v1299_v12 = vpack.c.b16 %v318_v60, %v318_v60 }
  0x5b   : > { %607 = vmatpush.bf16.msra.mxu1 %v935_v26  ;;  %618 = vmatpush.bf16.msra.mxu2 %v843_v27  ;;  %v975_v62 = vld [vmem:[%s1233_s26 + $0x24] sm:$0xf]  ;;  %v792_v63 = vld [vmem:[%s1233_s26 + $0x30] sm:$0xf0]  ;;  %v907_v0 = vor.u32 %v1003_v52, %v904_v53  ;;  %v878_v1 = vld [vmem:[%s1233_s26 + $0xc8] sm:$0xf]  ;;  %v791_v4 = vor.u32 %v977_v59, %v790_v58  ;;  %v523_v19 = vpack.c.b16 %v471_v3, %v471_v3 }
  0x5c   : > { %633 = vmatpush.bf16.msra.mxu3 %v939_v34  ;;  %v998_v2 = vld [vmem:[%s1233_s26 + $0xd4] sm:$0xf0]  ;;  %v584_v5 = vsel %vm576_vm0, %v522_v55, 0  ;;  %v958_v6 = vld [vmem:[%s1233_s26 + $0x168] sm:$0xf]  ;;  %v795_v8 = vor.u32 %v975_v62, %v792_v63  ;;  %v1320_v36 = vpack.c.b16 %v317_v22, %v317_v22  ;;  %s771_s30 = sshll.u32 %s1382_s29, 3 }
  0x5d   : > { %v1018_v7 = vld [vmem:[%s1233_s26 + $0x174] sm:$0xf0]  ;;  %v774_v9 = vld [vmem:[%s1233_s26] sm:$0xf]  ;;  %v973_v10 = vld [vmem:[%s1233_s26 + $0xc] sm:$0xf0]  ;;  %v879_v13 = vor.u32 %v998_v2, %v878_v1  ;;  %s262_s5 = scalar_lea.vmem %s1377_s2, %s771_s30 }
  0x5e   : > { %593 = vmatpush.bf16.msra.mxu0 %v823_v37  ;;  %v971_v11 = vld [vmem:[%s1233_s26 + $0x4] sm:$0xf]  ;;  %v776_v14 = vld [vmem:[%s1233_s26 + $0x10] sm:$0xf0]  ;;  %v1000_v15 = vld [vmem:[%s1233_s26 + $0xec] sm:$0xf]  ;;  %v959_v20 = vor.u32 %v1018_v7, %v958_v6  ;;  %v775_v21 = vor.u32 %v973_v10, %v774_v9 }
  0x5f   : > { %608 = vmatpush.bf16.msra.mxu1 %v919_v41  ;;  %619 = vmatpush.bf16.msra.mxu2 %v827_v42  ;;  %v896_v16 = vld [vmem:[%s1233_s26 + $0xf8] sm:$0xf0]  ;;  %v862_v17 = vld [vmem:[%s1233_s26 + $0xa8] sm:$0xf]  ;;  %v994_v18 = vld [vmem:[%s1233_s26 + $0xb4] sm:$0xf0]  ;;  %v779_v25 = vor.u32 %v971_v11, %v776_v14 }
  0x60   : > { %634 = vmatpush.bf16.msra.mxu3 %v923_v49  ;;  %v942_v23 = vld [vmem:[%s1233_s26 + $0x148] sm:$0xf]  ;;  %v1014_v24 = vld [vmem:[%s1233_s26 + $0x154] sm:$0xf0]  ;;  %v899_v26 = vor.u32 %v1000_v15, %v896_v16  ;;  %v863_v28 = vor.u32 %v994_v18, %v862_v17  ;;  %v996_v30 = vld [vmem:[%s1233_s26 + $0xcc] sm:$0xf] }
  0x61   : > { %v846_v27 = vld [vmem:[%s1233_s26 + $0x88] sm:$0xf]  ;;  %v990_v29 = vld [vmem:[%s1233_s26 + $0x94] sm:$0xf0]  ;;  %v880_v31 = vld [vmem:[%s1233_s26 + $0xd8] sm:$0xf0]  ;;  %v943_v35 = vor.u32 %v1014_v24, %v942_v23 }
  0x62   : > { %594 = vmatpush.bf16.msra.mxu0 %v807_v54  ;;  %v587_v32 = vsel %vm576_vm0, %v523_v19, 0  ;;  %v1016_v33 = vld [vmem:[%s1233_s26 + $0x16c] sm:$0xf]  ;;  %v960_v34 = vld [vmem:[%s1233_s26 + $0x178] sm:$0xf0]  ;;  %v883_v39 = vor.u32 %v996_v30, %v880_v31  ;;  %v847_v40 = vor.u32 %v990_v29, %v846_v27 }
  0x63   : > { %609 = vmatpush.bf16.msra.mxu1 %v903_v56  ;;  %620 = vmatpush.bf16.msra.mxu2 %v811_v57  ;;  %v926_v37 = vld [vmem:[%s1233_s26 + $0x128] sm:$0xf]  ;;  %v1010_v38 = vld [vmem:[%s1233_s26 + $0x134] sm:$0xf0]  ;;  %v963_v41 = vor.u32 %v1016_v33, %v960_v34  ;;  %v992_v43 = vld [vmem:[%s1233_s26 + $0xac] sm:$0xf] }
  0x64   : > { %635 = vmatpush.bf16.msra.mxu3 %v907_v0  ;;  %v830_v42 = vld [vmem:[%s1233_s26 + $0x68] sm:$0xf]  ;;  %v864_v44 = vld [vmem:[%s1233_s26 + $0xb8] sm:$0xf0]  ;;  %v986_v45 = vld [vmem:[%s1233_s26 + $0x74] sm:$0xf0]  ;;  %v927_v48 = vor.u32 %v1010_v38, %v926_v37 }
  0x65   : > { %v1012_v46 = vld [vmem:[%s1233_s26 + $0x14c] sm:$0xf]  ;;  %v944_v47 = vld [vmem:[%s1233_s26 + $0x158] sm:$0xf0]  ;;  %v910_v49 = vld [vmem:[%s1233_s26 + $0x108] sm:$0xf]  ;;  %v867_v51 = vor.u32 %v992_v43, %v864_v44  ;;  %v831_v52 = vor.u32 %v986_v45, %v830_v42 }
  0x66   : > { %595 = vmatpush.bf16.msra.mxu0 %v791_v4  ;;  %964 = vmatmul.msk.bf16.vlgmr.msra.gmra.mxu1 %vm572_vm1, %v1299_v12  ;;  %v1006_v50 = vld [vmem:[%s1233_s26 + $0x114] sm:$0xf0]  ;;  %v947_v53 = vor.u32 %v1012_v46, %v944_v47  ;;  %v814_v54 = vld [vmem:[%s1233_s26 + $0x48] sm:$0xf]  ;;  %v988_v55 = vld [vmem:[%s1233_s26 + $0x8c] sm:$0xf] }
  0x67   : > { %641 = vmatpush.bf16.msrb.mxu1 %v895_v61  ;;  %621 = vmatpush.bf16.msra.mxu2 %v795_v8  ;;  %v848_v56 = vld [vmem:[%s1233_s26 + $0x98] sm:$0xf0]  ;;  %v982_v57 = vld [vmem:[%s1233_s26 + $0x54] sm:$0xf0]  ;;  %v1008_v58 = vld [vmem:[%s1233_s26 + $0x12c] sm:$0xf]  ;;  %v911_v60 = vor.u32 %v1006_v50, %v910_v49 }
  0x68   : > { %657 = vmatpush.bf16.msrb.mxu3 %v584_v5  ;;  %v928_v59 = vld [vmem:[%s1233_s26 + $0x138] sm:$0xf0]  ;;  %v851_v61 = vor.u32 %v988_v55, %v848_v56  ;;  %v815_v62 = vor.u32 %v982_v57, %v814_v54  ;;  %v798_v0 = vld [vmem:[%s1233_s26 + $0x28] sm:$0xf]  ;;  %v984_v1 = vld [vmem:[%s1233_s26 + $0x6c] sm:$0xf] }
  0x69   : > { %965 = vmatmul.msk.bf16.vlgmr.msra.gmra.mxu3 %vm572_vm1, %v1299_v12  ;;  %v931_v63 = vor.u32 %v1008_v58, %v928_v59  ;;  %v832_v2 = vld [vmem:[%s1233_s26 + $0x78] sm:$0xf0]  ;;  %v978_v3 = vld [vmem:[%s1233_s26 + $0x34] sm:$0xf0]  ;;  %v1004_v4 = vld [vmem:[%s1233_s26 + $0x10c] sm:$0xf] }
  0x6a   : > { %596 = vmatpush.bf16.msra.mxu0 %v775_v21  ;;  %v912_v5 = vld [vmem:[%s1233_s26 + $0x118] sm:$0xf0]  ;;  %v835_v6 = vor.u32 %v984_v1, %v832_v2  ;;  %v799_v7 = vor.u32 %v978_v3, %v798_v0  ;;  %v980_v9 = vld [vmem:[%s1233_s26 + $0x4c] sm:$0xf]  ;;  %v782_v11 = vld [vmem:[%s1233_s26 + $0x8] sm:$0xf] }
  0x6b   : > { %642 = vmatpush.bf16.msrb.mxu1 %v879_v13  ;;  %622 = vmatpush.bf16.msra.mxu2 %v779_v25  ;;  %v915_v8 = vor.u32 %v1004_v4, %v912_v5  ;;  %v816_v10 = vld [vmem:[%s1233_s26 + $0x58] sm:$0xf0]  ;;  %v974_v13 = vld [vmem:[%s1233_s26 + $0x14] sm:$0xf0]  ;;  %v976_v16 = vld [vmem:[%s1233_s26 + $0x2c] sm:$0xf] }
  0x6c   : > { %658 = vmatpush.bf16.msrb.mxu3 %v959_v20  ;;  %v819_v14 = vor.u32 %v980_v9, %v816_v10  ;;  %v783_v15 = vor.u32 %v974_v13, %v782_v11  ;;  %v800_v17 = vld [vmem:[%s1233_s26 + $0x38] sm:$0xf0]  ;;  %v972_v19 = vld [vmem:[%s1233_s26 + $0xc] sm:$0xf] }
  0x6d   : > { %597 = vmatmul.bf16.vlgmr.msra.gmra.mxu0 %v1320_v36  ;;  %v803_v18 = vor.u32 %v976_v16, %v800_v17  ;;  %v784_v20 = vld [vmem:[%s1233_s26 + $0x18] sm:$0xf0] }
  0x6e   : > { %667 = vmatpush.bf16.msrb.mxu0 %v899_v26  ;;  %623 = vmatmul.bf16.vlgmr.msra.gmra.mxu2 %v1320_v36  ;;  %v787_v21 = vor.u32 %v972_v19, %v784_v20 }
  0x6f   : > { %643 = vmatpush.bf16.msrb.mxu1 %v863_v28  ;;  %683 = vmatpush.bf16.msrb.mxu2 %v587_v32 }
  0x70   : > { %659 = vmatpush.bf16.msrb.mxu3 %v943_v35 }
  0x72   : > { %668 = vmatpush.bf16.msrb.mxu0 %v883_v39 }
  0x73   : > { %644 = vmatpush.bf16.msrb.mxu1 %v847_v40  ;;  %684 = vmatpush.bf16.msrb.mxu2 %v963_v41 }
  0x74   : > { %660 = vmatpush.bf16.msrb.mxu3 %v927_v48 }
  0x76   : > { %669 = vmatpush.bf16.msrb.mxu0 %v867_v51 }
  0x77   : > { %645 = vmatpush.bf16.msrb.mxu1 %v831_v52  ;;  %685 = vmatpush.bf16.msrb.mxu2 %v947_v53 }
  0x78   : > { %661 = vmatpush.bf16.msrb.mxu3 %v911_v60 }
  0x7a   : > { %670 = vmatpush.bf16.msrb.mxu0 %v851_v61 }
  0x7b   : > { %646 = vmatpush.bf16.msrb.mxu1 %v815_v62  ;;  %686 = vmatpush.bf16.msrb.mxu2 %v931_v63 }
  0x7c   : > { %966 = vmatmul.msk.bf16.vlgmr.msrb.gmra.mxu3 %vm572_vm1, %v1299_v12 }
  0x7e   : > { %671 = vmatpush.bf16.msrb.mxu0 %v835_v6 }
  0x7f   : > { %647 = vmatpush.bf16.msrb.mxu1 %v799_v7  ;;  %687 = vmatpush.bf16.msrb.mxu2 %v915_v8 }
  0x82   : > { %967 = vmatmul.msk.bf16.vlgmr.msrb.gmra.mxu2 %vm572_vm1, %v1299_v12  ;;  %672 = vmatpush.bf16.msrb.mxu0 %v819_v14 }
  0x83   : > { %648 = vmatpush.bf16.msrb.mxu1 %v783_v15 }
  0x86   : > { %649 = vmatmul.bf16.vlgmr.msrb.gmra.mxu1 %v1320_v36  ;;  %673 = vmatpush.bf16.msrb.mxu0 %v803_v18 }
  0x8a   : > { %674 = vmatpush.bf16.msrb.mxu0 %v787_v21 }
  0x8d   : > { %675 = vmatmul.bf16.vlgmr.msrb.gmra.mxu0 %v1320_v36 }
  0xe3   : > { %v611_v22 = vpop.f32.mrf.mxu1 }
  0xea   : > { %v598_v23 = vpop.f32.mrf.mxu0 }
  0xeb   : > { %v612_v12 = vadd.f32 %v611_v22, %v598_v23  ;;  %v613_v25 = vpop.f32.mrf.mxu1 }
  0xec   : > { %v637_v24 = vpop.f32.mrf.mxu3 }
  0xed   : > { %1045 = vtanh.f32 %v612_v12 }
  0xf1   : > { %v624_v26 = vpop.f32.mrf.mxu2 }
  0xf2   : > { %v638_v27 = vadd.f32 %v637_v24, %v624_v26  ;;  %v600_v28 = vpop.f32.mrf.mxu0 }
  0xf3   : > { %v1046_v30 = vpop.eup %1045 }
  0xf4   : > { %v639_v29 = vpop.f32.mrf.mxu3  ;;  %697 = vst [vmem:[%s262_s5] sm:$0xff] %v1046_v30  ;;  %1047 = vtanh.f32 %v638_v27 }
  0xf9   : > { %v626_v31 = vpop.f32.mrf.mxu2 }
  0xfa   : > { %v1048_v32 = vpop.eup %1047 }
  0xfb   : > { %698 = vst [vmem:[%s262_s5 + $0x8] sm:$0xff] %v1048_v32 }
  0xff   : > { %v663_v33 = vpop.f32.mrf.mxu3 }
 0x103   : > { %v650_v34 = vpop.f32.mrf.mxu1 }
 0x104   : > { %v664_v35 = vadd.f32 %v663_v33, %v650_v34 }
 0x105   : > { %v689_v36 = vpop.f32.mrf.mxu2 }
 0x106   : > { %1049 = vtanh.f32 %v664_v35 }
 0x107   : > { %v665_v37 = vpop.f32.mrf.mxu3 }
 0x10a   : > { %v676_v38 = vpop.f32.mrf.mxu0 }
 0x10b   : > { %v652_v39 = vpop.f32.mrf.mxu1  ;;  %v690_v40 = vadd.f32 %v689_v36, %v676_v38 }
 0x10c   : > { %v1050_v41 = vpop.eup %1049 }
 0x10d   : > { %699 = vst [vmem:[%s262_s5 + $0x10] sm:$0xff] %v1050_v41  ;;  %1051 = vtanh.f32 %v690_v40  ;;  %v691_v42 = vpop.f32.mrf.mxu2 }
 0x112   : > { %v678_v43 = vpop.f32.mrf.mxu0 }
 0x113   : > { %v1052_v44 = vpop.eup %1051 }
 0x114   : > { %700 = vst [vmem:[%s262_s5 + $0x18] sm:$0xff] %v1052_v44 }
 0x115 PF: > { %p9_p9 = scmp.ge.s32.totalorder %s1109_s13, 6   ;;  %s1378_s9 = smov %s1071_s10 }
 0x116   : > { %s1379_s10 = smov %s1118_s16  ;;  %s1380_s11 = smov %s1109_s13 }
 0x117   :  { %11 = sbr.rel (!%p9_p9) target bundleno = 2 (0x2), region = 86 }

</bundles_post_ra>
